<compile_context>
chip_gen: v7x
topology: tpu7x:2x2x1
jax: 0.10.0
libtpu: 0.0.40
codegen_flags: <defaults>
</compile_context>

<pallas_src>
import functools

import numpy as np
import jax
import jax.numpy as jnp
from jax.experimental import pallas as pl
from jax.experimental.pallas import tpu as pltpu

IMG_SIZE = 9
N_MOVES = IMG_SIZE * IMG_SIZE          # 81
K_IN_PAD = 128                         # lane-dense padded input columns
N_OUT_PAD = 128                        # lane-dense padded logits
BATCH_TILE = 512                       # rows per grid step (MXU M dim)

# In-kernel column layouts (chosen so pooling is four 128-aligned lane slabs):
#   h1  : (TB, 1152)  col = (i1*6 + j1)*32 + oc          (6x6 conv1 positions)
#   h2  : (TB, 1024)  col = ddi*256 + p*64 + oc          (ddi = offset in the
#                                                          2x2 pool window,
#                                                          p   = pool position)
#   pool: (TB, 256)   col = p*64 + oc


# ------------------------------ Pallas kernel -------------------------------

def _fused_forward_kernel(x_ref, w1_ref, b1_ref, w2_ref, b2_ref,
                          wf1_ref, bf1_ref, wf2_ref, bf2_ref, o_ref):
    cdt = w1_ref.dtype  # bf16 compute dtype for MXU operands

    # conv1 (dense GEMM over the 36 needed output positions) + bias + ReLU.
    # x is already bf16 and 128-lane padded by the wrapper.
    h1 = jnp.dot(x_ref[...], w1_ref[...],
                 preferred_element_type=jnp.float32)                  # (TB,1152)
    h1 = jnp.maximum(h1 + b1_ref[...], 0.0)
    # dropout1: eval-mode identity

    # conv2 (dense GEMM over the 16 pool-window positions) + bias + ReLU
    h2 = jnp.dot(h1.astype(cdt), w2_ref[...],
                 preferred_element_type=jnp.float32)                  # (TB,1024)
    h2 = jnp.maximum(h2 + b2_ref[...], 0.0)

    # 2x2 max-pool: columns ordered (window offset, pool pos, channel) so the
    # max is over four 128-aligned, 256-wide lane slabs.
    pooled = jnp.maximum(jnp.maximum(h2[:, 0:256], h2[:, 256:512]),
                         jnp.maximum(h2[:, 512:768], h2[:, 768:1024]))  # (TB,256)
    # dropout2: identity; torch .view(-1, 256) order is baked into wf1 rows.

    # fc1 + ReLU
    hf = jnp.dot(pooled.astype(cdt), wf1_ref[...],
                 preferred_element_type=jnp.float32)                  # (TB, 128)
    hf = jnp.maximum(hf + bf1_ref[...], 0.0)
    # dropout3: identity

    # fc2 (padded to 128 lanes; pad bias = -1e30 masks pad logits) + softmax
    logits = jnp.dot(hf.astype(cdt), wf2_ref[...],
                     preferred_element_type=jnp.float32) + bf2_ref[...]  # (TB,128)
    m = jnp.max(logits, axis=-1, keepdims=True)
    e = jnp.exp(logits - m)
    # Exact per-row reciprocal on the EUP slot + broadcast multiply (cheaper
    # than TBx128 VPU divides; row sums stay ==1 to f32 rounding).
    inv = pl.reciprocal(jnp.sum(e, axis=-1, keepdims=True), approx=False)
    o_ref[...] = e * inv


# ------------------------------ host wrapper ---------------------------------

@functools.partial(jax.jit, static_argnames=("batch_tile",))
def mcts_agent_cnn_forward(x, params, *, batch_tile=BATCH_TILE):
    """x: (B, 1, 9, 9) float32 NCHW.  Returns softmax policy (B, 81)."""
    B = x.shape[0]
    # Clamp the tile for small batches so padded rows aren't run through the
    # whole network; keep the sublane (8) divisibility requirement.
    bt = min(batch_tile, max(8, ((B + 7) // 8) * 8))
    nb = pl.cdiv(B, bt)
    Bp = nb * bt

    # Lane-dense (128-col), bf16 input: unmasked loads, half the DMA bytes,
    # no in-kernel f32->bf16 cast.
    xf = x.reshape(B, N_MOVES).astype(jnp.float32)
    xf = jnp.pad(xf, ((0, Bp - B), (0, K_IN_PAD - N_MOVES))).astype(jnp.bfloat16)

    w1, b1 = params["w1d"], params["b1d"]
    w2, b2 = params["w2d"], params["b2d"]
    wf1, bf1 = params["wf1"], params["bf1"]
    wf2, bf2 = params["wf2"], params["bf2"]

    flops = 2 * Bp * (K_IN_PAD * w1.shape[1] + w2.shape[0] * w2.shape[1]
                      + 256 * 128 + 128 * N_OUT_PAD)
    weight_bytes = sum(int(np.prod(a.shape)) * a.dtype.itemsize
                       for a in (w1, b1, w2, b2, wf1, bf1, wf2, bf2))
    cost = pl.CostEstimate(
        flops=flops,
        transcendentals=Bp * N_OUT_PAD,
        bytes_accessed=Bp * K_IN_PAD * 2 + Bp * N_OUT_PAD * 4 + weight_bytes)

    def batch_spec(cols):
        return pl.BlockSpec((bt, cols), lambda i: (i, 0))

    def const_spec(shape):
        # Constant index_map -> weights stay VMEM-resident across grid steps.
        # (pipeline_mode=pl.Buffered(1) would shave ~2.7 MB of double-buffer
        #  VMEM on v7x, but headroom is ample at bt<=1024 so it is skipped.)
        return pl.BlockSpec(shape, lambda i: (0, 0))

    out = pl.pallas_call(
        _fused_forward_kernel,
        out_shape=jax.ShapeDtypeStruct((Bp, N_OUT_PAD), jnp.float32),
        grid_spec=pltpu.PrefetchScalarGridSpec(
            num_scalar_prefetch=0,
            grid=(nb,),
            in_specs=[
                batch_spec(K_IN_PAD),
                const_spec(w1.shape), const_spec(b1.shape),
                const_spec(w2.shape), const_spec(b2.shape),
                const_spec(wf1.shape), const_spec(bf1.shape),
                const_spec(wf2.shape), const_spec(bf2.shape),
            ],
            out_specs=batch_spec(N_OUT_PAD),
        ),
        compiler_params=pltpu.CompilerParams(
            dimension_semantics=("parallel",),
            vmem_limit_bytes=32 * 1024 * 1024,
        ),
        cost_estimate=cost,
    )(xf, w1, b1, w2, b2, wf1, bf1, wf2, bf2)

    # NOTE: if the consumer can accept the (Bp, 128) padded buffer, skip this
    # slice to avoid one extra HBM round-trip.
    return out[:B, :N_MOVES]


# -------------------- weight repacking (host, once at init) ------------------

def pack_params(w1, b1, w2, b2, wfc1, bfc1, wfc2, bfc2, *, dtype=jnp.bfloat16):
    """Repack torch-layout weights into the dense GEMM matrices used in-kernel.

    w1: (32,1,3,3) b1: (32,)  w2: (64,32,3,3) b2: (64,)
    wfc1: (128,256) bfc1: (128,)  wfc2: (81,128) bfc2: (81,)
    """
    # conv1 -> dense (128, 36*32): only the 6x6 conv1 positions that feed the
    # pooled region of conv2.  Rows 81..127 are zero (input is 128-lane padded
    # with zeros).  Column = (i1*6 + j1)*32 + oc.
    w1d = np.zeros((K_IN_PAD, 36 * 32), np.float32)
    b1d = np.zeros((1, 36 * 32), np.float32)
    for i1 in range(6):
        for j1 in range(6):
            col = (i1 * 6 + j1) * 32
            b1d[0, col:col + 32] = b1
            for kh in range(3):
                for kw in range(3):
                    w1d[(i1 + kh) * 9 + (j1 + kw), col:col + 32] = w1[:, 0, kh, kw]

    # conv2 -> dense (1152, 1024): only the 16 conv2 positions (4x4) consumed
    # by the 2x2 max-pool.  Column = ddi*256 + p*64 + oc.
    w2d = np.zeros((36 * 32, 16 * 64), np.float32)
    b2d = np.zeros((1, 16 * 64), np.float32)
    for ph in range(2):
        for pw in range(2):
            p = ph * 2 + pw
            for dh in range(2):
                for dw in range(2):
                    ddi = dh * 2 + dw
                    col = ddi * 256 + p * 64
                    b2d[0, col:col + 64] = b2
                    i2, j2 = 2 * ph + dh, 2 * pw + dw
                    for kh in range(3):
                        for kw in range(3):
                            row = ((i2 + kh) * 6 + (j2 + kw)) * 32
                            w2d[row:row + 32, col:col + 64] = w2[:, :, kh, kw].T

    # fc1: rows permuted from torch's CHW flatten (c*4 + p) to our (p*64 + c).
    wf1 = np.zeros((256, 128), np.float32)
    for p in range(4):
        for c in range(64):
            wf1[p * 64 + c, :] = wfc1[:, c * 4 + p]
    bf1 = bfc1.reshape(1, 128).astype(np.float32)

    # fc2: padded 81 -> 128 output lanes; pad bias = -1e30 masks pad logits.
    wf2 = np.zeros((128, N_OUT_PAD), np.float32)
    wf2[:, :N_MOVES] = wfc2.T
    bf2 = np.full((1, N_OUT_PAD), -1e30, np.float32)
    bf2[0, :N_MOVES] = bfc2

    return {
        "w1d": jnp.asarray(w1d, dtype), "b1d": jnp.asarray(b1d, jnp.float32),
        "w2d": jnp.asarray(w2d, dtype), "b2d": jnp.asarray(b2d, jnp.float32),
        "wf1": jnp.asarray(wf1, dtype), "bf1": jnp.asarray(bf1, jnp.float32),
        "wf2": jnp.asarray(wf2, dtype), "bf2": jnp.asarray(bf2, jnp.float32),
    }


# -------------------- pure-JAX reference (for self-check) --------------------

def _reference_forward(x, w1, b1, w2, b2, wfc1, bfc1, wfc2, bfc2):
    def conv(inp, w, b):  # NCHW valid 3x3 conv
        Bn, C, H, W = inp.shape
        out = jnp.zeros((Bn, w.shape[0], H - 2, W - 2), jnp.float32)
        for kh in range(3):
            for kw in range(3):
                patch = inp[:, :, kh:kh + H - 2, kw:kw + W - 2]
                out = out + jnp.einsum("bchw,oc->bohw", patch, w[:, :, kh, kw])
        return out + b[None, :, None, None]

    h = jax.nn.relu(conv(x, w1, b1))
    h = jax.nn.relu(conv(h, w2, b2))                                   # (B,64,5,5)
    pooled = jnp.stack([h[:, :, dh:4 + dh:2, dw:4 + dw:2]
                        for dh in (0, 1) for dw in (0, 1)], 0).max(0)  # (B,64,2,2)
    v = pooled.reshape(x.shape[0], 256)
    hf = jax.nn.relu(v @ wfc1.T + bfc1)
    logits = hf @ wfc2.T + bfc2
    return jax.nn.softmax(logits, axis=-1)


# ----------------------------------- main ------------------------------------

if __name__ == "__main__":
    key = jax.random.PRNGKey(0)
    pkey, xkey = jax.random.split(key)
    ks = jax.random.split(pkey, 8)
    s = 0.05
    w1 = s * jax.random.normal(ks[0], (32, 1, 3, 3), jnp.float32)
    b1 = s * jax.random.normal(ks[1], (32,), jnp.float32)
    w2 = s * jax.random.normal(ks[2], (64, 32, 3, 3), jnp.float32)
    b2 = s * jax.random.normal(ks[3], (64,), jnp.float32)
    wfc1 = s * jax.random.normal(ks[4], (128, 64 * 2 * 2), jnp.float32)
    bfc1 = s * jax.random.normal(ks[5], (128,), jnp.float32)
    wfc2 = s * jax.random.normal(ks[6], (N_MOVES, 128), jnp.float32)
    bfc2 = s * jax.random.normal(ks[7], (N_MOVES,), jnp.float32)

    params = pack_params(np.asarray(w1), np.asarray(b1), np.asarray(w2),
                         np.asarray(b2), np.asarray(wfc1), np.asarray(bfc1),
                         np.asarray(wfc2), np.asarray(bfc2))

    B = 2
    x = jax.random.normal(xkey, (B, 1, IMG_SIZE, IMG_SIZE), jnp.float32)

    out = jax.block_until_ready(mcts_agent_cnn_forward(x, params))
    ref = jax.block_until_ready(
        _reference_forward(x, w1, b1, w2, b2, wfc1, bfc1, wfc2, bfc2))

    assert out.shape == (B, N_MOVES)
    assert bool(jnp.all(jnp.abs(jnp.sum(out, axis=-1) - 1.0) < 1e-4))
    # bf16 MXU operands vs f32 reference: loose absolute tolerance on probs.
    assert bool(jnp.max(jnp.abs(out - ref)) < 3e-3)
    print("KERNEL_OK")
</pallas_src>

<mosaic_0001>
module attributes {stable_mosaic.version = 11 : i64} {
  func.func @_fused_forward_kernel(%arg0: i32, %arg1: memref<8x128xbf16, #tpu.memory_space<vmem>>, %arg2: memref<128x1152xbf16, #tpu.memory_space<vmem>>, %arg3: memref<1x1152xf32, #tpu.memory_space<vmem>>, %arg4: memref<1152x1024xbf16, #tpu.memory_space<vmem>>, %arg5: memref<1x1024xf32, #tpu.memory_space<vmem>>, %arg6: memref<256x128xbf16, #tpu.memory_space<vmem>>, %arg7: memref<1x128xf32, #tpu.memory_space<vmem>>, %arg8: memref<128x128xbf16, #tpu.memory_space<vmem>>, %arg9: memref<1x128xf32, #tpu.memory_space<vmem>>, %arg10: memref<8x128xf32, #tpu.memory_space<vmem>>) attributes {dimension_semantics = [#tpu.dimension_semantics<parallel>], iteration_bounds = array<i64: 1>, scalar_prefetch = 0 : i64, scratch_operands = 0 : i64, tpu.core_type = #tpu.core_type<tc>, window_params = [{transform_indices = @transform_0, window_bounds = array<i64: 8, 128>}, {pipeline_mode = #tpu.pipeline_mode<synchronous>, transform_indices = @transform_1, window_bounds = array<i64: 128, 1152>}, {pipeline_mode = #tpu.pipeline_mode<synchronous>, transform_indices = @transform_2, window_bounds = array<i64: 1, 1152>}, {pipeline_mode = #tpu.pipeline_mode<synchronous>, transform_indices = @transform_3, window_bounds = array<i64: 1152, 1024>}, {pipeline_mode = #tpu.pipeline_mode<synchronous>, transform_indices = @transform_4, window_bounds = array<i64: 1, 1024>}, {pipeline_mode = #tpu.pipeline_mode<synchronous>, transform_indices = @transform_5, window_bounds = array<i64: 256, 128>}, {pipeline_mode = #tpu.pipeline_mode<synchronous>, transform_indices = @transform_6, window_bounds = array<i64: 1, 128>}, {pipeline_mode = #tpu.pipeline_mode<synchronous>, transform_indices = @transform_7, window_bounds = array<i64: 128, 128>}, {pipeline_mode = #tpu.pipeline_mode<synchronous>, transform_indices = @transform_8, window_bounds = array<i64: 1, 128>}, {transform_indices = @transform_9, window_bounds = array<i64: 8, 128>}]} {
    %c0 = arith.constant 0 : index
    %c0_0 = arith.constant 0 : index
    %0 = vector.load %arg1[%c0, %c0_0] : memref<8x128xbf16, #tpu.memory_space<vmem>>, vector<8x128xbf16>
    %c0_1 = arith.constant 0 : index
    %c0_2 = arith.constant 0 : index
    %1 = vector.load %arg2[%c0_1, %c0_2] : memref<128x1152xbf16, #tpu.memory_space<vmem>>, vector<128x1152xbf16>
    %cst = arith.constant dense<0.000000e+00> : vector<8x1152xf32>
    %2 = tpu.matmul %0, %1, %cst {dimension_numbers = #tpu.dot_dimension_numbers<[1], [0], [0], [1], [0, 0, 1, 1], [], []>} : vector<8x128xbf16>, vector<128x1152xbf16>, vector<8x1152xf32> -> vector<8x1152xf32>
    %c0_3 = arith.constant 0 : index
    %c0_4 = arith.constant 0 : index
    %3 = vector.load %arg3[%c0_3, %c0_4] : memref<1x1152xf32, #tpu.memory_space<vmem>>, vector<1x1152xf32>
    %4 = vector.broadcast %3 : vector<1x1152xf32> to vector<8x1152xf32>
    %5 = arith.addf %2, %4 : vector<8x1152xf32>
    %cst_5 = arith.constant 0.000000e+00 : f32
    %6 = vector.broadcast %cst_5 : f32 to vector<8x1152xf32>
    %7 = arith.maximumf %5, %6 : vector<8x1152xf32>
    %8 = arith.truncf %7 : vector<8x1152xf32> to vector<8x1152xbf16>
    %c0_6 = arith.constant 0 : index
    %c0_7 = arith.constant 0 : index
    %9 = vector.load %arg4[%c0_6, %c0_7] : memref<1152x1024xbf16, #tpu.memory_space<vmem>>, vector<1152x1024xbf16>
    %cst_8 = arith.constant dense<0.000000e+00> : vector<8x1024xf32>
    %10 = tpu.matmul %8, %9, %cst_8 {dimension_numbers = #tpu.dot_dimension_numbers<[1], [0], [0], [1], [0, 0, 1, 1], [], []>} : vector<8x1152xbf16>, vector<1152x1024xbf16>, vector<8x1024xf32> -> vector<8x1024xf32>
    %c0_9 = arith.constant 0 : index
    %c0_10 = arith.constant 0 : index
    %11 = vector.load %arg5[%c0_9, %c0_10] : memref<1x1024xf32, #tpu.memory_space<vmem>>, vector<1x1024xf32>
    %12 = vector.broadcast %11 : vector<1x1024xf32> to vector<8x1024xf32>
    %13 = arith.addf %10, %12 : vector<8x1024xf32>
    %cst_11 = arith.constant 0.000000e+00 : f32
    %14 = vector.broadcast %cst_11 : f32 to vector<8x1024xf32>
    %15 = arith.maximumf %13, %14 : vector<8x1024xf32>
    %16 = vector.extract_strided_slice %15 {offsets = [0, 0], sizes = [8, 256], strides = [1, 1]} : vector<8x1024xf32> to vector<8x256xf32>
    %17 = vector.extract_strided_slice %15 {offsets = [0, 256], sizes = [8, 256], strides = [1, 1]} : vector<8x1024xf32> to vector<8x256xf32>
    %18 = arith.maximumf %16, %17 : vector<8x256xf32>
    %19 = vector.extract_strided_slice %15 {offsets = [0, 512], sizes = [8, 256], strides = [1, 1]} : vector<8x1024xf32> to vector<8x256xf32>
    %20 = vector.extract_strided_slice %15 {offsets = [0, 768], sizes = [8, 256], strides = [1, 1]} : vector<8x1024xf32> to vector<8x256xf32>
    %21 = arith.maximumf %19, %20 : vector<8x256xf32>
    %22 = arith.maximumf %18, %21 : vector<8x256xf32>
    %23 = arith.truncf %22 : vector<8x256xf32> to vector<8x256xbf16>
    %c0_12 = arith.constant 0 : index
    %c0_13 = arith.constant 0 : index
    %24 = vector.load %arg6[%c0_12, %c0_13] : memref<256x128xbf16, #tpu.memory_space<vmem>>, vector<256x128xbf16>
    %cst_14 = arith.constant dense<0.000000e+00> : vector<8x128xf32>
    %25 = tpu.matmul %23, %24, %cst_14 {dimension_numbers = #tpu.dot_dimension_numbers<[1], [0], [0], [1], [0, 0, 1, 1], [], []>} : vector<8x256xbf16>, vector<256x128xbf16>, vector<8x128xf32> -> vector<8x128xf32>
    %c0_15 = arith.constant 0 : index
    %c0_16 = arith.constant 0 : index
    %26 = vector.load %arg7[%c0_15, %c0_16] : memref<1x128xf32, #tpu.memory_space<vmem>>, vector<1x128xf32>
    %27 = vector.broadcast %26 : vector<1x128xf32> to vector<8x128xf32>
    %28 = arith.addf %25, %27 : vector<8x128xf32>
    %cst_17 = arith.constant 0.000000e+00 : f32
    %29 = vector.broadcast %cst_17 : f32 to vector<8x128xf32>
    %30 = arith.maximumf %28, %29 : vector<8x128xf32>
    %31 = arith.truncf %30 : vector<8x128xf32> to vector<8x128xbf16>
    %c0_18 = arith.constant 0 : index
    %c0_19 = arith.constant 0 : index
    %32 = vector.load %arg8[%c0_18, %c0_19] : memref<128x128xbf16, #tpu.memory_space<vmem>>, vector<128x128xbf16>
    %cst_20 = arith.constant dense<0.000000e+00> : vector<8x128xf32>
    %33 = tpu.matmul %31, %32, %cst_20 {dimension_numbers = #tpu.dot_dimension_numbers<[1], [0], [0], [1], [0, 0, 1, 1], [], []>} : vector<8x128xbf16>, vector<128x128xbf16>, vector<8x128xf32> -> vector<8x128xf32>
    %c0_21 = arith.constant 0 : index
    %c0_22 = arith.constant 0 : index
    %34 = vector.load %arg9[%c0_21, %c0_22] : memref<1x128xf32, #tpu.memory_space<vmem>>, vector<1x128xf32>
    %35 = vector.broadcast %34 : vector<1x128xf32> to vector<8x128xf32>
    %36 = arith.addf %33, %35 : vector<8x128xf32>
    %cst_23 = arith.constant dense<0xFF800000> : vector<8xf32>
    %37 = vector.multi_reduction <maximumf>, %36, %cst_23 [1] : vector<8x128xf32> to vector<8xf32>
    %38 = vector.shape_cast %37 : vector<8xf32> to vector<8x1xf32>
    %39 = vector.broadcast %38 : vector<8x1xf32> to vector<8x128xf32>
    %40 = arith.subf %36, %39 : vector<8x128xf32>
    %41 = math.exp %40 : vector<8x128xf32>
    %cst_24 = arith.constant dense<0.000000e+00> : vector<8xf32>
    %42 = vector.multi_reduction <add>, %41, %cst_24 [1] : vector<8x128xf32> to vector<8xf32>
    %43 = vector.shape_cast %42 : vector<8xf32> to vector<8x1xf32>
    %44 = tpu.reciprocal %43 : vector<8x1xf32> -> vector<8x1xf32>
    %45 = vector.broadcast %44 : vector<8x1xf32> to vector<8x128xf32>
    %46 = arith.mulf %41, %45 : vector<8x128xf32>
    %c0_25 = arith.constant 0 : index
    %c0_26 = arith.constant 0 : index
    %47 = vector.load %arg10[%c0_25, %c0_26] : memref<8x128xf32, #tpu.memory_space<vmem>>, vector<8x128xf32>
    tpu.vector_store %arg10[%c0_25, %c0_26], %46 {strides = array<i32>} : memref<8x128xf32, #tpu.memory_space<vmem>>, vector<8x128xf32>,
    return
  }
  func.func @transform_0(%arg0: i32) -> (i32, i32) {
    %c0_i32 = arith.constant 0 : i32
    %c0_i32_0 = arith.constant 0 : i32
    return %arg0, %c0_i32 : i32, i32
  }
  func.func @transform_1(%arg0: i32) -> (i32, i32) {
    %c0_i32 = arith.constant 0 : i32
    %c0_i32_0 = arith.constant 0 : i32
    %c0_i32_1 = arith.constant 0 : i32
    return %c0_i32, %c0_i32_0 : i32, i32
  }
  func.func @transform_2(%arg0: i32) -> (i32, i32) {
    %c0_i32 = arith.constant 0 : i32
    %c0_i32_0 = arith.constant 0 : i32
    %c0_i32_1 = arith.constant 0 : i32
    return %c0_i32, %c0_i32_0 : i32, i32
  }
  func.func @transform_3(%arg0: i32) -> (i32, i32) {
    %c0_i32 = arith.constant 0 : i32
    %c0_i32_0 = arith.constant 0 : i32
    %c0_i32_1 = arith.constant 0 : i32
    return %c0_i32, %c0_i32_0 : i32, i32
  }
  func.func @transform_4(%arg0: i32) -> (i32, i32) {
    %c0_i32 = arith.constant 0 : i32
    %c0_i32_0 = arith.constant 0 : i32
    %c0_i32_1 = arith.constant 0 : i32
    return %c0_i32, %c0_i32_0 : i32, i32
  }
  func.func @transform_5(%arg0: i32) -> (i32, i32) {
    %c0_i32 = arith.constant 0 : i32
    %c0_i32_0 = arith.constant 0 : i32
    %c0_i32_1 = arith.constant 0 : i32
    return %c0_i32, %c0_i32_0 : i32, i32
  }
  func.func @transform_6(%arg0: i32) -> (i32, i32) {
    %c0_i32 = arith.constant 0 : i32
    %c0_i32_0 = arith.constant 0 : i32
    %c0_i32_1 = arith.constant 0 : i32
    return %c0_i32, %c0_i32_0 : i32, i32
  }
  func.func @transform_7(%arg0: i32) -> (i32, i32) {
    %c0_i32 = arith.constant 0 : i32
    %c0_i32_0 = arith.constant 0 : i32
    %c0_i32_1 = arith.constant 0 : i32
    return %c0_i32, %c0_i32_0 : i32, i32
  }
  func.func @transform_8(%arg0: i32) -> (i32, i32) {
    %c0_i32 = arith.constant 0 : i32
    %c0_i32_0 = arith.constant 0 : i32
    %c0_i32_1 = arith.constant 0 : i32
    return %c0_i32, %c0_i32_0 : i32, i32
  }
  func.func @transform_9(%arg0: i32) -> (i32, i32) {
    %c0_i32 = arith.constant 0 : i32
    %c0_i32_0 = arith.constant 0 : i32
    return %arg0, %c0_i32 : i32, i32
  }
}

</mosaic_0001>

<bundles_post_ra>
// kernel: mcts_agent_cnn_forward.1
= control target key start
LH: loop header
LB: loop body
LE: loop exit
PB: predicated region body
PF: predicated region fallthrough
CT: control target
= control target key end

     0   :  { %14 = vsyncpa [#allocation3], 0  ;;  %s7030_s0 = inlined_call_operand.vmem [shape: bf16[8,128], index: 0, kind: input, shape index: {}]   ;;  %s7031_s1 = inlined_call_operand.hbm [shape: bf16[128,1152], index: 1, kind: input, shape index: {}]   ;;  %s7032_s2 = inlined_call_operand.hbm [shape: f32[1,1152], index: 2, kind: input, shape index: {}]   ;;  %s7033_s3 = inlined_call_operand.hbm [shape: bf16[1152,1024], index: 3, kind: input, shape index: {}]   ;;  %s7034_s4 = inlined_call_operand.hbm [shape: f32[1,1024], index: 4, kind: input, shape index: {}]   ;;  %s7035_s5 = inlined_call_operand.hbm [shape: bf16[256,128], index: 5, kind: input, shape index: {}]   ;;  %s7036_s6 = inlined_call_operand.hbm [shape: f32[1,128], index: 6, kind: input, shape index: {}]   ;;  %s7037_s7 = inlined_call_operand.hbm [shape: bf16[128,128], index: 7, kind: input, shape index: {}]   ;;  %s7038_s8 = inlined_call_operand.hbm [shape: f32[1,128], index: 8, kind: input, shape index: {}]   ;;  %s7039_s9 = inlined_call_operand.vmem [shape: f32[8,128], index: 9, kind: output, shape index: {}]  }
   0x1   :  { %15 = vsyncpa [#allocation5], 0 }
   0x2   :  { %16 = vsyncpa [#allocation8], 0 }
   0x3   :  { %17 = vsyncpa [#allocation11], 0 }
   0x4   :  { %18 = vsyncpa [#allocation14], 0  ;;  %s6658_s30 = smov [#allocation4]   ;;  %s6659_s11 = smov [#allocation7]  }
   0x5   :  { %s39_s10 = sshll.u32 %s6658_s30, 4  ;;  %s61_s12 = sshll.u32 %s6659_s11, 4  ;;  %s40_s10 = int_to_ptr.vmem [resolvable:$true] %s39_s10  ;;  %s62_s12 = int_to_ptr.vmem [resolvable:$true] %s61_s12 }
   0x6   :  { %s6472_s15 = scalar_lea.hbm %s7032_s2, 144 }
   0x7   :  { %p6473_p0 = scmp.ne.s32.totalorder %s7032_s2, %s6472_s15  ;;  %p6476_p1 = scmp.lt.u32.totalorder %s6472_s15, %s7032_s2 }
   0x9   :  { %p6478_p2 = pnand %p6476_p1, %p6473_p0 }
   0xb   :  { %6481 = shalt.err (!%p6478_p2)
}
   0xc   :  { %s6482_s20 = scalar_lea.vmem %s40_s10, 144  ;;  %s6486_s21 = scalar_lea.vmem %s40_s10, 160 }
   0xd   :  { %p6483_p3 = scmp.ne.s32.totalorder %s40_s10, %s6482_s20  ;;  %p6487_p4 = scmp.lt.s32.totalorder %s40_s10, %s40_s10 }
   0xe   :  { %p6488_p5 = scmp.lt.s32.totalorder %s6486_s21, %s6482_s20 }
  0x10   :  { %p6489_p6 = por %p6488_p5, %p6487_p4 }
  0x12   :  { %p6490_p7 = pnand %p6489_p6, %p6483_p3 }
  0x14   :  { %6493 = shalt.err (!%p6490_p7)
}
  0x15   :  { %42 = dma.hbm_to_vmem [thread:$0]  %s7032_s2, 144, %s40_s10, [#allocation5]  }
  0x16   :  { %s6494_s26 = scalar_lea.hbm %s7034_s4, 128 }
  0x17   :  { %p6495_p8 = scmp.ne.s32.totalorder %s7034_s4, %s6494_s26  ;;  %p6498_p9 = scmp.lt.u32.totalorder %s6494_s26, %s7034_s4 }
  0x19   :  { %p6500_p10 = pnand %p6498_p9, %p6495_p8 }
  0x1b   :  { %6503 = shalt.err (!%p6500_p10)
}
  0x1c   :  { %s6504_s11 = scalar_lea.vmem %s62_s12, 128  ;;  %p6509_p12 = scmp.lt.s32.totalorder %s62_s12, %s62_s12 }
  0x1d   :  { %p6505_p11 = scmp.ne.s32.totalorder %s62_s12, %s6504_s11  ;;  %p6510_p13 = scmp.lt.s32.totalorder %s6504_s11, %s6504_s11 }
  0x1f   :  { %p6511_p0 = por %p6510_p13, %p6509_p12 }
  0x21   :  { %p6512_p1 = pnand %p6511_p0, %p6505_p11 }
  0x23   :  { %6515 = shalt.err (!%p6512_p1)
}
  0x24   :  { %64 = dma.hbm_to_vmem [thread:$0]  %s7034_s4, 128, %s62_s12, [#allocation8]  }
  0x25   :  { %s6660_s13 = smov [#allocation10]   ;;  %s6661_s15 = smov [#allocation2]  }
  0x26   :  { %s83_s14 = sshll.u32 %s6660_s13, 4  ;;  %s26_s16 = sshll.u32 %s6661_s15, 4  ;;  %s84_s14 = int_to_ptr.vmem [resolvable:$true] %s83_s14  ;;  %s6749_s16 = int_to_ptr.vmem [resolvable:$true] %s26_s16 }
  0x27   :  { %s6516_s19 = scalar_lea.hbm %s7036_s6, 16 }
  0x28   :  { %p6517_p2 = scmp.ne.s32.totalorder %s7036_s6, %s6516_s19  ;;  %p6520_p3 = scmp.lt.u32.totalorder %s6516_s19, %s7036_s6 }
  0x2a   :  { %p6522_p4 = pnand %p6520_p3, %p6517_p2 }
  0x2c   :  { %6525 = shalt.err (!%p6522_p4)
}
  0x2d   :  { %s6526_s4 = scalar_lea.vmem %s84_s14, 16  ;;  %s6530_s12 = scalar_lea.vmem %s84_s14, 32 }
  0x2e   :  { %p6527_p5 = scmp.ne.s32.totalorder %s84_s14, %s6526_s4  ;;  %p6531_p6 = scmp.lt.s32.totalorder %s84_s14, %s84_s14 }
  0x2f   :  { %p6532_p7 = scmp.lt.s32.totalorder %s6530_s12, %s6526_s4 }
  0x31   :  { %p6533_p8 = por %p6532_p7, %p6531_p6 }
  0x33   :  { %p6534_p9 = pnand %p6533_p8, %p6527_p5 }
  0x35   :  { %6537 = shalt.err (!%p6534_p9)
}
  0x36   :  { %86 = dma.hbm_to_vmem [thread:$0]  %s7036_s6, 16, %s84_s14, [#allocation11]  }
  0x37   :  { %s6538_s28 = scalar_lea.hbm %s7031_s1, 9216 }
  0x38   :  { %p6539_p10 = scmp.ne.s32.totalorder %s7031_s1, %s6538_s28  ;;  %p6542_p11 = scmp.lt.u32.totalorder %s6538_s28, %s7031_s1 }
  0x3a   :  { %p6544_p12 = pnand %p6542_p11, %p6539_p10 }
  0x3c   :  { %6547 = shalt.err (!%p6544_p12)
}
  0x3d   :  { %s6548_s10 = scalar_lea.vmem %s6749_s16, 9216  ;;  %p6553_p0 = scmp.lt.s32.totalorder %s6749_s16, %s6749_s16 }
  0x3e   :  { %p6549_p13 = scmp.ne.s32.totalorder %s6749_s16, %s6548_s10  ;;  %p6554_p1 = scmp.lt.s32.totalorder %s6548_s10, %s6548_s10 }
  0x40   :  { %p6555_p2 = por %p6554_p1, %p6553_p0 }
  0x42   :  { %p6556_p3 = pnand %p6555_p2, %p6549_p13 }
  0x44   :  { %6559 = shalt.err (!%p6556_p3)
}
  0x45   :  { %s6662_s6 = smov 576   ;;  %s6663_s13 = smov 36  }
  0x46   :  { %32 = dma.hbm_to_vmem [thread:$0]  %s7031_s1, 9216, %s6749_s16, [#allocation3], %s6662_s6, %s6662_s6, %s6663_s13  }
  0x47   :  { %s6664_s17 = smov [#allocation6]   ;;  %s6560_s21 = scalar_lea.hbm %s7033_s3, 73728 }
  0x48   :  { %s48_s18 = sshll.u32 %s6664_s17, 4  ;;  %p6561_p4 = scmp.ne.s32.totalorder %s7033_s3, %s6560_s21  ;;  %s49_s18 = int_to_ptr.vmem [resolvable:$true] %s48_s18 }
  0x49   :  { %p6564_p5 = scmp.lt.u32.totalorder %s6560_s21, %s7033_s3 }
  0x4b   :  { %p6566_p6 = pnand %p6564_p5, %p6561_p4 }
  0x4d   :  { %6569 = shalt.err (!%p6566_p6)
}
  0x4e   :  { %s6570_s24 = scalar_lea.vmem %s49_s18, 73728  ;;  %p6575_p8 = scmp.lt.s32.totalorder %s49_s18, %s49_s18 }
  0x4f   :  { %p6571_p7 = scmp.ne.s32.totalorder %s49_s18, %s6570_s24  ;;  %p6576_p9 = scmp.lt.s32.totalorder %s6570_s24, %s6570_s24 }
  0x51   :  { %p6577_p10 = por %p6576_p9, %p6575_p8 }
  0x53   :  { %p6578_p11 = pnand %p6577_p10, %p6571_p7 }
  0x55   :  { %6581 = shalt.err (!%p6578_p11)
}
  0x56   :  { %s6665_s1 = smov 512   ;;  %s6666_s16 = smov 32  }
  0x57   :  { %54 = dma.hbm_to_vmem [thread:$0]  %s7033_s3, 73728, %s49_s18, [#allocation5], %s6665_s1, %s6665_s1, %s6666_s16  }
  0x58   :  { %s6667_s27 = smov [#allocation9]   ;;  %s6582_s11 = scalar_lea.hbm %s7035_s5, 2048 }
  0x59   :  { %s70_s28 = sshll.u32 %s6667_s27, 4  ;;  %p6583_p12 = scmp.ne.s32.totalorder %s7035_s5, %s6582_s11  ;;  %s71_s28 = int_to_ptr.vmem [resolvable:$true] %s70_s28 }
  0x5a   :  { %p6586_p13 = scmp.lt.u32.totalorder %s6582_s11, %s7035_s5 }
  0x5c   :  { %p6588_p0 = pnand %p6586_p13, %p6583_p12 }
  0x5e   :  { %6591 = shalt.err (!%p6588_p0)
}
  0x5f   :  { %s6592_s14 = scalar_lea.vmem %s71_s28, 2048  ;;  %p6597_p2 = scmp.lt.s32.totalorder %s71_s28, %s71_s28 }
  0x60   :  { %p6593_p1 = scmp.ne.s32.totalorder %s71_s28, %s6592_s14  ;;  %p6598_p3 = scmp.lt.s32.totalorder %s6592_s14, %s6592_s14 }
  0x62   :  { %p6599_p4 = por %p6598_p3, %p6597_p2 }
  0x64   :  { %p6600_p5 = pnand %p6599_p4, %p6593_p1 }
  0x66   :  { %6603 = shalt.err (!%p6600_p5)
}
  0x67   :  { %s6668_s3 = smov 64   ;;  %s6669_s15 = smov 4  }
  0x68   :  { %76 = dma.hbm_to_vmem [thread:$0]  %s7035_s5, 2048, %s71_s28, [#allocation8], %s6668_s3, %s6668_s3, %s6669_s15  }
  0x69   :  { %s6670_s19 = smov [#allocation12]   ;;  %s6671_s21 = smov [#allocation13]  }
  0x6a   :  { %s92_s20 = sshll.u32 %s6670_s19, 4  ;;  %s105_s22 = sshll.u32 %s6671_s21, 4  ;;  %s93_s20 = int_to_ptr.vmem [resolvable:$true] %s92_s20  ;;  %s106_s22 = int_to_ptr.vmem [resolvable:$true] %s105_s22 }
  0x6b   :  { %s6604_s12 = scalar_lea.hbm %s7037_s7, 1024 }
  0x6c   :  { %p6605_p6 = scmp.ne.s32.totalorder %s7037_s7, %s6604_s12  ;;  %p6608_p7 = scmp.lt.u32.totalorder %s6604_s12, %s7037_s7 }
  0x6e   :  { %p6610_p8 = pnand %p6608_p7, %p6605_p6 }
  0x70   :  { %6613 = shalt.err (!%p6610_p8)
}
  0x71   :  { %s6614_s5 = scalar_lea.vmem %s93_s20, 1024  ;;  %p6619_p10 = scmp.lt.s32.totalorder %s93_s20, %s93_s20 }
  0x72   :  { %p6615_p9 = scmp.ne.s32.totalorder %s93_s20, %s6614_s5  ;;  %p6620_p11 = scmp.lt.s32.totalorder %s6614_s5, %s6614_s5 }
  0x74   :  { %p6621_p12 = por %p6620_p11, %p6619_p10 }
  0x76   :  { %p6622_p13 = pnand %p6621_p12, %p6615_p9 }
  0x78   :  { %6625 = shalt.err (!%p6622_p13)
}
  0x79   :  { %98 = dma.hbm_to_vmem [thread:$0]  %s7037_s7, 1024, %s93_s20, [#allocation11], %s6668_s3, %s6668_s3, %s6669_s15  }
  0x7a   :  { %s6626_s30 = scalar_lea.hbm %s7038_s8, 16 }
  0x7b   :  { %p6627_p0 = scmp.ne.s32.totalorder %s7038_s8, %s6626_s30  ;;  %p6630_p1 = scmp.lt.u32.totalorder %s6626_s30, %s7038_s8 }
  0x7d   :  { %p6632_p2 = pnand %p6630_p1, %p6627_p0 }
  0x7f   :  { %6635 = shalt.err (!%p6632_p2)
}
  0x80   :  { %s6636_s13 = scalar_lea.vmem %s106_s22, 16  ;;  %s6640_s14 = scalar_lea.vmem %s106_s22, 32 }
  0x81   :  { %p6637_p3 = scmp.ne.s32.totalorder %s106_s22, %s6636_s13  ;;  %p6641_p4 = scmp.lt.s32.totalorder %s106_s22, %s106_s22 }
  0x82   :  { %p6642_p5 = scmp.lt.s32.totalorder %s6640_s14, %s6636_s13 }
  0x84   :  { %p6643_p6 = por %p6642_p5, %p6641_p4 }
  0x86   :  { %p6644_p7 = pnand %p6643_p6, %p6637_p3 }
  0x88   :  { %6647 = shalt.err (!%p6644_p7)
}
  0x89   :  { %108 = dma.hbm_to_vmem [thread:$0]  %s7038_s8, 16, %s106_s22, [#allocation14]  }
  0x8a   :  { %6648 = dma.done.wait [#allocation3], 9216  }
  0x8b   :  { %6649 = vsyncadd [#allocation3], 4294958080 }
  0x8c   :  { %6650 = dma.done.wait [#allocation5], 73872  }
  0x8d   :  { %6651 = vsyncadd [#allocation5], 4294893424 }
  0x8e   :  { %6652 = dma.done.wait [#allocation8], 2176  }
  0x8f   :  { %6653 = vsyncadd [#allocation8], 4294965120 }
  0x90   :  { %6654 = dma.done.wait [#allocation11], 1040  }
  0x91   :  { %6655 = vsyncadd [#allocation11], 4294966256 }
  0x92   :  { %6656 = dma.done.wait [#allocation14], 16  }
  0x93   :  { %6657 = vsyncadd [#allocation14], 4294967280  ;;  %v6672_v0 = vmov 0   ;;  %v6339_v1 = vld [vmem:[#allocation2 + $0x4] ss:$36 sps:$4 sm:$0xff]   ;;  %vm6674_vm0 = vmmov 0  }
  0x94   :  { %664 = vmatprep.mubr.bf16.mxu0 %v6672_v0  ;;  %705 = vmatprep.mubr.bf16.mxu1 %v6672_v0  ;;  %v6341_v2 = vld [vmem:[#allocation2] ss:$36 sps:$4 sm:$0xff]   ;;  %v6342_v3 = vld [vmem:[#allocation2 + $0x4c] ss:$36 sps:$4 sm:$0xff]   ;;  %v6345_v5 = vld [vmem:[#allocation2 + $0x94] ss:$36 sps:$4 sm:$0xff]  }
  0x95   :  { %632 = vmatprep.subr.bf16.mxu0 %v6339_v1  ;;  %v6344_v4 = vld [vmem:[#allocation2 + $0x48] ss:$36 sps:$4 sm:$0xff]   ;;  %v6347_v6 = vld [vmem:[#allocation2 + $0x90] ss:$36 sps:$4 sm:$0xff]   ;;  %v6348_v7 = vld [vmem:[#allocation2 + $0xdc] ss:$36 sps:$4 sm:$0xff]  }
  0x96   :  { %633 = vmatpush1.bf16.msra.mxu0 %v6341_v2  ;;  %v6350_v8 = vld [vmem:[#allocation2 + $0xd8] ss:$36 sps:$4 sm:$0xff]   ;;  %v6351_v9 = vld [vmem:[#allocation2 + $0x124] ss:$36 sps:$4 sm:$0xff]   ;;  %v6363_v10 = vld [vmem:[#allocation2 + $0xc] ss:$36 sps:$4 sm:$0xff]  }
  0x97   :  { %634 = vmatprep.subr.bf16.mxu0 %v6342_v3  ;;  %v6365_v11 = vld [vmem:[#allocation2 + $0x8] ss:$36 sps:$4 sm:$0xff]   ;;  %673 = vmatprep.subr.bf16.mxu1 %v6363_v10  ;;  %v6366_v12 = vld [vmem:[#allocation2 + $0x54] ss:$36 sps:$4 sm:$0xff]   ;;  %v6353_v13 = vld [vmem:[#allocation2 + $0x120] ss:$36 sps:$4 sm:$0xff]  }
  0x98   :  { %674 = vmatpush1.bf16.msra.mxu1 %v6365_v11  ;;  %v6368_v14 = vld [vmem:[#allocation2 + $0x50] ss:$36 sps:$4 sm:$0xff]   ;;  %v6369_v15 = vld [vmem:[#allocation2 + $0x9c] ss:$36 sps:$4 sm:$0xff]   ;;  %v6356_v17 = vld [vmem:[#allocation2 + $0x168] ss:$36 sps:$4 sm:$0xff]  }
  0x99   :  { %675 = vmatprep.subr.bf16.mxu1 %v6366_v12  ;;  %v6354_v16 = vld [vmem:[#allocation2 + $0x16c] ss:$36 sps:$4 sm:$0xff]   ;;  %v6371_v18 = vld [vmem:[#allocation2 + $0x98] ss:$36 sps:$4 sm:$0xff]   ;;  %v6372_v19 = vld [vmem:[#allocation2 + $0xe4] ss:$36 sps:$4 sm:$0xff]  }
  0x9a   :  { %635 = vmatpush1.bf16.msra.mxu0 %v6344_v4  ;;  %v6357_v20 = vld [vmem:[#allocation2 + $0x1b4] ss:$36 sps:$4 sm:$0xff]   ;;  %v6374_v22 = vld [vmem:[#allocation2 + $0xe0] ss:$36 sps:$4 sm:$0xff]   ;;  %v6375_v23 = vld [vmem:[#allocation2 + $0x12c] ss:$36 sps:$4 sm:$0xff]  }
  0x9b   :  { %636 = vmatprep.subr.bf16.mxu0 %v6345_v5  ;;  %v6359_v21 = vld [vmem:[#allocation2 + $0x1b0] ss:$36 sps:$4 sm:$0xff]   ;;  %v6360_v24 = vld [vmem:[#allocation2 + $0x1fc] ss:$36 sps:$4 sm:$0xff]   ;;  %v6377_v26 = vld [vmem:[#allocation2 + $0x128] ss:$36 sps:$4 sm:$0xff]  }
  0x9c   :  { %676 = vmatpush1.bf16.msra.mxu1 %v6368_v14  ;;  %v6362_v25 = vld [vmem:[#allocation2 + $0x1f8] ss:$36 sps:$4 sm:$0xff]   ;;  %v6833_v29 = vld [vmem:[%s7030_s0] sm:$0xf]  ;;  %v6380_v30 = vld [vmem:[#allocation2 + $0x170] ss:$36 sps:$4 sm:$0xff]  }
  0x9d   :  { %677 = vmatprep.subr.bf16.mxu1 %v6369_v15  ;;  %v6378_v27 = vld [vmem:[#allocation2 + $0x174] ss:$36 sps:$4 sm:$0xff]   ;;  %v6381_v31 = vld [vmem:[#allocation2 + $0x1bc] ss:$36 sps:$4 sm:$0xff]   ;;  %v6384_v35 = vld [vmem:[#allocation2 + $0x204] ss:$36 sps:$4 sm:$0xff]  }
  0x9e   :  { %637 = vmatpush1.bf16.msra.mxu0 %v6347_v6  ;;  %v6389_v28 = vld [vmem:[#allocation2 + $0x14] ss:$36 sps:$4 sm:$0xff]   ;;  %v6392_v33 = vld [vmem:[#allocation2 + $0x5c] ss:$36 sps:$4 sm:$0xff]   ;;  %v6395_v37 = vld [vmem:[#allocation2 + $0xa4] ss:$36 sps:$4 sm:$0xff]  }
  0x9f   :  { %638 = vmatprep.subr.bf16.mxu0 %v6348_v7  ;;  %v6387_v32 = vld [vmem:[#allocation2 + $0x10] ss:$36 sps:$4 sm:$0xff]   ;;  %v6383_v34 = vld [vmem:[#allocation2 + $0x1b8] ss:$36 sps:$4 sm:$0xff]   ;;  %v6386_v38 = vld [vmem:[#allocation2 + $0x200] ss:$36 sps:$4 sm:$0xff]  }
  0xa0   :  { %678 = vmatpush1.bf16.msra.mxu1 %v6371_v18  ;;  %v6390_v36 = vld [vmem:[#allocation2 + $0x58] ss:$36 sps:$4 sm:$0xff]   ;;  %v6393_v39 = vld [vmem:[#allocation2 + $0xa0] ss:$36 sps:$4 sm:$0xff]   ;;  %v6398_v41 = vld [vmem:[#allocation2 + $0xec] ss:$36 sps:$4 sm:$0xff]  }
  0xa1   :  { %679 = vmatprep.subr.bf16.mxu1 %v6372_v19  ;;  %v6413_v40 = vld [vmem:[#allocation2 + $0x1c] ss:$36 sps:$4 sm:$0xff]   ;;  %v6396_v42 = vld [vmem:[#allocation2 + $0xe8] ss:$36 sps:$4 sm:$0xff]   ;;  %v6401_v45 = vld [vmem:[#allocation2 + $0x134] ss:$36 sps:$4 sm:$0xff]  }
  0xa2   :  { %639 = vmatpush1.bf16.msra.mxu0 %v6350_v8  ;;  %v6411_v43 = vld [vmem:[#allocation2 + $0x18] ss:$36 sps:$4 sm:$0xff]   ;;  %v6417_v44 = vld [vmem:[#allocation2 + $0x64] ss:$36 sps:$4 sm:$0xff]   ;;  %v6399_v47 = vld [vmem:[#allocation2 + $0x130] ss:$36 sps:$4 sm:$0xff]  }
  0xa3   :  { %640 = vmatprep.subr.bf16.mxu0 %v6351_v9  ;;  %v6415_v46 = vld [vmem:[#allocation2 + $0x60] ss:$36 sps:$4 sm:$0xff]   ;;  %v6421_v48 = vld [vmem:[#allocation2 + $0xac] ss:$36 sps:$4 sm:$0xff]   ;;  %v6402_v51 = vld [vmem:[#allocation2 + $0x178] ss:$36 sps:$4 sm:$0xff]  }
  0xa4   :  { %680 = vmatpush1.bf16.msra.mxu1 %v6374_v22  ;;  %v6404_v49 = vld [vmem:[#allocation2 + $0x17c] ss:$36 sps:$4 sm:$0xff]   ;;  %v6419_v50 = vld [vmem:[#allocation2 + $0xa8] ss:$36 sps:$4 sm:$0xff]   ;;  %v6425_v52 = vld [vmem:[#allocation2 + $0xf4] ss:$36 sps:$4 sm:$0xff]  }
  0xa5   :  { %681 = vmatprep.subr.bf16.mxu1 %v6375_v23  ;;  %v6407_v53 = vld [vmem:[#allocation2 + $0x1c4] ss:$36 sps:$4 sm:$0xff]   ;;  %v6423_v54 = vld [vmem:[#allocation2 + $0xf0] ss:$36 sps:$4 sm:$0xff]   ;;  %v6429_v56 = vld [vmem:[#allocation2 + $0x13c] ss:$36 sps:$4 sm:$0xff]  }
  0xa6   :  { %641 = vmatpush1.bf16.msra.mxu0 %v6353_v13  ;;  %v6405_v55 = vld [vmem:[#allocation2 + $0x1c0] ss:$36 sps:$4 sm:$0xff]   ;;  %v6410_v57 = vld [vmem:[#allocation2 + $0x20c] ss:$36 sps:$4 sm:$0xff]   ;;  %v6427_v58 = vld [vmem:[#allocation2 + $0x138] ss:$36 sps:$4 sm:$0xff]  }
  0xa7   :  { %642 = vmatprep.subr.bf16.mxu0 %v6354_v16  ;;  %v6408_v59 = vld [vmem:[#allocation2 + $0x208] ss:$36 sps:$4 sm:$0xff]   ;;  %v6431_v61 = vld [vmem:[#allocation2 + $0x180] ss:$36 sps:$4 sm:$0xff]   ;;  %v6673_v1 = vmov 0.0  }
  0xa8   :  { %682 = vmatpush1.bf16.msra.mxu1 %v6377_v26  ;;  %v6433_v60 = vld [vmem:[#allocation2 + $0x184] ss:$36 sps:$4 sm:$0xff]   ;;  %v6437_v63 = vld [vmem:[#allocation2 + $0x1cc] ss:$36 sps:$4 sm:$0xff]   ;;  %v6441_v4 = vld [vmem:[#allocation2 + $0x214] ss:$36 sps:$4 sm:$0xff]  }
  0xa9   :  { %683 = vmatprep.subr.bf16.mxu1 %v6378_v27  ;;  %v6414_v62 = vld [vmem:[#allocation2 + $0x20] ss:$36 sps:$4 sm:$0xff]   ;;  %v6435_v2 = vld [vmem:[#allocation2 + $0x1c8] ss:$36 sps:$4 sm:$0xff]   ;;  %v6422_v7 = vld [vmem:[#allocation2 + $0xb0] ss:$36 sps:$4 sm:$0xff]  }
  0xaa   :  { %643 = vmatpush1.bf16.msra.mxu0 %v6356_v17  ;;  %v6418_v3 = vld [vmem:[#allocation2 + $0x68] ss:$36 sps:$4 sm:$0xff]   ;;  %v6439_v8 = vld [vmem:[#allocation2 + $0x210] ss:$36 sps:$4 sm:$0xff]   ;;  %v6426_v12 = vld [vmem:[#allocation2 + $0xf8] ss:$36 sps:$4 sm:$0xff]  }
  0xab   :  { %644 = vmatprep.subr.bf16.mxu0 %v6357_v20  ;;  %v854_v5 = vld [vmem:[#allocation6] sm:$0xff]  ;;  %v6430_v17 = vld [vmem:[#allocation2 + $0x140] ss:$36 sps:$4 sm:$0xff]  }
  0xac   :  { %684 = vmatpush1.bf16.msra.mxu1 %v6380_v30  ;;  %v858_v6 = vld [vmem:[#allocation6 + $0x20] sm:$0xff] }
  0xad   :  { %685 = vmatprep.subr.bf16.mxu1 %v6381_v31  ;;  %v862_v9 = vld [vmem:[#allocation6 + $0x40] sm:$0xff]  ;;  %v5569_v11 = vcombine.high %v854_v5, %v858_v6  ;;  %v5568_v13 = vcombine.low %v854_v5, %v858_v6 }
  0xae   :  { %645 = vmatpush1.bf16.msra.mxu0 %v6359_v21  ;;  %v866_v10 = vld [vmem:[#allocation6 + $0x60] sm:$0xff] }
  0xaf   :  { %646 = vmatprep.subr.bf16.mxu0 %v6360_v24  ;;  %v870_v14 = vld [vmem:[#allocation6 + $0x80] sm:$0xff]  ;;  %v5577_v16 = vcombine.high %v862_v9, %v866_v10  ;;  %v5576_v18 = vcombine.low %v862_v9, %v866_v10  ;;  %v895_v10 = vld [vmem:[#allocation6 + $0x148] sm:$0xff] }
  0xb0   :  { %686 = vmatpush1.bf16.msra.mxu1 %v6383_v34  ;;  %v874_v15 = vld [vmem:[#allocation6 + $0xa0] sm:$0xff]  ;;  %v859_v34 = vld [vmem:[#allocation6 + $0x28] sm:$0xff] }
  0xb1   :  { %687 = vmatprep.subr.bf16.mxu1 %v6384_v35  ;;  %v878_v19 = vld [vmem:[#allocation6 + $0xc0] sm:$0xff]  ;;  %v5585_v21 = vcombine.high %v870_v14, %v874_v15  ;;  %v5584_v23 = vcombine.low %v870_v14, %v874_v15 }
  0xb2   :  { %647 = vmatpush1.bf16.msra.mxu0 %v6362_v25  ;;  %v882_v20 = vld [vmem:[#allocation6 + $0xe0] sm:$0xff] }
  0xb3   :  { %714 = vmatprep.subr.bf16.mxu0 %v6389_v28  ;;  %v6434_v22 = vld [vmem:[#allocation2 + $0x188] ss:$36 sps:$4 sm:$0xff]   ;;  %v5593_v26 = vcombine.high %v878_v19, %v882_v20  ;;  %v5592_v27 = vcombine.low %v878_v19, %v882_v20  ;;  %v6438_v28 = vld [vmem:[#allocation2 + $0x1d0] ss:$36 sps:$4 sm:$0xff]  }
  0xb4   :  { %688 = vmatpush1.bf16.msra.mxu1 %v6386_v38  ;;  %v886_v24 = vld [vmem:[#allocation6 + $0x100] sm:$0xff]  ;;  %v907_v19 = vld [vmem:[#allocation6 + $0x1a8] sm:$0xff] }
  0xb5   :  { %665 = vmatmul.mubr.bf16.vlgmr.msra.gmra.mrb[0].mxu0 %v6833_v29  ;;  %755 = vmatprep.subr.bf16.mxu1 %v6413_v40  ;;  %v890_v25 = vld [vmem:[#allocation6 + $0x120] sm:$0xff] }
  0xb6   :  { %715 = vmatpush1.bf16.msra.mxu0 %v6387_v32  ;;  %746 = vmatprep.mubr.bf16.mxu0 %v6672_v0  ;;  %v5601_v30 = vcombine.high %v886_v24, %v890_v25  ;;  %v894_v31 = vld [vmem:[#allocation6 + $0x140] sm:$0xff]  ;;  %v5600_v35 = vcombine.low %v886_v24, %v890_v25 }
  0xb7   :  { %716 = vmatprep.subr.bf16.mxu0 %v6392_v33  ;;  %706 = vmatmul.mubr.bf16.vlgmr.msra.gmra.mrb[0].mxu1 %v6833_v29  ;;  %v898_v32 = vld [vmem:[#allocation6 + $0x160] sm:$0xff]  ;;  %v855_v33 = vld [vmem:[#allocation6 + $0x8] sm:$0xff] }
  0xb8   :  { %756 = vmatpush1.bf16.msra.mxu1 %v6411_v43  ;;  %787 = vmatprep.mubr.bf16.mxu1 %v6672_v0  ;;  %v5571_v38 = vcombine.high %v855_v33, %v859_v34  ;;  %v906_v40 = vld [vmem:[#allocation6 + $0x1a0] sm:$0xff]  ;;  %v5608_v43 = vcombine.low %v894_v31, %v898_v32 }
  0xb9   :  { %757 = vmatprep.subr.bf16.mxu1 %v6417_v44  ;;  %v5570_v44 = vcombine.low %v855_v33, %v859_v34  ;;  %v938_v9 = vld [vmem:[#allocation6 + $0x2a0] sm:$0xff] }
  0xba   :  { %717 = vmatpush1.bf16.msra.mxu0 %v6390_v36  ;;  %v6442_v36 = vld [vmem:[#allocation2 + $0x218] ss:$36 sps:$4 sm:$0xff]   ;;  %v950_v24 = vld [vmem:[#allocation6 + $0x300] sm:$0xff] }
  0xbb   :  { %718 = vmatprep.subr.bf16.mxu0 %v6395_v37  ;;  %v5609_v37 = vcombine.high %v894_v31, %v898_v32  ;;  %v954_v25 = vld [vmem:[#allocation6 + $0x320] sm:$0xff] }
  0xbc   :  { %758 = vmatpush1.bf16.msra.mxu1 %v6415_v46  ;;  %v5665_v31 = vcombine.high %v950_v24, %v954_v25  ;;  %v958_v33 = vld [vmem:[#allocation6 + $0x340] sm:$0xff] }
  0xbd   :  { %759 = vmatprep.subr.bf16.mxu1 %v6421_v48  ;;  %v914_v48 = vld [vmem:[#allocation6 + $0x1e0] sm:$0xff] }
  0xbe   :  { %719 = vmatpush1.bf16.msra.mxu0 %v6393_v39  ;;  %v902_v39 = vld [vmem:[#allocation6 + $0x180] sm:$0xff] }
  0xbf   :  { %720 = vmatprep.subr.bf16.mxu0 %v6398_v41  ;;  %v863_v41 = vld [vmem:[#allocation6 + $0x48] sm:$0xff]  ;;  %v962_v34 = vld [vmem:[#allocation6 + $0x360] sm:$0xff] }
  0xc0   :  { %760 = vmatpush1.bf16.msra.mxu1 %v6419_v50  ;;  %v875_v50 = vld [vmem:[#allocation6 + $0xa8] sm:$0xff] }
  0xc1   :  { %761 = vmatprep.subr.bf16.mxu1 %v6425_v52 }
  0xc2   :  { %721 = vmatpush1.bf16.msra.mxu0 %v6396_v42  ;;  %v867_v42 = vld [vmem:[#allocation6 + $0x68] sm:$0xff] }
  0xc3   :  { %722 = vmatprep.subr.bf16.mxu0 %v6401_v45  ;;  %v5617_v45 = vcombine.high %v902_v39, %v906_v40  ;;  %v5579_v46 = vcombine.high %v863_v41, %v867_v42  ;;  %v5578_v52 = vcombine.low %v863_v41, %v867_v42  ;;  %v5673_v42 = vcombine.high %v958_v33, %v962_v34 }
  0xc4   :  { %762 = vmatpush1.bf16.msra.mxu1 %v6423_v54 }
  0xc5   :  { %763 = vmatprep.subr.bf16.mxu1 %v6429_v56  ;;  %v922_v56 = vld [vmem:[#allocation6 + $0x220] sm:$0xff] }
  0xc6   :  { %723 = vmatpush1.bf16.msra.mxu0 %v6399_v47  ;;  %v910_v47 = vld [vmem:[#allocation6 + $0x1c0] sm:$0xff] }
  0xc7   :  { %724 = vmatprep.subr.bf16.mxu0 %v6404_v49  ;;  %v871_v49 = vld [vmem:[#allocation6 + $0x88] sm:$0xff] }
  0xc8   :  { %764 = vmatpush1.bf16.msra.mxu1 %v6427_v58  ;;  %v5587_v54 = vcombine.high %v871_v49, %v875_v50  ;;  %v883_v58 = vld [vmem:[#allocation6 + $0xe8] sm:$0xff] }
  0xc9   :  { %765 = vmatprep.subr.bf16.mxu1 %v6433_v60  ;;  %v5586_v60 = vcombine.low %v871_v49, %v875_v50  ;;  %v927_v49 = vld [vmem:[#allocation6 + $0x248] sm:$0xff] }
  0xca   :  { %725 = vmatpush1.bf16.msra.mxu0 %v6402_v51  ;;  %v5616_v51 = vcombine.low %v902_v39, %v906_v40  ;;  %v6854_v39 = vld [vmem:[#allocation6 + $0x420] sm:$0xff]  ;;  %v6856_v40 = vld [vmem:[#allocation6 + $0x408] sm:$0xff] }
  0xcb   :  { %726 = vmatprep.subr.bf16.mxu0 %v6407_v53  ;;  %v5625_v53 = vcombine.high %v910_v47, %v914_v48  ;;  %v931_v50 = vld [vmem:[#allocation6 + $0x268] sm:$0xff] }
  0xcc   :  { %766 = vmatpush1.bf16.msra.mxu1 %v6431_v61 }
  0xcd   :  { %767 = vmatprep.subr.bf16.mxu1 %v6437_v63  ;;  %v930_v63 = vld [vmem:[#allocation6 + $0x260] sm:$0xff] }
  0xce   :  { %727 = vmatpush1.bf16.msra.mxu0 %v6405_v55  ;;  %v918_v55 = vld [vmem:[#allocation6 + $0x200] sm:$0xff] }
  0xcf   :  { %728 = vmatprep.subr.bf16.mxu0 %v6410_v57  ;;  %v879_v57 = vld [vmem:[#allocation6 + $0xc8] sm:$0xff]  ;;  %v5633_v61 = vcombine.high %v918_v55, %v922_v56 }
  0xd0   :  { %768 = vmatpush1.bf16.msra.mxu1 %v6435_v2  ;;  %v887_v2 = vld [vmem:[#allocation6 + $0x108] sm:$0xff]  ;;  %v5594_v5 = vcombine.low %v879_v57, %v883_v58 }
  0xd1   :  { %769 = vmatprep.subr.bf16.mxu1 %v6441_v4  ;;  %v5632_v4 = vcombine.low %v918_v55, %v922_v56  ;;  %v974_v55 = vld [vmem:[#allocation6 + $0x3c0] sm:$0xff] }
  0xd2   :  { %729 = vmatpush1.bf16.msra.mxu0 %v6408_v59  ;;  %v5624_v59 = vcombine.low %v910_v47, %v914_v48  ;;  %v978_v56 = vld [vmem:[#allocation6 + $0x3e0] sm:$0xff] }
  0xd3   :  { %6210 = vmatprep.subr.bf16.mxu0 %v6673_v1 }
  0xd4   :  { %770 = vmatpush1.bf16.msra.mxu1 %v6439_v8  ;;  %v934_v8 = vld [vmem:[#allocation6 + $0x280] sm:$0xff] }
  0xd5   :  { %747 = vmatmul.mubr.bf16.vlgmr.msra.gmra.mrb[4].mxu0 %v6833_v29  ;;  %4352 = vmatprep.subr.bf16.mxu1 %v5569_v11  ;;  %v899_v11 = vld [vmem:[#allocation6 + $0x168] sm:$0xff]  ;;  %v5649_v14 = vcombine.high %v934_v8, %v938_v9  ;;  %v5648_v20 = vcombine.low %v934_v8, %v938_v9 }
  0xd6   :  { %6211 = vmatpush3.bf16.msra.mxu0 %v6414_v62  ;;  %6226 = vmatprep.mubr.msk.bf16.mxu0 %vm6674_vm0, %v6673_v1  ;;  %v926_v62 = vld [vmem:[#allocation6 + $0x240] sm:$0xff]  ;;  %v5611_v15 = vcombine.high %v895_v10, %v899_v11 }
  0xd7   :  { %6212 = vmatprep.subr.bf16.mxu0 %v6673_v1  ;;  %788 = vmatmul.mubr.bf16.vlgmr.msra.gmra.mrb[4].mxu1 %v6833_v29  ;;  %v5641_v6 = vcombine.high %v926_v62, %v930_v63 }
  0xd8   :  { %4353 = vmatpush1.bf16.msra.mxu1 %v5568_v13 }
  0xd9   :  { %4354 = vmatprep.subr.bf16.mxu1 %v5577_v16  ;;  %v942_v16 = vld [vmem:[#allocation6 + $0x2c0] sm:$0xff] }
  0xda   :  { %6213 = vmatpush3.bf16.msra.mxu0 %v6418_v3  ;;  %v891_v3 = vld [vmem:[#allocation6 + $0x128] sm:$0xff] }
  0xdb   :  { %6214 = vmatprep.subr.bf16.mxu0 %v6673_v1  ;;  %v5602_v13 = vcombine.low %v887_v2, %v891_v3 }
  0xdc   :  { %4355 = vmatpush1.bf16.msra.mxu1 %v5576_v18  ;;  %v903_v18 = vld [vmem:[#allocation6 + $0x188] sm:$0xff] }
  0xdd   :  { %4356 = vmatprep.subr.bf16.mxu1 %v5585_v21  ;;  %v5610_v21 = vcombine.low %v895_v10, %v899_v11  ;;  %v959_v10 = vld [vmem:[#allocation6 + $0x348] sm:$0xff] }
  0xde   :  { %6215 = vmatpush3.bf16.msra.mxu0 %v6422_v7  ;;  %v5603_v7 = vcombine.high %v887_v2, %v891_v3  ;;  %v5688_v2 = vcombine.low %v974_v55, %v978_v56  ;;  %v963_v11 = vld [vmem:[#allocation6 + $0x368] sm:$0xff] }
  0xdf   :  { %6216 = vmatprep.subr.bf16.mxu0 %v6673_v1 }
  0xe0   :  { %4357 = vmatpush1.bf16.msra.mxu1 %v5584_v23  ;;  %v5619_v23 = vcombine.high %v903_v18, %v907_v19 }
  0xe1   :  { %4358 = vmatprep.subr.bf16.mxu1 %v5593_v26  ;;  %v911_v26 = vld [vmem:[#allocation6 + $0x1c8] sm:$0xff] }
  0xe2   :  { %6217 = vmatpush3.bf16.msra.mxu0 %v6426_v12  ;;  %v5640_v12 = vcombine.low %v926_v62, %v930_v63  ;;  %v943_v62 = vld [vmem:[#allocation6 + $0x2c8] sm:$0xff] }
  0xe3   :  { %6218 = vmatprep.subr.bf16.mxu0 %v6673_v1  ;;  %v947_v63 = vld [vmem:[#allocation6 + $0x2e8] sm:$0xff] }
  0xe4   :  { %4359 = vmatpush1.bf16.msra.mxu1 %v5592_v27  ;;  %v915_v27 = vld [vmem:[#allocation6 + $0x1e8] sm:$0xff]  ;;  %v5658_v8 = vcombine.low %v943_v62, %v947_v63 }
  0xe5   :  { %4360 = vmatprep.subr.bf16.mxu1 %v5601_v30  ;;  %v5618_v30 = vcombine.low %v903_v18, %v907_v19  ;;  %v5627_v32 = vcombine.high %v911_v26, %v915_v27  ;;  %v5626_v41 = vcombine.low %v911_v26, %v915_v27  ;;  %v975_v18 = vld [vmem:[#allocation6 + $0x3c8] sm:$0xff]  ;;  %v6871_v27 = vld [vmem:[#allocation4] sm:$0xff] }
  0xe6   :  { %6219 = vmatpush3.bf16.msra.mxu0 %v6430_v17  ;;  %v946_v17 = vld [vmem:[#allocation6 + $0x2e0] sm:$0xff]  ;;  %v979_v19 = vld [vmem:[#allocation6 + $0x3e8] sm:$0xff] }
  0xe7   :  { %6220 = vmatprep.subr.bf16.mxu0 %v6673_v1 }
  0xe8   :  { %4361 = vmatpush1.bf16.msra.mxu1 %v5600_v35  ;;  %v919_v35 = vld [vmem:[#allocation6 + $0x208] sm:$0xff] }
  0xe9   :  { %4362 = vmatprep.subr.bf16.mxu1 %v5609_v37  ;;  %v5664_v37 = vcombine.low %v950_v24, %v954_v25  ;;  %v219_v24 = vlaneseq }
  0xea   :  { %6221 = vmatpush3.bf16.msra.mxu0 %v6434_v22  ;;  %v5657_v22 = vcombine.high %v942_v16, %v946_v17 }
  0xeb   :  { %6222 = vmatprep.subr.bf16.mxu0 %v6673_v1  ;;  %v6868_v25 = vshrl.u32 %v219_v24, 7 }
  0xec   :  { %4363 = vmatpush1.bf16.msra.mxu1 %v5608_v43  ;;  %v6858_v43 = vld [vmem:[#allocation6 + $0x428] sm:$0xff] }
  0xed   :  { %4364 = vmatprep.subr.bf16.mxu1 %v5617_v45  ;;  %v966_v45 = vld [vmem:[#allocation6 + $0x380] sm:$0xff]  ;;  %v5698_v48 = vcombine.low %v6856_v40, %v6858_v43  ;;  %v221_v26 = vsub.s32 0, %v6868_v25 }
  0xee   :  { %6223 = vmatpush3.bf16.msra.mxu0 %v6438_v28  ;;  %v5656_v28 = vcombine.low %v942_v16, %v946_v17  ;;  %v5674_v16 = vcombine.low %v959_v10, %v963_v11 }
  0xef   :  { %6224 = vmatprep.subr.bf16.mxu0 %v6673_v1 }
  0xf0   :  { %4365 = vmatpush1.bf16.msra.mxu1 %v5616_v51  ;;  %v5672_v51 = vcombine.low %v958_v33, %v962_v34 }
  0xf1   :  { %4366 = vmatprep.subr.bf16.mxu1 %v5625_v53 }
  0xf2   :  { %6225 = vmatpush3.bf16.msra.mxu0 %v6442_v36  ;;  %v923_v36 = vld [vmem:[#allocation6 + $0x228] sm:$0xff] }
  0xf3   :  { %4557 = vmatprep.subr.bf16.mxu0 %v5571_v38  ;;  %v6852_v38 = vld [vmem:[#allocation6 + $0x400] sm:$0xff] }
  0xf4   :  { %4367 = vmatpush1.bf16.msra.mxu1 %v5624_v59  ;;  %v5696_v47 = vcombine.low %v6852_v38, %v6854_v39 }
  0xf5   :  { %6227 = vmatmul.mubr.bf16.vlgmr.msra.gmra.mrb[8].mxu0 %v6833_v29  ;;  %v5595_v29 = vcombine.high %v879_v57, %v883_v58  ;;  %4368 = vmatprep.subr.bf16.mxu1 %v5633_v61  ;;  %v935_v57 = vld [vmem:[#allocation6 + $0x288] sm:$0xff]  ;;  %v5689_v61 = vcombine.high %v974_v55, %v978_v56  ;;  %v998_v55 = vld [vmem:[#allocation6 + $0x480] sm:$0xff] }
  0xf6   :  { %4558 = vmatpush1.bf16.msra.mxu0 %v5570_v44  ;;  %v5635_v44 = vcombine.high %v919_v35, %v923_v36  ;;  %v939_v58 = vld [vmem:[#allocation6 + $0x2a8] sm:$0xff]  ;;  %v1002_v56 = vld [vmem:[#allocation6 + $0x4a0] sm:$0xff] }
  0xf7   :  { %4559 = vmatprep.subr.bf16.mxu0 %v5579_v46  ;;  %v970_v46 = vld [vmem:[#allocation6 + $0x3a0] sm:$0xff]  ;;  %v5650_v3 = vcombine.low %v935_v57, %v939_v58 }
  0xf8   :  { %4369 = vmatpush1.bf16.msra.mxu1 %v5632_v4  ;;  %v5681_v53 = vcombine.high %v966_v45, %v970_v46  ;;  %v5680_v59 = vcombine.low %v966_v45, %v970_v46  ;;  %v5697_v4 = vcombine.high %v6852_v38, %v6854_v39  ;;  %v994_v45 = vld [vmem:[#allocation6 + $0x460] sm:$0xff]  ;;  %v991_v46 = vld [vmem:[#allocation6 + $0x448] sm:$0xff]  ;;  %v5712_v39 = vcombine.low %v998_v55, %v1002_v56 }
  0xf9   :  { %4370 = vmatprep.subr.bf16.mxu1 %v5641_v6  ;;  %v951_v6 = vld [vmem:[#allocation6 + $0x308] sm:$0xff] }
  0xfa   :  { %4560 = vmatpush1.bf16.msra.mxu0 %v5578_v52  ;;  %v5634_v52 = vcombine.low %v919_v35, %v923_v36 }
  0xfb   :  { %4561 = vmatprep.subr.bf16.mxu0 %v5587_v54  ;;  %v5643_v54 = vcombine.high %v927_v49, %v931_v50 }
  0xfc   :  { %4371 = vmatpush1.bf16.msra.mxu1 %v5640_v12 }
  0xfd   :  { %4372 = vmatprep.subr.bf16.mxu1 %v5649_v14  ;;  %v967_v14 = vld [vmem:[#allocation6 + $0x388] sm:$0xff] }
  0xfe   :  { %4562 = vmatpush1.bf16.msra.mxu0 %v5586_v60  ;;  %v5642_v60 = vcombine.low %v927_v49, %v931_v50  ;;  %v995_v49 = vld [vmem:[#allocation6 + $0x468] sm:$0xff]  ;;  %v233_v50 = vsub.s32 3, %v6868_v25 }
  0xff   :  { %4563 = vmatprep.subr.bf16.mxu0 %v5595_v29  ;;  %v5651_v29 = vcombine.high %v935_v57, %v939_v58  ;;  %v999_v57 = vld [vmem:[#allocation6 + $0x488] sm:$0xff] }
 0x100   :  { %4373 = vmatpush1.bf16.msra.mxu1 %v5648_v20  ;;  %v1003_v58 = vld [vmem:[#allocation6 + $0x4a8] sm:$0xff] }
 0x101   :  { %4374 = vmatprep.subr.bf16.mxu1 %v5657_v22  ;;  %v5690_v22 = vcombine.low %v975_v18, %v979_v19 }
 0x102   :  { %4564 = vmatpush1.bf16.msra.mxu0 %v5594_v5  ;;  %v5659_v5 = vcombine.high %v943_v62, %v947_v63  ;;  %v5715_v62 = vcombine.high %v999_v57, %v1003_v58  ;;  %v1006_v63 = vld [vmem:[#allocation6 + $0x4c0] sm:$0xff] }
 0x103   :  { %4565 = vmatprep.subr.bf16.mxu0 %v5603_v7  ;;  %v955_v7 = vld [vmem:[#allocation6 + $0x328] sm:$0xff] }
 0x104   :  { %4375 = vmatpush1.bf16.msra.mxu1 %v5656_v28  ;;  %v5667_v9 = vcombine.high %v951_v6, %v955_v7  ;;  %v5666_v12 = vcombine.low %v951_v6, %v955_v7  ;;  %v225_v28 = vsub.s32 1, %v6868_v25 }
 0x105   :  { %4376 = vmatprep.subr.bf16.mxu1 %v5665_v31 }
 0x106   :  { %4566 = vmatpush1.bf16.msra.mxu0 %v5602_v13  ;;  %v5675_v13 = vcombine.high %v959_v10, %v963_v11  ;;  %v226_v31 = vrot.slane %v6871_v27, %v225_v28  ;;  %v1018_v10 = vld [vmem:[#allocation6 + $0x520] sm:$0xff]  ;;  %v1015_v11 = vld [vmem:[#allocation6 + $0x508] sm:$0xff] }
 0x107   :  { %4567 = vmatprep.subr.bf16.mxu0 %v5611_v15  ;;  %v971_v15 = vld [vmem:[#allocation6 + $0x3a8] sm:$0xff] }
 0x108   :  { %4377 = vmatpush1.bf16.msra.mxu1 %v5664_v37  ;;  %v5683_v17 = vcombine.high %v967_v14, %v971_v15  ;;  %v5682_v20 = vcombine.low %v967_v14, %v971_v15 }
 0x109   :  { %4378 = vmatprep.subr.bf16.mxu1 %v5673_v42  ;;  %v990_v42 = vld [vmem:[#allocation6 + $0x440] sm:$0xff] }
 0x10a   :  { %4568 = vmatpush1.bf16.msra.mxu0 %v5610_v21  ;;  %v5691_v21 = vcombine.high %v975_v18, %v979_v19  ;;  %v1022_v18 = vld [vmem:[#allocation6 + $0x540] sm:$0xff] }
 0x10b   :  { %4569 = vmatprep.subr.bf16.mxu0 %v5619_v23  ;;  %v5699_v23 = vcombine.high %v6856_v40, %v6858_v43  ;;  %v5714_v40 = vcombine.low %v999_v57, %v1003_v58  ;;  %v1026_v19 = vld [vmem:[#allocation6 + $0x560] sm:$0xff]  ;;  %v1047_v58 = vld [vmem:[#allocation6 + $0x608] sm:$0xff] }
 0x10c   :  { %4379 = vmatpush1.bf16.msra.mxu1 %v5672_v51  ;;  %v5737_v24 = vcombine.high %v1022_v18, %v1026_v19  ;;  %v1050_v57 = vld [vmem:[#allocation6 + $0x620] sm:$0xff] }
 0x10d   :  { %4380 = vmatprep.subr.bf16.mxu1 %v5681_v53  ;;  %v5705_v53 = vcombine.high %v990_v42, %v994_v45 }
 0x10e   :  { %4570 = vmatpush1.bf16.msra.mxu0 %v5618_v30  ;;  %v222_v30 = vrot.slane %v6871_v27, %v221_v26 }
 0x10f   :  { %4571 = vmatprep.subr.bf16.mxu0 %v5627_v32 }
 0x110   :  { %4381 = vmatpush1.bf16.msra.mxu1 %v5680_v59  ;;  %v234_v59 = vrot.slane %v6871_v27, %v233_v50 }
 0x111   :  { %4382 = vmatprep.subr.bf16.mxu1 %v5689_v61  ;;  %v5706_v61 = vcombine.low %v991_v46, %v995_v49 }
 0x112   :  { %4572 = vmatpush1.bf16.msra.mxu0 %v5626_v41 }
 0x113   :  { %4573 = vmatprep.subr.bf16.mxu0 %v5635_v44 }
 0x114   :  { %4383 = vmatpush1.bf16.msra.mxu1 %v5688_v2 }
 0x115   :  { %4393 = vmatprep.subr.bf16.mxu1 %v5697_v4  ;;  %v1007_v4 = vld [vmem:[#allocation6 + $0x4c8] sm:$0xff] }
 0x116   :  { %4574 = vmatpush1.bf16.msra.mxu0 %v5634_v52 }
 0x117   :  { %4575 = vmatprep.subr.bf16.mxu0 %v5643_v54  ;;  %v5707_v54 = vcombine.high %v991_v46, %v995_v49  ;;  %v1043_v46 = vld [vmem:[#allocation6 + $0x5e8] sm:$0xff] }
 0x11a   :  { %4576 = vmatpush1.bf16.msra.mxu0 %v5642_v60  ;;  %v5704_v60 = vcombine.low %v990_v42, %v994_v45  ;;  %v1038_v42 = vld [vmem:[#allocation6 + $0x5c0] sm:$0xff]  ;;  %v1039_v45 = vld [vmem:[#allocation6 + $0x5c8] sm:$0xff] }
 0x11b   :  { %4577 = vmatprep.subr.bf16.mxu0 %v5651_v29  ;;  %v5713_v29 = vcombine.high %v998_v55, %v1002_v56  ;;  %v5755_v55 = vcombine.high %v1039_v45, %v1043_v46  ;;  %v1046_v56 = vld [vmem:[#allocation6 + $0x600] sm:$0xff] }
 0x11e   :  { %4578 = vmatpush1.bf16.msra.mxu0 %v5650_v3  ;;  %v1010_v3 = vld [vmem:[#allocation6 + $0x4e0] sm:$0xff] }
 0x11f   :  { %4579 = vmatprep.subr.bf16.mxu0 %v5659_v5  ;;  %v1011_v5 = vld [vmem:[#allocation6 + $0x4e8] sm:$0xff]  ;;  %v5720_v14 = vcombine.low %v1006_v63, %v1010_v3 }
 0x120   :  { %v5722_v15 = vcombine.low %v1007_v4, %v1011_v5 }
 0x122   :  { %4580 = vmatpush1.bf16.msra.mxu0 %v5658_v8  ;;  %v1014_v8 = vld [vmem:[#allocation6 + $0x500] sm:$0xff] }
 0x123   :  { %4581 = vmatprep.subr.bf16.mxu0 %v5667_v9 }
 0x126   :  { %4582 = vmatpush1.bf16.msra.mxu0 %v5666_v12  ;;  %v1019_v12 = vld [vmem:[#allocation6 + $0x528] sm:$0xff] }
 0x127   :  { %4583 = vmatprep.subr.bf16.mxu0 %v5675_v13 }
 0x12a   :  { %4584 = vmatpush1.bf16.msra.mxu0 %v5674_v16  ;;  %v5729_v16 = vcombine.high %v1014_v8, %v1018_v10 }
 0x12b   :  { %4585 = vmatprep.subr.bf16.mxu0 %v5683_v17  ;;  %v5731_v17 = vcombine.high %v1015_v11, %v1019_v12 }
 0x12e   :  { %4586 = vmatpush1.bf16.msra.mxu0 %v5682_v20  ;;  %v1023_v20 = vld [vmem:[#allocation6 + $0x548] sm:$0xff] }
 0x12f   :  { %4587 = vmatprep.subr.bf16.mxu0 %v5691_v21  ;;  %v1027_v21 = vld [vmem:[#allocation6 + $0x568] sm:$0xff] }
 0x132   :  { %4588 = vmatpush1.bf16.msra.mxu0 %v5690_v22  ;;  %v5728_v22 = vcombine.low %v1014_v8, %v1018_v10  ;;  %v1062_v8 = vld [vmem:[#allocation6 + $0x680] sm:$0xff]  ;;  %v1063_v10 = vld [vmem:[#allocation6 + $0x688] sm:$0xff] }
 0x133   :  { %4598 = vmatprep.subr.bf16.mxu0 %v5699_v23  ;;  %v5730_v23 = vcombine.low %v1015_v11, %v1019_v12  ;;  %v1067_v11 = vld [vmem:[#allocation6 + $0x6a8] sm:$0xff] }
 0x188   :  { %v666_v32 = vpop.f32.mrb[0].mxu0 }
 0x189   :  { %v667_v33 = vadd.f32 %v666_v32, %v222_v30  ;;  %v668_v34 = vpop.f32.mrb[1].mxu0  ;;  %v5739_v30 = vcombine.high %v1023_v20, %v1027_v21  ;;  %v1034_v32 = vld [vmem:[#allocation6 + $0x5a0] sm:$0xff] }
 0x18a   :  { %v669_v35 = vadd.f32 %v668_v34, %v226_v31  ;;  %v670_v36 = vpop.f32.mrb[2].mxu0  ;;  %v6898_v2 = vpop.f32.mrb[0].mxu1  ;;  %v1030_v31 = vld [vmem:[#allocation6 + $0x580] sm:$0xff]  ;;  %v1035_v34 = vld [vmem:[#allocation6 + $0x5a8] sm:$0xff] }
 0x18b   :  { %v836_v37 = vmax.f32 %v667_v33, 0.0  ;;  %v671_v41 = vpop.f32.mrb[3].mxu0  ;;  %v709_v6 = vpop.f32.mrb[1].mxu1  ;;  %v1031_v33 = vld [vmem:[#allocation6 + $0x588] sm:$0xff]  ;;  %v5738_v36 = vcombine.low %v1023_v20, %v1027_v21  ;;  %v5744_v49 = vcombine.low %v1030_v31, %v1034_v32 }
 0x18c   :  { %v837_v44 = vmax.f32 %v669_v35, 0.0  ;;  %v710_v7 = vadd.f32 %v709_v6, %v234_v59  ;;  %v711_v38 = vpop.f32.mrb[2].mxu1  ;;  %v5736_v35 = vcombine.low %v1022_v18, %v1026_v19  ;;  %v5747_v41 = vcombine.high %v1031_v33, %v1035_v34  ;;  %v1051_v59 = vld [vmem:[#allocation6 + $0x628] sm:$0xff]  ;;  %v1074_v19 = vld [vmem:[#allocation6 + $0x6e0] sm:$0xff] }
 0x18d   :  { %v6883_v52 = vpack.c.bf16 %v836_v37, %v836_v37  ;;  %v712_v43 = vpop.f32.mrb[3].mxu1  ;;  %v5745_v37 = vcombine.high %v1030_v31, %v1034_v32  ;;  %v1055_v38 = vld [vmem:[#allocation6 + $0x648] sm:$0xff] }
 0x18e   :  { %v6881_v51 = vpack.c.bf16 %v837_v44, %v837_v44  ;;  %v839_v9 = vmax.f32 %v710_v7, 0.0  ;;  %v1042_v44 = vld [vmem:[#allocation6 + $0x5e0] sm:$0xff]  ;;  %v5762_v43 = vcombine.low %v1047_v58, %v1051_v59  ;;  %v1071_v20 = vld [vmem:[#allocation6 + $0x6c8] sm:$0xff] }
 0x18f   :  { %v1058_v7 = vld [vmem:[#allocation6 + $0x660] sm:$0xff]  ;;  %v1075_v21 = vld [vmem:[#allocation6 + $0x6e8] sm:$0xff] }
 0x190   :  { %4384 = vmatprep.mubr.bf16.mxu1 %v6881_v51  ;;  %4589 = vmatprep.mubr.bf16.mxu0 %v6881_v51  ;;  %v6900_v13 = vpack.c.bf16 %v839_v9, %v839_v9  ;;  %v1066_v9 = vld [vmem:[#allocation6 + $0x6a0] sm:$0xff] }
 0x191   :  { %4385 = vmatmul.mubr.bf16.vlgmr.msra.gmra.mrb[8].mxu1 %v6883_v52  ;;  %4590 = vmatmul.mubr.bf16.vlgmr.msra.gmra.mrb[12].mxu0 %v6883_v52 }
 0x192   :  { %4394 = vmatpush1.bf16.msra.mxu1 %v5696_v47  ;;  %4599 = vmatpush1.bf16.msra.mxu0 %v5698_v48  ;;  %v5721_v47 = vcombine.high %v1006_v63, %v1010_v3  ;;  %v5723_v48 = vcombine.high %v1007_v4, %v1011_v5  ;;  %v5761_v3 = vcombine.high %v1046_v56, %v1050_v57  ;;  %v1054_v5 = vld [vmem:[#allocation6 + $0x640] sm:$0xff] }
 0x193   :  { %4395 = vmatprep.subr.bf16.mxu1 %v5705_v53  ;;  %4600 = vmatprep.subr.bf16.mxu0 %v5707_v54  ;;  %v5746_v53 = vcombine.low %v1031_v33, %v1035_v34  ;;  %v5753_v54 = vcombine.high %v1038_v42, %v1042_v44  ;;  %v5763_v4 = vcombine.high %v1047_v58, %v1051_v59  ;;  %v1078_v34 = vld [vmem:[#allocation6 + $0x700] sm:$0xff] }
 0x194   :  { %4425 = vmatprep.mubr.bf16.mxu1 %v6900_v13  ;;  %4630 = vmatprep.mubr.bf16.mxu0 %v6900_v13  ;;  %v5768_v12 = vcombine.low %v1054_v5, %v1058_v7  ;;  %v5787_v33 = vcombine.high %v1071_v20, %v1075_v21 }
 0x196   :  { %4396 = vmatpush1.bf16.msra.mxu1 %v5704_v60  ;;  %4601 = vmatpush1.bf16.msra.mxu0 %v5706_v61 }
 0x197   :  { %4397 = vmatprep.subr.bf16.mxu1 %v5713_v29  ;;  %4602 = vmatprep.subr.bf16.mxu0 %v5715_v62  ;;  %v5752_v29 = vcombine.low %v1038_v42, %v1042_v44  ;;  %v5754_v62 = vcombine.low %v1039_v45, %v1043_v46  ;;  %v5786_v42 = vcombine.low %v1071_v20, %v1075_v21  ;;  %v1086_v46 = vld [vmem:[#allocation6 + $0x740] sm:$0xff] }
 0x19a   :  { %4398 = vmatpush1.bf16.msra.mxu1 %v5712_v39  ;;  %4603 = vmatpush1.bf16.msra.mxu0 %v5714_v40  ;;  %v1059_v39 = vld [vmem:[#allocation6 + $0x668] sm:$0xff]  ;;  %v5760_v40 = vcombine.low %v1046_v56, %v1050_v57 }
 0x19b   :  { %4399 = vmatprep.subr.bf16.mxu1 %v5721_v47  ;;  %4604 = vmatprep.subr.bf16.mxu0 %v5723_v48  ;;  %v5769_v47 = vcombine.high %v1054_v5, %v1058_v7  ;;  %v5771_v48 = vcombine.high %v1055_v38, %v1059_v39 }
 0x19e   :  { %4400 = vmatpush1.bf16.msra.mxu1 %v5720_v14  ;;  %4605 = vmatpush1.bf16.msra.mxu0 %v5722_v15  ;;  %v5770_v14 = vcombine.low %v1055_v38, %v1059_v39  ;;  %v5777_v15 = vcombine.high %v1062_v8, %v1066_v9 }
 0x19f   :  { %4401 = vmatprep.subr.bf16.mxu1 %v5729_v16  ;;  %4606 = vmatprep.subr.bf16.mxu0 %v5731_v17  ;;  %v5779_v16 = vcombine.high %v1063_v10, %v1067_v11  ;;  %v1070_v17 = vld [vmem:[#allocation6 + $0x6c0] sm:$0xff] }
 0x1a0   :  { %v5785_v32 = vcombine.high %v1070_v17, %v1074_v19 }
 0x1a2   :  { %4402 = vmatpush1.bf16.msra.mxu1 %v5728_v22  ;;  %4607 = vmatpush1.bf16.msra.mxu0 %v5730_v23 }
 0x1a3   :  { %4403 = vmatprep.subr.bf16.mxu1 %v5737_v24  ;;  %4608 = vmatprep.subr.bf16.mxu0 %v5739_v30  ;;  %v5776_v24 = vcombine.low %v1062_v8, %v1066_v9  ;;  %v5778_v30 = vcombine.low %v1063_v10, %v1067_v11 }
 0x1a6   :  { %4404 = vmatpush1.bf16.msra.mxu1 %v5736_v35  ;;  %4609 = vmatpush1.bf16.msra.mxu0 %v5738_v36  ;;  %v1082_v35 = vld [vmem:[#allocation6 + $0x720] sm:$0xff]  ;;  %v1079_v36 = vld [vmem:[#allocation6 + $0x708] sm:$0xff] }
 0x1a7   :  { %4405 = vmatprep.subr.bf16.mxu1 %v5745_v37  ;;  %4610 = vmatprep.subr.bf16.mxu0 %v5747_v41  ;;  %v1083_v37 = vld [vmem:[#allocation6 + $0x728] sm:$0xff]  ;;  %v5784_v41 = vcombine.low %v1070_v17, %v1074_v19  ;;  %v5793_v44 = vcombine.high %v1078_v34, %v1082_v35  ;;  %v5792_v56 = vcombine.low %v1078_v34, %v1082_v35  ;;  %v1118_v34 = vld [vmem:[#allocation6 + $0x840] sm:$0xff] }
 0x1a8   :  { %v6904_v60 = vpop.f32.mrb[4].mxu0  ;;  %v5795_v45 = vcombine.high %v1079_v36, %v1083_v37  ;;  %v5794_v57 = vcombine.low %v1079_v36, %v1083_v37  ;;  %v1111_v17 = vld [vmem:[#allocation6 + $0x808] sm:$0xff]  ;;  %v1122_v36 = vld [vmem:[#allocation6 + $0x860] sm:$0xff] }
 0x1a9   :  { %v6906_v61 = vpop.f32.mrb[5].mxu0  ;;  %v1115_v19 = vld [vmem:[#allocation6 + $0x828] sm:$0xff] }
 0x1aa   :  { %4406 = vmatpush1.bf16.msra.mxu1 %v5744_v49  ;;  %4611 = vmatpush1.bf16.msra.mxu0 %v5746_v53  ;;  %v752_v63 = vpop.f32.mrb[6].mxu0  ;;  %v6908_v18 = vpop.f32.mrb[4].mxu1  ;;  %v1090_v49 = vld [vmem:[#allocation6 + $0x760] sm:$0xff]  ;;  %v1087_v53 = vld [vmem:[#allocation6 + $0x748] sm:$0xff] }
 0x1ab   :  { %4407 = vmatprep.subr.bf16.mxu1 %v5753_v54  ;;  %4612 = vmatprep.subr.bf16.mxu0 %v5755_v55  ;;  %v753_v6 = vpop.f32.mrb[7].mxu0  ;;  %v6910_v22 = vpop.f32.mrb[5].mxu1  ;;  %v1091_v54 = vld [vmem:[#allocation6 + $0x768] sm:$0xff]  ;;  %v229_v55 = vsub.s32 2, %v6868_v25  ;;  %v5801_v58 = vcombine.high %v1086_v46, %v1090_v49 }
 0x1ac   :  { %v793_v23 = vpop.f32.mrb[6].mxu1  ;;  %v5803_v59 = vcombine.high %v1087_v53, %v1091_v54  ;;  %v1095_v63 = vld [vmem:[#allocation6 + $0x788] sm:$0xff]  ;;  %v5800_v6 = vcombine.low %v1086_v46, %v1090_v49  ;;  %v5802_v7 = vcombine.low %v1087_v53, %v1091_v54  ;;  %v5833_v46 = vcombine.high %v1118_v34, %v1122_v36  ;;  %v1126_v53 = vld [vmem:[#allocation6 + $0x880] sm:$0xff] }
 0x1ad   :  { %v794_v31 = vpop.f32.mrb[7].mxu1  ;;  %v230_v5 = vrot.slane %v6871_v27, %v229_v55  ;;  %v1119_v37 = vld [vmem:[#allocation6 + $0x848] sm:$0xff]  ;;  %v1130_v54 = vld [vmem:[#allocation6 + $0x8a0] sm:$0xff] }
 0x1ae   :  { %4408 = vmatpush1.bf16.msra.mxu1 %v5752_v29  ;;  %4613 = vmatpush1.bf16.msra.mxu0 %v5754_v62  ;;  %v1094_v29 = vld [vmem:[#allocation6 + $0x780] sm:$0xff] }
 0x1af   :  { %4409 = vmatprep.subr.bf16.mxu1 %v5761_v3  ;;  %4614 = vmatprep.subr.bf16.mxu0 %v5763_v4  ;;  %v1098_v62 = vld [vmem:[#allocation6 + $0x7a0] sm:$0xff]  ;;  %v1099_v3 = vld [vmem:[#allocation6 + $0x7a8] sm:$0xff]  ;;  %v241_v4 = vsub.s32 5, %v6868_v25  ;;  %v708_v9 = vadd.f32 %v6898_v2, %v230_v5 }
 0x1b0   :  { %v5809_v38 = vcombine.high %v1094_v29, %v1098_v62  ;;  %v5811_v39 = vcombine.high %v1095_v63, %v1099_v3  ;;  %v5808_v10 = vcombine.low %v1094_v29, %v1098_v62  ;;  %v5810_v11 = vcombine.low %v1095_v63, %v1099_v3  ;;  %v1134_v3 = vld [vmem:[#allocation6 + $0x8c0] sm:$0xff] }
 0x1b1   :  { %v242_v8 = vrot.slane %v6871_v27, %v241_v4  ;;  %v838_v23 = vmax.f32 %v708_v9, 0.0  ;;  %v5841_v62 = vcombine.high %v1126_v53, %v1130_v54  ;;  %v1138_v5 = vld [vmem:[#allocation6 + $0x8e0] sm:$0xff]  ;;  %v1147_v9 = vld [vmem:[#allocation6 + $0x928] sm:$0xff] }
 0x1b2   :  { %4410 = vmatpush1.bf16.msra.mxu1 %v5760_v40  ;;  %4615 = vmatpush1.bf16.msra.mxu0 %v5762_v43  ;;  %v1102_v40 = vld [vmem:[#allocation6 + $0x7c0] sm:$0xff] }
 0x1b3   :  { %4411 = vmatprep.subr.bf16.mxu1 %v5769_v47  ;;  %4616 = vmatprep.subr.bf16.mxu0 %v5771_v48  ;;  %v1106_v43 = vld [vmem:[#allocation6 + $0x7e0] sm:$0xff]  ;;  %v1103_v47 = vld [vmem:[#allocation6 + $0x7c8] sm:$0xff]  ;;  %v751_v20 = vadd.f32 %v6906_v61, %v242_v8  ;;  %v6924_v61 = vpack.c.bf16 %v838_v23, %v838_v23 }
 0x1b4   :  { %v1107_v48 = vld [vmem:[#allocation6 + $0x7e8] sm:$0xff]  ;;  %v5816_v2 = vcombine.low %v1102_v40, %v1106_v43 }
 0x1b5   :  { %v1143_v8 = vld [vmem:[#allocation6 + $0x908] sm:$0xff] }
 0x1b6   :  { %4412 = vmatpush1.bf16.msra.mxu1 %v5768_v12  ;;  %4617 = vmatpush1.bf16.msra.mxu0 %v5770_v14  ;;  %v5817_v12 = vcombine.high %v1102_v40, %v1106_v43  ;;  %v5819_v14 = vcombine.high %v1103_v47, %v1107_v48  ;;  %v5849_v40 = vcombine.high %v1134_v3, %v1138_v5 }
 0x1b7   :  { %4413 = vmatprep.subr.bf16.mxu1 %v5777_v15  ;;  %4618 = vmatprep.subr.bf16.mxu0 %v5779_v16  ;;  %v1110_v15 = vld [vmem:[#allocation6 + $0x800] sm:$0xff]  ;;  %v5858_v23 = vcombine.low %v1143_v8, %v1147_v9 }
 0x1b8   :  { %v1114_v16 = vld [vmem:[#allocation6 + $0x820] sm:$0xff] }
 0x1ba   :  { %4414 = vmatpush1.bf16.msra.mxu1 %v5776_v24  ;;  %4619 = vmatpush1.bf16.msra.mxu0 %v5778_v30  ;;  %v5818_v30 = vcombine.low %v1103_v47, %v1107_v48  ;;  %v1142_v47 = vld [vmem:[#allocation6 + $0x900] sm:$0xff] }
 0x1bb   :  { %4415 = vmatprep.subr.bf16.mxu1 %v5785_v32  ;;  %4620 = vmatprep.subr.bf16.mxu0 %v5787_v33  ;;  %v5825_v32 = vcombine.high %v1110_v15, %v1114_v16  ;;  %v5827_v33 = vcombine.high %v1111_v17, %v1115_v19  ;;  %v1146_v48 = vld [vmem:[#allocation6 + $0x920] sm:$0xff] }
 0x1be   :  { %4416 = vmatpush1.bf16.msra.mxu1 %v5784_v41  ;;  %4621 = vmatpush1.bf16.msra.mxu0 %v5786_v42  ;;  %v1123_v41 = vld [vmem:[#allocation6 + $0x868] sm:$0xff]  ;;  %v841_v42 = vmax.f32 %v751_v20, 0.0  ;;  %v5856_v20 = vcombine.low %v1142_v47, %v1146_v48 }
 0x1bf   :  { %4417 = vmatprep.subr.bf16.mxu1 %v5793_v44  ;;  %4622 = vmatprep.subr.bf16.mxu0 %v5795_v45  ;;  %v5824_v44 = vcombine.low %v1110_v15, %v1114_v16  ;;  %v5826_v45 = vcombine.low %v1111_v17, %v1115_v19  ;;  %v5835_v49 = vcombine.high %v1119_v37, %v1123_v41  ;;  %v1150_v15 = vld [vmem:[#allocation6 + $0x940] sm:$0xff]  ;;  %v1151_v17 = vld [vmem:[#allocation6 + $0x948] sm:$0xff] }
 0x1c0   :  { %v5834_v29 = vcombine.low %v1119_v37, %v1123_v41  ;;  %v1154_v16 = vld [vmem:[#allocation6 + $0x960] sm:$0xff]  ;;  %v1155_v19 = vld [vmem:[#allocation6 + $0x968] sm:$0xff] }
 0x1c1   :  { %v1166_v41 = vld [vmem:[#allocation6 + $0x9c0] sm:$0xff] }
 0x1c2   :  { %4418 = vmatpush1.bf16.msra.mxu1 %v5792_v56  ;;  %4623 = vmatpush1.bf16.msra.mxu0 %v5794_v57  ;;  %v1127_v56 = vld [vmem:[#allocation6 + $0x888] sm:$0xff] }
 0x1c3   :  { %4419 = vmatprep.subr.bf16.mxu1 %v5801_v58  ;;  %4624 = vmatprep.subr.bf16.mxu0 %v5803_v59  ;;  %v1131_v57 = vld [vmem:[#allocation6 + $0x8a8] sm:$0xff]  ;;  %v6926_v58 = vpack.c.bf16 %v841_v42, %v841_v42  ;;  %v5832_v59 = vcombine.low %v1118_v34, %v1122_v36  ;;  %v5864_v34 = vcombine.low %v1150_v15, %v1154_v16  ;;  %v1170_v42 = vld [vmem:[#allocation6 + $0x9e0] sm:$0xff] }
 0x1c4   :  { %v5843_v63 = vcombine.high %v1127_v56, %v1131_v57 }
 0x1c6   :  { %4420 = vmatpush1.bf16.msra.mxu1 %v5800_v6  ;;  %4625 = vmatpush1.bf16.msra.mxu0 %v5802_v7  ;;  %v1135_v6 = vld [vmem:[#allocation6 + $0x8c8] sm:$0xff] }
 0x1c7   :  { %4421 = vmatprep.subr.bf16.mxu1 %v5809_v38  ;;  %4626 = vmatprep.subr.bf16.mxu0 %v5811_v39  ;;  %v1139_v7 = vld [vmem:[#allocation6 + $0x8e8] sm:$0xff]  ;;  %v5840_v38 = vcombine.low %v1126_v53, %v1130_v54  ;;  %v5842_v39 = vcombine.low %v1127_v56, %v1131_v57  ;;  %v5881_v53 = vcombine.high %v1166_v41, %v1170_v42  ;;  %v1174_v56 = vld [vmem:[#allocation6 + $0xa00] sm:$0xff] }
 0x1c8   :  { %v6922_v21 = vpop.f32.mrb[8].mxu0  ;;  %v5851_v43 = vcombine.high %v1135_v6, %v1139_v7  ;;  %v1178_v57 = vld [vmem:[#allocation6 + $0xa20] sm:$0xff] }
 0x1c9   :  { %v6228_v24 = vpop.f32.mrb[9].mxu0 }
 0x1ca   :  { %4422 = vmatpush1.bf16.msra.mxu1 %v5808_v10  ;;  %4627 = vmatpush1.bf16.msra.mxu0 %v5810_v11  ;;  %v833_v31 = vpop.f32.mrb[10].mxu0  ;;  %v5848_v10 = vcombine.low %v1134_v3, %v1138_v5  ;;  %v5850_v11 = vcombine.low %v1135_v6, %v1139_v7  ;;  %v5865_v24 = vcombine.high %v1150_v15, %v1154_v16  ;;  %v1182_v6 = vld [vmem:[#allocation6 + $0xa40] sm:$0xff] }
 0x1cb   :  { %4423 = vmatprep.subr.bf16.mxu1 %v5817_v12  ;;  %4628 = vmatprep.subr.bf16.mxu0 %v5819_v14  ;;  %v6229_v35 = vpop.f32.mrb[11].mxu0  ;;  %v5857_v12 = vcombine.high %v1142_v47, %v1146_v48  ;;  %v5859_v14 = vcombine.high %v1143_v8, %v1147_v9  ;;  %v1162_v31 = vld [vmem:[#allocation6 + $0x9a0] sm:$0xff]  ;;  %v5889_v3 = vcombine.high %v1174_v56, %v1178_v57 }
 0x1cc   :  { %v5866_v35 = vcombine.low %v1151_v17, %v1155_v19  ;;  %v1186_v7 = vld [vmem:[#allocation6 + $0xa60] sm:$0xff] }
 0x1cd   :  { %v5897_v47 = vcombine.high %v1182_v6, %v1186_v7  ;;  %v1190_v8 = vld [vmem:[#allocation6 + $0xa80] sm:$0xff] }
 0x1ce   :  { %4424 = vmatpush1.bf16.msra.mxu1 %v5816_v2  ;;  %4629 = vmatpush1.bf16.msra.mxu0 %v5818_v30  ;;  %v5867_v2 = vcombine.high %v1151_v17, %v1155_v19  ;;  %v1158_v30 = vld [vmem:[#allocation6 + $0x980] sm:$0xff] }
 0x1cf   :  { %4434 = vmatprep.subr.bf16.mxu1 %v5825_v32  ;;  %4639 = vmatprep.subr.bf16.mxu0 %v5827_v33  ;;  %v1159_v32 = vld [vmem:[#allocation6 + $0x988] sm:$0xff]  ;;  %v5873_v36 = vcombine.high %v1158_v30, %v1162_v31  ;;  %v1194_v9 = vld [vmem:[#allocation6 + $0xaa0] sm:$0xff] }
 0x1d0   :  { %v1163_v33 = vld [vmem:[#allocation6 + $0x9a8] sm:$0xff]  ;;  %v5905_v15 = vcombine.high %v1190_v8, %v1194_v9  ;;  %v1198_v17 = vld [vmem:[#allocation6 + $0xac0] sm:$0xff] }
 0x1d1   :  { %4426 = vmatmul.mubr.bf16.vlgmr.msra.gmra.mrb[8].mxu1 %v6924_v61  ;;  %4631 = vmatmul.mubr.bf16.vlgmr.msra.gmra.mrb[12].mxu0 %v6924_v61  ;;  %v5875_v37 = vcombine.high %v1159_v32, %v1163_v33  ;;  %v1202_v19 = vld [vmem:[#allocation6 + $0xae0] sm:$0xff] }
 0x1d2   :  { %4435 = vmatpush1.bf16.msra.mxu1 %v5824_v44  ;;  %4640 = vmatpush1.bf16.msra.mxu0 %v5826_v45  ;;  %v1167_v44 = vld [vmem:[#allocation6 + $0x9c8] sm:$0xff] }
 0x1d3   :  { %4436 = vmatprep.subr.bf16.mxu1 %v5833_v46  ;;  %4641 = vmatprep.subr.bf16.mxu0 %v5835_v49  ;;  %v1171_v45 = vld [vmem:[#allocation6 + $0x9e8] sm:$0xff]  ;;  %v5872_v46 = vcombine.low %v1158_v30, %v1162_v31  ;;  %v5874_v49 = vcombine.low %v1159_v32, %v1163_v33  ;;  %v5913_v30 = vcombine.high %v1198_v17, %v1202_v19  ;;  %v1206_v32 = vld [vmem:[#allocation6 + $0xb00] sm:$0xff] }
 0x1d4   :  { %4466 = vmatprep.mubr.bf16.mxu1 %v6926_v58  ;;  %4671 = vmatprep.mubr.bf16.mxu0 %v6926_v58  ;;  %v5883_v54 = vcombine.high %v1167_v44, %v1171_v45  ;;  %v1210_v33 = vld [vmem:[#allocation6 + $0xb20] sm:$0xff] }
 0x1d6   :  { %4437 = vmatpush1.bf16.msra.mxu1 %v5832_v59  ;;  %4642 = vmatpush1.bf16.msra.mxu0 %v5834_v29  ;;  %v1175_v59 = vld [vmem:[#allocation6 + $0xa08] sm:$0xff] }
 0x1d7   :  { %4438 = vmatprep.subr.bf16.mxu1 %v5841_v62  ;;  %4643 = vmatprep.subr.bf16.mxu0 %v5843_v63  ;;  %v1179_v29 = vld [vmem:[#allocation6 + $0xa28] sm:$0xff]  ;;  %v5880_v62 = vcombine.low %v1166_v41, %v1170_v42  ;;  %v5882_v63 = vcombine.low %v1167_v44, %v1171_v45  ;;  %v5921_v41 = vcombine.high %v1206_v32, %v1210_v33  ;;  %v1214_v44 = vld [vmem:[#allocation6 + $0xb40] sm:$0xff] }
 0x1d8   :  { %v5891_v5 = vcombine.high %v1175_v59, %v1179_v29  ;;  %v1218_v45 = vld [vmem:[#allocation6 + $0xb60] sm:$0xff] }
 0x1da   :  { %4439 = vmatpush1.bf16.msra.mxu1 %v5840_v38  ;;  %4644 = vmatpush1.bf16.msra.mxu0 %v5842_v39  ;;  %v1183_v38 = vld [vmem:[#allocation6 + $0xa48] sm:$0xff] }
 0x1db   :  { %4440 = vmatprep.subr.bf16.mxu1 %v5849_v40  ;;  %4645 = vmatprep.subr.bf16.mxu0 %v5851_v43  ;;  %v1187_v39 = vld [vmem:[#allocation6 + $0xa68] sm:$0xff]  ;;  %v5888_v40 = vcombine.low %v1174_v56, %v1178_v57  ;;  %v5890_v43 = vcombine.low %v1175_v59, %v1179_v29  ;;  %v237_v56 = vsub.s32 4, %v6868_v25  ;;  %v5929_v57 = vcombine.high %v1214_v44, %v1218_v45  ;;  %v1222_v29 = vld [vmem:[#allocation6 + $0xb80] sm:$0xff] }
 0x1dc   :  { %v5899_v48 = vcombine.high %v1183_v38, %v1187_v39 }
 0x1de   :  { %4441 = vmatpush1.bf16.msra.mxu1 %v5848_v10  ;;  %4646 = vmatpush1.bf16.msra.mxu0 %v5850_v11  ;;  %v1191_v10 = vld [vmem:[#allocation6 + $0xa88] sm:$0xff] }
 0x1df   :  { %4442 = vmatprep.subr.bf16.mxu1 %v5857_v12  ;;  %4647 = vmatprep.subr.bf16.mxu0 %v5859_v14  ;;  %v1195_v11 = vld [vmem:[#allocation6 + $0xaa8] sm:$0xff]  ;;  %v5896_v12 = vcombine.low %v1182_v6, %v1186_v7  ;;  %v5898_v14 = vcombine.low %v1183_v38, %v1187_v39  ;;  %v5928_v6 = vcombine.low %v1214_v44, %v1218_v45  ;;  %v1254_v44 = vld [vmem:[#allocation6 + $0xc80] sm:$0xff] }
 0x1e0   :  { %v5907_v16 = vcombine.high %v1191_v10, %v1195_v11  ;;  %v238_v38 = vrot.slane %v6871_v27, %v237_v56  ;;  %v1258_v45 = vld [vmem:[#allocation6 + $0xca0] sm:$0xff] }
 0x1e2   :  { %4443 = vmatpush1.bf16.msra.mxu1 %v5856_v20  ;;  %4648 = vmatpush1.bf16.msra.mxu0 %v5858_v23  ;;  %v1199_v20 = vld [vmem:[#allocation6 + $0xac8] sm:$0xff] }
 0x1e3   :  { %4444 = vmatprep.subr.bf16.mxu1 %v5865_v24  ;;  %4649 = vmatprep.subr.bf16.mxu0 %v5867_v2  ;;  %v1203_v23 = vld [vmem:[#allocation6 + $0xae8] sm:$0xff]  ;;  %v5904_v24 = vcombine.low %v1190_v8, %v1194_v9  ;;  %v5906_v2 = vcombine.low %v1191_v10, %v1195_v11 }
 0x1e4   :  { %v5915_v31 = vcombine.high %v1199_v20, %v1203_v23  ;;  %v1235_v8 = vld [vmem:[#allocation6 + $0xbe8] sm:$0xff] }
 0x1e6   :  { %4445 = vmatpush1.bf16.msra.mxu1 %v5864_v34  ;;  %4650 = vmatpush1.bf16.msra.mxu0 %v5866_v35  ;;  %v1207_v34 = vld [vmem:[#allocation6 + $0xb08] sm:$0xff] }
 0x1e7   :  { %4446 = vmatprep.subr.bf16.mxu1 %v5873_v36  ;;  %4651 = vmatprep.subr.bf16.mxu0 %v5875_v37  ;;  %v1211_v35 = vld [vmem:[#allocation6 + $0xb28] sm:$0xff]  ;;  %v5912_v36 = vcombine.low %v1198_v17, %v1202_v19  ;;  %v5914_v37 = vcombine.low %v1199_v20, %v1203_v23  ;;  %v1242_v17 = vld [vmem:[#allocation6 + $0xc20] sm:$0xff] }
 0x1e8   :  { %v5923_v42 = vcombine.high %v1207_v34, %v1211_v35  ;;  %v1239_v19 = vld [vmem:[#allocation6 + $0xc08] sm:$0xff] }
 0x1e9   :  { %v1243_v20 = vld [vmem:[#allocation6 + $0xc28] sm:$0xff] }
 0x1ea   :  { %4447 = vmatpush1.bf16.msra.mxu1 %v5872_v46  ;;  %4652 = vmatpush1.bf16.msra.mxu0 %v5874_v49  ;;  %v1215_v46 = vld [vmem:[#allocation6 + $0xb48] sm:$0xff] }
 0x1eb   :  { %4448 = vmatprep.subr.bf16.mxu1 %v5881_v53  ;;  %4653 = vmatprep.subr.bf16.mxu0 %v5883_v54  ;;  %v1219_v49 = vld [vmem:[#allocation6 + $0xb68] sm:$0xff]  ;;  %v5920_v53 = vcombine.low %v1206_v32, %v1210_v33  ;;  %v5922_v54 = vcombine.low %v1207_v34, %v1211_v35  ;;  %v1250_v32 = vld [vmem:[#allocation6 + $0xc60] sm:$0xff] }
 0x1ec   :  { %v5931_v59 = vcombine.high %v1215_v46, %v1219_v49  ;;  %v5930_v7 = vcombine.low %v1215_v46, %v1219_v49  ;;  %v1247_v33 = vld [vmem:[#allocation6 + $0xc48] sm:$0xff] }
 0x1ed   :  { %v1251_v34 = vld [vmem:[#allocation6 + $0xc68] sm:$0xff] }
 0x1ee   :  { %4449 = vmatpush1.bf16.msra.mxu1 %v5880_v62  ;;  %4654 = vmatpush1.bf16.msra.mxu0 %v5882_v63  ;;  %v1226_v62 = vld [vmem:[#allocation6 + $0xba0] sm:$0xff]  ;;  %v1223_v63 = vld [vmem:[#allocation6 + $0xb88] sm:$0xff] }
 0x1ef   :  { %4450 = vmatprep.subr.bf16.mxu1 %v5889_v3  ;;  %4655 = vmatprep.subr.bf16.mxu0 %v5891_v5  ;;  %v1227_v3 = vld [vmem:[#allocation6 + $0xba8] sm:$0xff]  ;;  %v249_v5 = vsub.s32 7, %v6868_v25  ;;  %v5937_v39 = vcombine.high %v1222_v29, %v1226_v62  ;;  %v5936_v10 = vcombine.low %v1222_v29, %v1226_v62  ;;  %v1262_v62 = vld [vmem:[#allocation6 + $0xcc0] sm:$0xff] }
 0x1f0   :  { %v5938_v11 = vcombine.low %v1223_v63, %v1227_v3  ;;  %v1255_v46 = vld [vmem:[#allocation6 + $0xc88] sm:$0xff] }
 0x1f1   :  { %v250_v9 = vrot.slane %v6871_v27, %v249_v5  ;;  %v1259_v49 = vld [vmem:[#allocation6 + $0xca8] sm:$0xff] }
 0x1f2   :  { %4451 = vmatpush1.bf16.msra.mxu1 %v5888_v40  ;;  %4656 = vmatpush1.bf16.msra.mxu0 %v5890_v43  ;;  %v5939_v40 = vcombine.high %v1223_v63, %v1227_v3  ;;  %v1230_v43 = vld [vmem:[#allocation6 + $0xbc0] sm:$0xff]  ;;  %v5971_v29 = vcombine.high %v1255_v46, %v1259_v49  ;;  %v1263_v3 = vld [vmem:[#allocation6 + $0xcc8] sm:$0xff] }
 0x1f3   :  { %4452 = vmatprep.subr.bf16.mxu1 %v5897_v47  ;;  %4657 = vmatprep.subr.bf16.mxu0 %v5899_v48  ;;  %v1234_v47 = vld [vmem:[#allocation6 + $0xbe0] sm:$0xff]  ;;  %v1231_v48 = vld [vmem:[#allocation6 + $0xbc8] sm:$0xff]  ;;  %v792_v23 = vadd.f32 %v6910_v22, %v250_v9 }
 0x1f4   :  { %v5946_v27 = vcombine.low %v1231_v48, %v1235_v8  ;;  %v1266_v63 = vld [vmem:[#allocation6 + $0xce0] sm:$0xff] }
 0x1f5   :  { %v843_v35 = vmax.f32 %v792_v23, 0.0  ;;  %v5976_v9 = vcombine.low %v1262_v62, %v1266_v63 }
 0x1f6   :  { %4453 = vmatpush1.bf16.msra.mxu1 %v5896_v12  ;;  %4658 = vmatpush1.bf16.msra.mxu0 %v5898_v14  ;;  %v749_v12 = vadd.f32 %v6904_v60, %v238_v38  ;;  %v5945_v14 = vcombine.high %v1230_v43, %v1234_v47  ;;  %v1246_v60 = vld [vmem:[#allocation6 + $0xc40] sm:$0xff]  ;;  %v5970_v38 = vcombine.low %v1255_v46, %v1259_v49 }
 0x1f7   :  { %4454 = vmatprep.subr.bf16.mxu1 %v5905_v15  ;;  %4659 = vmatprep.subr.bf16.mxu0 %v5907_v16  ;;  %v5947_v15 = vcombine.high %v1231_v48, %v1235_v8  ;;  %v1238_v16 = vld [vmem:[#allocation6 + $0xc00] sm:$0xff]  ;;  %v5961_v22 = vcombine.high %v1246_v60, %v1250_v32  ;;  %v1271_v48 = vld [vmem:[#allocation6 + $0xd08] sm:$0xff] }
 0x1f8   :  { %v1275_v8 = vld [vmem:[#allocation6 + $0xd28] sm:$0xff]  ;;  %v1302_v49 = vld [vmem:[#allocation6 + $0xe00] sm:$0xff] }
 0x1fa   :  { %4455 = vmatpush1.bf16.msra.mxu1 %v5904_v24  ;;  %4660 = vmatpush1.bf16.msra.mxu0 %v5906_v2  ;;  %v5944_v24 = vcombine.low %v1230_v43, %v1234_v47  ;;  %v840_v2 = vmax.f32 %v749_v12, 0.0  ;;  %v1270_v43 = vld [vmem:[#allocation6 + $0xd00] sm:$0xff]  ;;  %v5987_v12 = vcombine.high %v1271_v48, %v1275_v8 }
 0x1fb   :  { %4456 = vmatprep.subr.bf16.mxu1 %v5913_v30  ;;  %4661 = vmatprep.subr.bf16.mxu0 %v5915_v31  ;;  %v5953_v30 = vcombine.high %v1238_v16, %v1242_v17  ;;  %v5955_v31 = vcombine.high %v1239_v19, %v1243_v20  ;;  %v1274_v47 = vld [vmem:[#allocation6 + $0xd20] sm:$0xff] }
 0x1fe   :  { %4457 = vmatpush1.bf16.msra.mxu1 %v5912_v36  ;;  %4662 = vmatpush1.bf16.msra.mxu0 %v5914_v37  ;;  %v5952_v36 = vcombine.low %v1238_v16, %v1242_v17  ;;  %v5954_v37 = vcombine.low %v1239_v19, %v1243_v20  ;;  %v1279_v16 = vld [vmem:[#allocation6 + $0xd48] sm:$0xff]  ;;  %v5984_v19 = vcombine.low %v1270_v43, %v1274_v47 }
 0x1ff   :  { %4458 = vmatprep.subr.bf16.mxu1 %v5921_v41  ;;  %4663 = vmatprep.subr.bf16.mxu0 %v5923_v42  ;;  %v6942_v41 = vpack.c.bf16 %v840_v2, %v840_v2  ;;  %v5963_v42 = vcombine.high %v1247_v33, %v1251_v34  ;;  %v1283_v17 = vld [vmem:[#allocation6 + $0xd68] sm:$0xff]  ;;  %v5986_v20 = vcombine.low %v1271_v48, %v1275_v8  ;;  %v1290_v2 = vld [vmem:[#allocation6 + $0xda0] sm:$0xff] }
 0x200   :  { %v1318_v8 = vld [vmem:[#allocation6 + $0xe80] sm:$0xff] }
 0x202   :  { %4459 = vmatpush1.bf16.msra.mxu1 %v5920_v53  ;;  %4664 = vmatpush1.bf16.msra.mxu0 %v5922_v54  ;;  %v6944_v53 = vpack.c.bf16 %v843_v35, %v843_v35  ;;  %v5960_v54 = vcombine.low %v1246_v60, %v1250_v32  ;;  %v5994_v32 = vcombine.low %v1279_v16, %v1283_v17  ;;  %v1294_v35 = vld [vmem:[#allocation6 + $0xdc0] sm:$0xff] }
 0x203   :  { %4460 = vmatprep.subr.bf16.mxu1 %v5929_v57  ;;  %4665 = vmatprep.subr.bf16.mxu0 %v5931_v59  ;;  %v5962_v57 = vcombine.low %v1247_v33, %v1251_v34  ;;  %v5969_v59 = vcombine.high %v1254_v44, %v1258_v45 }
 0x206   :  { %4461 = vmatpush1.bf16.msra.mxu1 %v5928_v6  ;;  %4666 = vmatpush1.bf16.msra.mxu0 %v5930_v7  ;;  %v1267_v6 = vld [vmem:[#allocation6 + $0xce8] sm:$0xff]  ;;  %v5968_v7 = vcombine.low %v1254_v44, %v1258_v45 }
 0x207   :  { %4462 = vmatprep.subr.bf16.mxu1 %v5937_v39  ;;  %4667 = vmatprep.subr.bf16.mxu0 %v5939_v40  ;;  %v5977_v39 = vcombine.high %v1262_v62, %v1266_v63  ;;  %v5979_v40 = vcombine.high %v1263_v3, %v1267_v6 }
 0x20a   :  { %4463 = vmatpush1.bf16.msra.mxu1 %v5936_v10  ;;  %4668 = vmatpush1.bf16.msra.mxu0 %v5938_v11  ;;  %v5978_v10 = vcombine.low %v1263_v3, %v1267_v6  ;;  %v5985_v11 = vcombine.high %v1270_v43, %v1274_v47  ;;  %v1310_v6 = vld [vmem:[#allocation6 + $0xe40] sm:$0xff] }
 0x20b   :  { %4464 = vmatprep.subr.bf16.mxu1 %v5945_v14  ;;  %4669 = vmatprep.subr.bf16.mxu0 %v5947_v15  ;;  %v1278_v14 = vld [vmem:[#allocation6 + $0xd40] sm:$0xff] }
 0x20c   :  { %v1282_v15 = vld [vmem:[#allocation6 + $0xd60] sm:$0xff] }
 0x20d   :  { %v5993_v23 = vcombine.high %v1278_v14, %v1282_v15  ;;  %v5992_v60 = vcombine.low %v1278_v14, %v1282_v15 }
 0x20e   :  { %4465 = vmatpush1.bf16.msra.mxu1 %v5944_v24  ;;  %4670 = vmatpush1.bf16.msra.mxu0 %v5946_v27  ;;  %v5995_v24 = vcombine.high %v1279_v16, %v1283_v17  ;;  %v1286_v27 = vld [vmem:[#allocation6 + $0xd80] sm:$0xff] }
 0x20f   :  { %4475 = vmatprep.subr.bf16.mxu1 %v5953_v30  ;;  %4680 = vmatprep.subr.bf16.mxu0 %v5955_v31  ;;  %v1287_v30 = vld [vmem:[#allocation6 + $0xd88] sm:$0xff]  ;;  %v6001_v33 = vcombine.high %v1286_v27, %v1290_v2  ;;  %v1326_v17 = vld [vmem:[#allocation6 + $0xec0] sm:$0xff] }
 0x210   :  { %v1291_v31 = vld [vmem:[#allocation6 + $0xda8] sm:$0xff] }
 0x211   :  { %4467 = vmatmul.mubr.bf16.vlgmr.msra.gmra.mrb[8].mxu1 %v6942_v41  ;;  %4672 = vmatmul.mubr.bf16.vlgmr.msra.gmra.mrb[12].mxu0 %v6942_v41  ;;  %v6003_v34 = vcombine.high %v1287_v30, %v1291_v31  ;;  %v6002_v44 = vcombine.low %v1287_v30, %v1291_v31  ;;  %v1334_v31 = vld [vmem:[#allocation6 + $0xf00] sm:$0xff] }
 0x212   :  { %4476 = vmatpush1.bf16.msra.mxu1 %v5952_v36  ;;  %4681 = vmatpush1.bf16.msra.mxu0 %v5954_v37  ;;  %v1298_v36 = vld [vmem:[#allocation6 + $0xde0] sm:$0xff]  ;;  %v1295_v37 = vld [vmem:[#allocation6 + $0xdc8] sm:$0xff] }
 0x213   :  { %4477 = vmatprep.subr.bf16.mxu1 %v5961_v22  ;;  %4682 = vmatprep.subr.bf16.mxu0 %v5963_v42  ;;  %v1299_v22 = vld [vmem:[#allocation6 + $0xde8] sm:$0xff]  ;;  %v6000_v42 = vcombine.low %v1286_v27, %v1290_v2  ;;  %v6009_v45 = vcombine.high %v1294_v35, %v1298_v36 }
 0x214   :  { %4507 = vmatprep.mubr.bf16.mxu1 %v6944_v53  ;;  %4712 = vmatprep.mubr.bf16.mxu0 %v6944_v53  ;;  %v6011_v46 = vcombine.high %v1295_v37, %v1299_v22  ;;  %v6010_v62 = vcombine.low %v1295_v37, %v1299_v22  ;;  %v1342_v22 = vld [vmem:[#allocation6 + $0xf40] sm:$0xff] }
 0x216   :  { %4478 = vmatpush1.bf16.msra.mxu1 %v5960_v54  ;;  %4683 = vmatpush1.bf16.msra.mxu0 %v5962_v57  ;;  %v1306_v54 = vld [vmem:[#allocation6 + $0xe20] sm:$0xff]  ;;  %v1303_v57 = vld [vmem:[#allocation6 + $0xe08] sm:$0xff] }
 0x217   :  { %4479 = vmatprep.subr.bf16.mxu1 %v5969_v59  ;;  %4684 = vmatprep.subr.bf16.mxu0 %v5971_v29  ;;  %v1307_v59 = vld [vmem:[#allocation6 + $0xe28] sm:$0xff]  ;;  %v6008_v29 = vcombine.low %v1294_v35, %v1298_v36  ;;  %v6017_v63 = vcombine.high %v1302_v49, %v1306_v54 }
 0x218   :  { %v6019_v3 = vcombine.high %v1303_v57, %v1307_v59  ;;  %v6018_v43 = vcombine.low %v1303_v57, %v1307_v59 }
 0x21a   :  { %4480 = vmatpush1.bf16.msra.mxu1 %v5968_v7  ;;  %4685 = vmatpush1.bf16.msra.mxu0 %v5970_v38  ;;  %v1314_v7 = vld [vmem:[#allocation6 + $0xe60] sm:$0xff]  ;;  %v1311_v38 = vld [vmem:[#allocation6 + $0xe48] sm:$0xff] }
 0x21b   :  { %4481 = vmatprep.subr.bf16.mxu1 %v5977_v39  ;;  %4686 = vmatprep.subr.bf16.mxu0 %v5979_v40  ;;  %v1315_v39 = vld [vmem:[#allocation6 + $0xe68] sm:$0xff]  ;;  %v6016_v40 = vcombine.low %v1302_v49, %v1306_v54  ;;  %v6025_v47 = vcombine.high %v1310_v6, %v1314_v7  ;;  %v245_v54 = vsub.s32 6, %v6868_v25 }
 0x21c   :  { %v6027_v48 = vcombine.high %v1311_v38, %v1315_v39  ;;  %v6026_v14 = vcombine.low %v1311_v38, %v1315_v39  ;;  %v6471_v38 = vld [vmem:[#allocation4] sm:$0xff] }
 0x21d   :  { %v246_v39 = vrot.slane %v6471_v38, %v245_v54 }
 0x21e   :  { %4482 = vmatpush1.bf16.msra.mxu1 %v5976_v9  ;;  %4687 = vmatpush1.bf16.msra.mxu0 %v5978_v10  ;;  %v1322_v9 = vld [vmem:[#allocation6 + $0xea0] sm:$0xff]  ;;  %v1319_v10 = vld [vmem:[#allocation6 + $0xe88] sm:$0xff] }
 0x21f   :  { %4483 = vmatprep.subr.bf16.mxu1 %v5985_v11  ;;  %4688 = vmatprep.subr.bf16.mxu0 %v5987_v12  ;;  %v1323_v11 = vld [vmem:[#allocation6 + $0xea8] sm:$0xff]  ;;  %v6024_v12 = vcombine.low %v1310_v6, %v1314_v7  ;;  %v6033_v15 = vcombine.high %v1318_v8, %v1322_v9 }
 0x220   :  { %v6035_v16 = vcombine.high %v1319_v10, %v1323_v11  ;;  %v6034_v27 = vcombine.low %v1319_v10, %v1323_v11 }
 0x222   :  { %4484 = vmatpush1.bf16.msra.mxu1 %v5984_v19  ;;  %4689 = vmatpush1.bf16.msra.mxu0 %v5986_v20  ;;  %v1330_v19 = vld [vmem:[#allocation6 + $0xee0] sm:$0xff]  ;;  %v1327_v20 = vld [vmem:[#allocation6 + $0xec8] sm:$0xff] }
 0x223   :  { %4485 = vmatprep.subr.bf16.mxu1 %v5993_v23  ;;  %4690 = vmatprep.subr.bf16.mxu0 %v5995_v24  ;;  %v1331_v23 = vld [vmem:[#allocation6 + $0xee8] sm:$0xff]  ;;  %v6032_v24 = vcombine.low %v1318_v8, %v1322_v9  ;;  %v6041_v2 = vcombine.high %v1326_v17, %v1330_v19 }
 0x224   :  { %v6043_v30 = vcombine.high %v1327_v20, %v1331_v23  ;;  %v6042_v35 = vcombine.low %v1327_v20, %v1331_v23  ;;  %v1359_v8 = vld [vmem:[#allocation6 + $0xfc8] sm:$0xff] }
 0x225   :  { %v1363_v9 = vld [vmem:[#allocation6 + $0xfe8] sm:$0xff] }
 0x226   :  { %4486 = vmatpush1.bf16.msra.mxu1 %v5992_v60  ;;  %4691 = vmatpush1.bf16.msra.mxu0 %v5994_v32  ;;  %v1338_v60 = vld [vmem:[#allocation6 + $0xf20] sm:$0xff]  ;;  %v1335_v32 = vld [vmem:[#allocation6 + $0xf08] sm:$0xff] }
 0x227   :  { %4487 = vmatprep.subr.bf16.mxu1 %v6001_v33  ;;  %4692 = vmatprep.subr.bf16.mxu0 %v6003_v34  ;;  %v1339_v33 = vld [vmem:[#allocation6 + $0xf28] sm:$0xff]  ;;  %v6040_v34 = vcombine.low %v1326_v17, %v1330_v19  ;;  %v6049_v36 = vcombine.high %v1334_v31, %v1338_v60  ;;  %v1370_v17 = vld [vmem:[#allocation6 + $0x1020] sm:$0xff] }
 0x228   :  { %v6051_v37 = vcombine.high %v1335_v32, %v1339_v33  ;;  %v6050_v49 = vcombine.low %v1335_v32, %v1339_v33  ;;  %v1367_v19 = vld [vmem:[#allocation6 + $0x1008] sm:$0xff] }
 0x229   :  { %v1371_v20 = vld [vmem:[#allocation6 + $0x1028] sm:$0xff] }
 0x22a   :  { %4488 = vmatpush1.bf16.msra.mxu1 %v6000_v42  ;;  %4693 = vmatpush1.bf16.msra.mxu0 %v6002_v44  ;;  %v1346_v42 = vld [vmem:[#allocation6 + $0xf60] sm:$0xff]  ;;  %v1343_v44 = vld [vmem:[#allocation6 + $0xf48] sm:$0xff] }
 0x22b   :  { %4489 = vmatprep.subr.bf16.mxu1 %v6009_v45  ;;  %4694 = vmatprep.subr.bf16.mxu0 %v6011_v46  ;;  %v1347_v45 = vld [vmem:[#allocation6 + $0xf68] sm:$0xff]  ;;  %v6048_v46 = vcombine.low %v1334_v31, %v1338_v60  ;;  %v6057_v57 = vcombine.high %v1342_v22, %v1346_v42  ;;  %v6056_v6 = vcombine.low %v1342_v22, %v1346_v42  ;;  %v1374_v31 = vld [vmem:[#allocation6 + $0x1040] sm:$0xff] }
 0x22c   :  { %v6059_v59 = vcombine.high %v1343_v44, %v1347_v45  ;;  %v6058_v7 = vcombine.low %v1343_v44, %v1347_v45  ;;  %v1378_v60 = vld [vmem:[#allocation6 + $0x1060] sm:$0xff]  ;;  %v1379_v32 = vld [vmem:[#allocation6 + $0x1068] sm:$0xff] }
 0x22d   :  { %v1382_v22 = vld [vmem:[#allocation6 + $0x1080] sm:$0xff]  ;;  %v1383_v44 = vld [vmem:[#allocation6 + $0x1088] sm:$0xff] }
 0x22e   :  { %4490 = vmatpush1.bf16.msra.mxu1 %v6008_v29  ;;  %4695 = vmatpush1.bf16.msra.mxu0 %v6010_v62  ;;  %v1350_v29 = vld [vmem:[#allocation6 + $0xf80] sm:$0xff]  ;;  %v1387_v45 = vld [vmem:[#allocation6 + $0x10a8] sm:$0xff] }
 0x22f   :  { %4491 = vmatprep.subr.bf16.mxu1 %v6017_v63  ;;  %4696 = vmatprep.subr.bf16.mxu0 %v6019_v3  ;;  %v1354_v62 = vld [vmem:[#allocation6 + $0xfa0] sm:$0xff]  ;;  %v1351_v63 = vld [vmem:[#allocation6 + $0xf88] sm:$0xff] }
 0x230   :  { %v1355_v3 = vld [vmem:[#allocation6 + $0xfa8] sm:$0xff]  ;;  %v6064_v10 = vcombine.low %v1350_v29, %v1354_v62  ;;  %v1386_v42 = vld [vmem:[#allocation6 + $0x10a0] sm:$0xff] }
 0x231   :  { %v6066_v11 = vcombine.low %v1351_v63, %v1355_v3 }
 0x232   :  { %4492 = vmatpush1.bf16.msra.mxu1 %v6016_v40  ;;  %4697 = vmatpush1.bf16.msra.mxu0 %v6018_v43  ;;  %v6065_v40 = vcombine.high %v1350_v29, %v1354_v62  ;;  %v6067_v43 = vcombine.high %v1351_v63, %v1355_v3  ;;  %v1390_v29 = vld [vmem:[#allocation6 + $0x10c0] sm:$0xff]  ;;  %v1391_v63 = vld [vmem:[#allocation6 + $0x10c8] sm:$0xff] }
 0x233   :  { %4493 = vmatprep.subr.bf16.mxu1 %v6025_v47  ;;  %4698 = vmatprep.subr.bf16.mxu0 %v6027_v48  ;;  %v1358_v47 = vld [vmem:[#allocation6 + $0xfc0] sm:$0xff]  ;;  %v1395_v3 = vld [vmem:[#allocation6 + $0x10e8] sm:$0xff] }
 0x234   :  { %v1362_v48 = vld [vmem:[#allocation6 + $0xfe0] sm:$0xff] }
 0x235   :  { %v6072_v23 = vcombine.low %v1358_v47, %v1362_v48  ;;  %v1394_v62 = vld [vmem:[#allocation6 + $0x10e0] sm:$0xff] }
 0x236   :  { %4494 = vmatpush1.bf16.msra.mxu1 %v6024_v12  ;;  %4699 = vmatpush1.bf16.msra.mxu0 %v6026_v14  ;;  %v790_v12 = vadd.f32 %v6908_v18, %v246_v39  ;;  %v6073_v14 = vcombine.high %v1358_v47, %v1362_v48  ;;  %v1375_v18 = vld [vmem:[#allocation6 + $0x1048] sm:$0xff]  ;;  %v6105_v38 = vcombine.high %v1390_v29, %v1394_v62 }
 0x237   :  { %4495 = vmatprep.subr.bf16.mxu1 %v6033_v15  ;;  %4700 = vmatprep.subr.bf16.mxu0 %v6035_v16  ;;  %v6075_v15 = vcombine.high %v1359_v8, %v1363_v9  ;;  %v1366_v16 = vld [vmem:[#allocation6 + $0x1000] sm:$0xff]  ;;  %v6107_v39 = vcombine.high %v1391_v63, %v1395_v3  ;;  %v1399_v47 = vld [vmem:[#allocation6 + $0x1108] sm:$0xff] }
 0x238   :  { %v6080_v33 = vcombine.low %v1366_v16, %v1370_v17  ;;  %v1403_v48 = vld [vmem:[#allocation6 + $0x1128] sm:$0xff] }
 0x23a   :  { %4496 = vmatpush1.bf16.msra.mxu1 %v6032_v24  ;;  %4701 = vmatpush1.bf16.msra.mxu0 %v6034_v27  ;;  %v6074_v24 = vcombine.low %v1359_v8, %v1363_v9  ;;  %v842_v27 = vmax.f32 %v790_v12, 0.0  ;;  %v6104_v8 = vcombine.low %v1390_v29, %v1394_v62  ;;  %v6106_v9 = vcombine.low %v1391_v63, %v1395_v3  ;;  %v1406_v12 = vld [vmem:[#allocation6 + $0x1140] sm:$0xff]  ;;  %v857_v29 = vld [vmem:[#allocation6 + $0x18] sm:$0xff] }
 0x23b   :  { %4497 = vmatprep.subr.bf16.mxu1 %v6041_v2  ;;  %4702 = vmatprep.subr.bf16.mxu0 %v6043_v30  ;;  %v6081_v2 = vcombine.high %v1366_v16, %v1370_v17  ;;  %v6083_v30 = vcombine.high %v1367_v19, %v1371_v20  ;;  %v1411_v16 = vld [vmem:[#allocation6 + $0x1168] sm:$0xff]  ;;  %v861_v62 = vld [vmem:[#allocation6 + $0x38] sm:$0xff] }
 0x23e   :  { %4498 = vmatpush1.bf16.msra.mxu1 %v6040_v34  ;;  %4703 = vmatpush1.bf16.msra.mxu0 %v6042_v35  ;;  %v6082_v34 = vcombine.low %v1367_v19, %v1371_v20  ;;  %v6954_v35 = vpack.c.bf16 %v842_v27, %v842_v27  ;;  %v6114_v19 = vcombine.low %v1399_v47, %v1403_v48  ;;  %v1418_v27 = vld [vmem:[#allocation6 + $0x11a0] sm:$0xff] }
 0x23f   :  { %4499 = vmatprep.subr.bf16.mxu1 %v6049_v36  ;;  %4704 = vmatprep.subr.bf16.mxu0 %v6051_v37  ;;  %v6089_v36 = vcombine.high %v1374_v31, %v1378_v60  ;;  %v6091_v37 = vcombine.high %v1375_v18, %v1379_v32 }
 0x242   :  { %4500 = vmatpush1.bf16.msra.mxu1 %v6048_v46  ;;  %4705 = vmatpush1.bf16.msra.mxu0 %v6050_v49  ;;  %v6088_v46 = vcombine.low %v1374_v31, %v1378_v60  ;;  %v6090_v49 = vcombine.low %v1375_v18, %v1379_v32  ;;  %v5495_v18 = vld [vmem:[#allocation4 + $0x8] ss:$0 sm:$0xff] }
 0x243   :  { %4501 = vmatprep.subr.bf16.mxu1 %v6057_v57  ;;  %4706 = vmatprep.subr.bf16.mxu0 %v6059_v59  ;;  %v6097_v57 = vcombine.high %v1382_v22, %v1386_v42  ;;  %v6099_v59 = vcombine.high %v1383_v44, %v1387_v45 }
 0x246   :  { %4502 = vmatpush1.bf16.msra.mxu1 %v6056_v6  ;;  %4707 = vmatpush1.bf16.msra.mxu0 %v6058_v7  ;;  %v6096_v6 = vcombine.low %v1382_v22, %v1386_v42  ;;  %v6098_v7 = vcombine.low %v1383_v44, %v1387_v45  ;;  %v1427_v22 = vld [vmem:[#allocation6 + $0x11e8] sm:$0xff]  ;;  %v831_v45 = vadd.f32 %v5495_v18, %v6922_v21  ;;  %v865_v21 = vld [vmem:[#allocation6 + $0x58] sm:$0xff] }
 0x247   :  { %4503 = vmatprep.subr.bf16.mxu1 %v6065_v40  ;;  %4708 = vmatprep.subr.bf16.mxu0 %v6067_v43  ;;  %v1398_v40 = vld [vmem:[#allocation6 + $0x1100] sm:$0xff] }
 0x248   :  { %v1402_v43 = vld [vmem:[#allocation6 + $0x1120] sm:$0xff] }
 0x249   :  { %v6112_v17 = vcombine.low %v1398_v40, %v1402_v43 }
 0x24a   :  { %4504 = vmatpush1.bf16.msra.mxu1 %v6064_v10  ;;  %4709 = vmatpush1.bf16.msra.mxu0 %v6066_v11  ;;  %v6113_v10 = vcombine.high %v1398_v40, %v1402_v43  ;;  %v6115_v11 = vcombine.high %v1399_v47, %v1403_v48  ;;  %v868_v40 = vld [vmem:[#allocation6 + $0x70] sm:$0xff]  ;;  %v869_v43 = vld [vmem:[#allocation6 + $0x78] sm:$0xff] }
 0x24b   :  { %4505 = vmatprep.subr.bf16.mxu1 %v6073_v14  ;;  %4710 = vmatprep.subr.bf16.mxu0 %v6075_v15  ;;  %v1410_v14 = vld [vmem:[#allocation6 + $0x1160] sm:$0xff]  ;;  %v1407_v15 = vld [vmem:[#allocation6 + $0x1148] sm:$0xff] }
 0x24c   :  { %v6121_v20 = vcombine.high %v1406_v12, %v1410_v14  ;;  %v6120_v31 = vcombine.low %v1406_v12, %v1410_v14  ;;  %v6122_v60 = vcombine.low %v1407_v15, %v1411_v16  ;;  %v876_v12 = vld [vmem:[#allocation6 + $0xb0] sm:$0xff]  ;;  %v873_v14 = vld [vmem:[#allocation6 + $0x98] sm:$0xff] }
 0x24e   :  { %4506 = vmatpush1.bf16.msra.mxu1 %v6072_v23  ;;  %4711 = vmatpush1.bf16.msra.mxu0 %v6074_v24  ;;  %v6123_v23 = vcombine.high %v1407_v15, %v1411_v16  ;;  %v1414_v24 = vld [vmem:[#allocation6 + $0x1180] sm:$0xff]  ;;  %v877_v15 = vld [vmem:[#allocation6 + $0xb8] sm:$0xff] }
 0x24f   :  { %4516 = vmatprep.subr.bf16.mxu1 %v6081_v2  ;;  %4721 = vmatprep.subr.bf16.mxu0 %v6083_v30  ;;  %v1415_v2 = vld [vmem:[#allocation6 + $0x1188] sm:$0xff]  ;;  %v6129_v32 = vcombine.high %v1414_v24, %v1418_v27  ;;  %v6128_v42 = vcombine.low %v1414_v24, %v1418_v27  ;;  %v884_v24 = vld [vmem:[#allocation6 + $0xf0] sm:$0xff]  ;;  %v881_v27 = vld [vmem:[#allocation6 + $0xd8] sm:$0xff] }
 0x250   :  { %v1419_v30 = vld [vmem:[#allocation6 + $0x11a8] sm:$0xff] }
 0x251   :  { %4508 = vmatmul.mubr.bf16.vlgmr.msra.gmra.mrb[8].mxu1 %v6954_v35  ;;  %4713 = vmatmul.mubr.bf16.vlgmr.msra.gmra.mrb[12].mxu0 %v6954_v35  ;;  %v6130_v44 = vcombine.low %v1415_v2, %v1419_v30 }
 0x252   :  { %4517 = vmatpush1.bf16.msra.mxu1 %v6080_v33  ;;  %4722 = vmatpush1.bf16.msra.mxu0 %v6082_v34  ;;  %v6131_v33 = vcombine.high %v1415_v2, %v1419_v30  ;;  %v1422_v34 = vld [vmem:[#allocation6 + $0x11c0] sm:$0xff]  ;;  %v885_v2 = vld [vmem:[#allocation6 + $0xf8] sm:$0xff] }
 0x253   :  { %4518 = vmatprep.subr.bf16.mxu1 %v6089_v36  ;;  %4723 = vmatprep.subr.bf16.mxu0 %v6091_v37  ;;  %v1426_v36 = vld [vmem:[#allocation6 + $0x11e0] sm:$0xff]  ;;  %v1423_v37 = vld [vmem:[#allocation6 + $0x11c8] sm:$0xff]  ;;  %v5599_v18 = vcombine.high %v881_v27, %v885_v2 }
 0x254   :  { %4548 = vmatprep.mubr.bf16.mxu1 %v6672_v0  ;;  %4753 = vmatprep.mubr.bf16.mxu0 %v6672_v0  ;;  %v6136_v63 = vcombine.low %v1422_v34, %v1426_v36  ;;  %v6138_v3 = vcombine.low %v1423_v37, %v1427_v22 }
 0x256   :  { %4519 = vmatpush1.bf16.msra.mxu1 %v6088_v46  ;;  %4724 = vmatpush1.bf16.msra.mxu0 %v6090_v49  ;;  %v6137_v46 = vcombine.high %v1422_v34, %v1426_v36  ;;  %v6139_v49 = vcombine.high %v1423_v37, %v1427_v22  ;;  %v893_v34 = vld [vmem:[#allocation6 + $0x138] sm:$0xff]  ;;  %v5598_v37 = vcombine.low %v881_v27, %v885_v2  ;;  %v928_v2 = vld [vmem:[#allocation6 + $0x250] sm:$0xff] }
 0x257   :  { %4520 = vmatprep.subr.bf16.mxu1 %v6097_v57  ;;  %4725 = vmatprep.subr.bf16.mxu0 %v6099_v59  ;;  %v856_v57 = vld [vmem:[#allocation6 + $0x10] sm:$0xff] }
 0x258   :  { %v860_v59 = vld [vmem:[#allocation6 + $0x30] sm:$0xff] }
 0x259   :  { %v5572_v47 = vcombine.low %v856_v57, %v860_v59 }
 0x25a   :  { %4521 = vmatpush1.bf16.msra.mxu1 %v6096_v6  ;;  %4726 = vmatpush1.bf16.msra.mxu0 %v6098_v7  ;;  %v844_v6 = vmax.f32 %v831_v45, 0.0  ;;  %v5573_v7 = vcombine.high %v856_v57, %v860_v59  ;;  %v900_v45 = vld [vmem:[#allocation6 + $0x170] sm:$0xff] }
 0x25b   :  { %4522 = vmatprep.subr.bf16.mxu1 %v6105_v38  ;;  %4727 = vmatprep.subr.bf16.mxu0 %v6107_v39  ;;  %v5575_v38 = vcombine.high %v857_v29, %v861_v62  ;;  %v864_v39 = vld [vmem:[#allocation6 + $0x50] sm:$0xff] }
 0x25c   :  { %v6961_v48 = vpack.c.bf16 %v844_v6, %v844_v6  ;;  %v5580_v16 = vcombine.low %v864_v39, %v868_v40  ;;  %v905_v6 = vld [vmem:[#allocation6 + $0x198] sm:$0xff] }
 0x25e   :  { %4523 = vmatpush1.bf16.msra.mxu1 %v6104_v8  ;;  %4728 = vmatpush1.bf16.msra.mxu0 %v6106_v9  ;;  %v5574_v8 = vcombine.low %v857_v29, %v861_v62  ;;  %v5581_v9 = vcombine.high %v864_v39, %v868_v40 }
 0x25f   :  { %4524 = vmatprep.subr.bf16.mxu1 %v6113_v10  ;;  %4729 = vmatprep.subr.bf16.mxu0 %v6115_v11  ;;  %v5583_v10 = vcombine.high %v865_v21, %v869_v43  ;;  %v872_v11 = vld [vmem:[#allocation6 + $0x90] sm:$0xff] }
 0x260   :  { %v5588_v30 = vcombine.low %v872_v11, %v876_v12 }
 0x262   :  { %4525 = vmatpush1.bf16.msra.mxu1 %v6112_v17  ;;  %4730 = vmatpush1.bf16.msra.mxu0 %v6114_v19  ;;  %v5582_v17 = vcombine.low %v865_v21, %v869_v43  ;;  %v5589_v19 = vcombine.high %v872_v11, %v876_v12  ;;  %v912_v43 = vld [vmem:[#allocation6 + $0x1d0] sm:$0xff] }
 0x263   :  { %4526 = vmatprep.subr.bf16.mxu1 %v6121_v20  ;;  %4731 = vmatprep.subr.bf16.mxu0 %v6123_v23  ;;  %v5591_v20 = vcombine.high %v873_v14, %v877_v15  ;;  %v880_v23 = vld [vmem:[#allocation6 + $0xd0] sm:$0xff] }
 0x264   :  { %v5596_v36 = vcombine.low %v880_v23, %v884_v24 }
 0x266   :  { %4527 = vmatpush1.bf16.msra.mxu1 %v6120_v31  ;;  %4732 = vmatpush1.bf16.msra.mxu0 %v6122_v60  ;;  %v5590_v31 = vcombine.low %v873_v14, %v877_v15  ;;  %v5597_v60 = vcombine.high %v880_v23, %v884_v24  ;;  %v920_v15 = vld [vmem:[#allocation6 + $0x210] sm:$0xff] }
 0x267   :  { %4528 = vmatprep.subr.bf16.mxu1 %v6129_v32  ;;  %4733 = vmatprep.subr.bf16.mxu0 %v6131_v33  ;;  %v888_v32 = vld [vmem:[#allocation6 + $0x110] sm:$0xff] }
 0x268   :  { %v892_v33 = vld [vmem:[#allocation6 + $0x130] sm:$0xff] }
 0x269   :  { %v5605_v22 = vcombine.high %v888_v32, %v892_v33  ;;  %v5604_v57 = vcombine.low %v888_v32, %v892_v33 }
 0x26a   :  { %4529 = vmatpush1.bf16.msra.mxu1 %v6128_v42  ;;  %4734 = vmatpush1.bf16.msra.mxu0 %v6130_v44  ;;  %v896_v44 = vld [vmem:[#allocation6 + $0x150] sm:$0xff] }
 0x26b   :  { %4530 = vmatprep.subr.bf16.mxu1 %v6137_v46  ;;  %4735 = vmatprep.subr.bf16.mxu0 %v6139_v49  ;;  %v897_v46 = vld [vmem:[#allocation6 + $0x158] sm:$0xff]  ;;  %v5613_v29 = vcombine.high %v896_v44, %v900_v45 }
 0x26c   :  { %v901_v49 = vld [vmem:[#allocation6 + $0x178] sm:$0xff] }
 0x26d   :  { %v5615_v62 = vcombine.high %v897_v46, %v901_v49  ;;  %v5614_v39 = vcombine.low %v897_v46, %v901_v49  ;;  %v944_v49 = vld [vmem:[#allocation6 + $0x2d0] sm:$0xff] }
 0x26e   :  { %4531 = vmatpush1.bf16.msra.mxu1 %v6136_v63  ;;  %4736 = vmatpush1.bf16.msra.mxu0 %v6138_v3  ;;  %v904_v63 = vld [vmem:[#allocation6 + $0x190] sm:$0xff] }
 0x26f   :  { %4762 = vmatprep.subr.bf16.mxu1 %v5573_v7  ;;  %4967 = vmatprep.subr.bf16.mxu0 %v5575_v38  ;;  %v908_v3 = vld [vmem:[#allocation6 + $0x1b0] sm:$0xff]  ;;  %v909_v7 = vld [vmem:[#allocation6 + $0x1b8] sm:$0xff]  ;;  %v5612_v38 = vcombine.low %v896_v44, %v900_v45 }
 0x270   :  { %v5621_v40 = vcombine.high %v904_v63, %v908_v3  ;;  %v5623_v21 = vcombine.high %v905_v6, %v909_v7  ;;  %v5622_v11 = vcombine.low %v905_v6, %v909_v7  ;;  %v952_v7 = vld [vmem:[#allocation6 + $0x310] sm:$0xff] }
 0x271   :  { %4549 = vmatmul.mubr.bf16.vlgmr.msra.gmra.mrb[8].mxu1 %v6961_v48  ;;  %4754 = vmatmul.mubr.bf16.vlgmr.msra.gmra.mrb[12].mxu0 %v6961_v48 }
 0x272   :  { %4763 = vmatpush1.bf16.msra.mxu1 %v5572_v47  ;;  %4794 = vmatprep.mubr.bf16.mxu1 %v6881_v51  ;;  %v916_v47 = vld [vmem:[#allocation6 + $0x1f0] sm:$0xff] }
 0x273   :  { %4968 = vmatpush1.bf16.msra.mxu0 %v5574_v8  ;;  %4999 = vmatprep.mubr.bf16.mxu0 %v6881_v51  ;;  %v889_v51 = vld [vmem:[#allocation6 + $0x118] sm:$0xff]  ;;  %v5629_v12 = vcombine.high %v912_v43, %v916_v47 }
 0x274   :  { %4764 = vmatprep.subr.bf16.mxu1 %v5581_v9  ;;  %4969 = vmatprep.subr.bf16.mxu0 %v5583_v10  ;;  %v5607_v42 = vcombine.high %v889_v51, %v893_v34  ;;  %v5606_v59 = vcombine.low %v889_v51, %v893_v34  ;;  %v913_v8 = vld [vmem:[#allocation6 + $0x1d8] sm:$0xff]  ;;  %v5620_v10 = vcombine.low %v904_v63, %v908_v3  ;;  %v936_v34 = vld [vmem:[#allocation6 + $0x290] sm:$0xff] }
 0x275   :  { %v917_v9 = vld [vmem:[#allocation6 + $0x1f8] sm:$0xff] }
 0x276   :  { %4765 = vmatpush1.bf16.msra.mxu1 %v5580_v16  ;;  %v5631_v14 = vcombine.high %v913_v8, %v917_v9  ;;  %v924_v16 = vld [vmem:[#allocation6 + $0x230] sm:$0xff]  ;;  %v5630_v23 = vcombine.low %v913_v8, %v917_v9 }
 0x277   :  { %4970 = vmatpush1.bf16.msra.mxu0 %v5582_v17  ;;  %4766 = vmatprep.subr.bf16.mxu1 %v5589_v19  ;;  %v921_v17 = vld [vmem:[#allocation6 + $0x218] sm:$0xff]  ;;  %v5637_v24 = vcombine.high %v920_v15, %v924_v16  ;;  %v960_v9 = vld [vmem:[#allocation6 + $0x350] sm:$0xff] }
 0x278   :  { %4971 = vmatprep.subr.bf16.mxu0 %v5591_v20  ;;  %v925_v19 = vld [vmem:[#allocation6 + $0x238] sm:$0xff]  ;;  %v5628_v20 = vcombine.low %v912_v43, %v916_v47 }
 0x279   :  { %v5639_v27 = vcombine.high %v921_v17, %v925_v19  ;;  %v5638_v32 = vcombine.low %v921_v17, %v925_v19  ;;  %v968_v19 = vld [vmem:[#allocation6 + $0x390] sm:$0xff] }
 0x27a   :  { %4767 = vmatpush1.bf16.msra.mxu1 %v5588_v30  ;;  %v932_v30 = vld [vmem:[#allocation6 + $0x270] sm:$0xff] }
 0x27b   :  { %4972 = vmatpush1.bf16.msra.mxu0 %v5590_v31  ;;  %4768 = vmatprep.subr.bf16.mxu1 %v5597_v60  ;;  %v929_v31 = vld [vmem:[#allocation6 + $0x258] sm:$0xff]  ;;  %v5645_v33 = vcombine.high %v928_v2, %v932_v30 }
 0x27c   :  { %4973 = vmatprep.subr.bf16.mxu0 %v5599_v18  ;;  %v933_v60 = vld [vmem:[#allocation6 + $0x278] sm:$0xff]  ;;  %v5636_v18 = vcombine.low %v920_v15, %v924_v16 }
 0x27d   :  { %v5647_v51 = vcombine.high %v929_v31, %v933_v60  ;;  %v5646_v44 = vcombine.low %v929_v31, %v933_v60  ;;  %v976_v60 = vld [vmem:[#allocation6 + $0x3d0] sm:$0xff] }
 0x27e   :  { %4769 = vmatpush1.bf16.msra.mxu1 %v5596_v36  ;;  %v940_v36 = vld [vmem:[#allocation6 + $0x2b0] sm:$0xff] }
 0x27f   :  { %4974 = vmatpush1.bf16.msra.mxu0 %v5598_v37  ;;  %4770 = vmatprep.subr.bf16.mxu1 %v5605_v22  ;;  %v937_v37 = vld [vmem:[#allocation6 + $0x298] sm:$0xff]  ;;  %v5653_v45 = vcombine.high %v936_v34, %v940_v36 }
 0x280   :  { %4975 = vmatprep.subr.bf16.mxu0 %v5607_v42  ;;  %v941_v22 = vld [vmem:[#allocation6 + $0x2b8] sm:$0xff]  ;;  %v5644_v42 = vcombine.low %v928_v2, %v932_v30 }
 0x281   :  { %v5655_v46 = vcombine.high %v937_v37, %v941_v22  ;;  %v5654_v63 = vcombine.low %v937_v37, %v941_v22  ;;  %v984_v22 = vld [vmem:[#allocation6 + $0x410] sm:$0xff] }
 0x282   :  { %4771 = vmatpush1.bf16.msra.mxu1 %v5604_v57  ;;  %v948_v57 = vld [vmem:[#allocation6 + $0x2f0] sm:$0xff] }
 0x283   :  { %4976 = vmatpush1.bf16.msra.mxu0 %v5606_v59  ;;  %4772 = vmatprep.subr.bf16.mxu1 %v5613_v29  ;;  %v945_v59 = vld [vmem:[#allocation6 + $0x2d8] sm:$0xff]  ;;  %v5661_v3 = vcombine.high %v944_v49, %v948_v57 }
 0x284   :  { %4977 = vmatprep.subr.bf16.mxu0 %v5615_v62  ;;  %v949_v29 = vld [vmem:[#allocation6 + $0x2f8] sm:$0xff]  ;;  %v5652_v62 = vcombine.low %v936_v34, %v940_v36 }
 0x285   :  { %v5663_v6 = vcombine.high %v945_v59, %v949_v29  ;;  %v5662_v43 = vcombine.low %v945_v59, %v949_v29  ;;  %v992_v29 = vld [vmem:[#allocation6 + $0x450] sm:$0xff] }
 0x286   :  { %4773 = vmatpush1.bf16.msra.mxu1 %v5612_v38  ;;  %v956_v38 = vld [vmem:[#allocation6 + $0x330] sm:$0xff] }
 0x287   :  { %4978 = vmatpush1.bf16.msra.mxu0 %v5614_v39  ;;  %4774 = vmatprep.subr.bf16.mxu1 %v5621_v40  ;;  %v953_v39 = vld [vmem:[#allocation6 + $0x318] sm:$0xff]  ;;  %v5669_v47 = vcombine.high %v952_v7, %v956_v38 }
 0x288   :  { %4979 = vmatprep.subr.bf16.mxu0 %v5623_v21  ;;  %v957_v40 = vld [vmem:[#allocation6 + $0x338] sm:$0xff]  ;;  %v5660_v21 = vcombine.low %v944_v49, %v948_v57 }
 0x289   :  { %v5671_v8 = vcombine.high %v953_v39, %v957_v40  ;;  %v5670_v15 = vcombine.low %v953_v39, %v957_v40  ;;  %v1000_v39 = vld [vmem:[#allocation6 + $0x490] sm:$0xff] }
 0x28a   :  { %4775 = vmatpush1.bf16.msra.mxu1 %v5620_v10  ;;  %v964_v10 = vld [vmem:[#allocation6 + $0x370] sm:$0xff] }
 0x28b   :  { %4980 = vmatpush1.bf16.msra.mxu0 %v5622_v11  ;;  %4776 = vmatprep.subr.bf16.mxu1 %v5629_v12  ;;  %v961_v11 = vld [vmem:[#allocation6 + $0x358] sm:$0xff]  ;;  %v5677_v16 = vcombine.high %v960_v9, %v964_v10  ;;  %v1004_v40 = vld [vmem:[#allocation6 + $0x4b0] sm:$0xff] }
 0x28c   :  { %4981 = vmatprep.subr.bf16.mxu0 %v5631_v14  ;;  %v965_v12 = vld [vmem:[#allocation6 + $0x378] sm:$0xff]  ;;  %v5668_v14 = vcombine.low %v952_v7, %v956_v38 }
 0x28d   :  { %v5679_v17 = vcombine.high %v961_v11, %v965_v12  ;;  %v5678_v2 = vcombine.low %v961_v11, %v965_v12  ;;  %v1008_v12 = vld [vmem:[#allocation6 + $0x4d0] sm:$0xff] }
 0x28e   :  { %4777 = vmatpush1.bf16.msra.mxu1 %v5628_v20  ;;  %v972_v20 = vld [vmem:[#allocation6 + $0x3b0] sm:$0xff] }
 0x28f   :  { %4982 = vmatpush1.bf16.msra.mxu0 %v5630_v23  ;;  %4778 = vmatprep.subr.bf16.mxu1 %v5637_v24  ;;  %v969_v23 = vld [vmem:[#allocation6 + $0x398] sm:$0xff]  ;;  %v5685_v30 = vcombine.high %v968_v19, %v972_v20 }
 0x290   :  { %4983 = vmatprep.subr.bf16.mxu0 %v5639_v27  ;;  %v973_v24 = vld [vmem:[#allocation6 + $0x3b8] sm:$0xff]  ;;  %v5676_v27 = vcombine.low %v960_v9, %v964_v10  ;;  %v5717_v10 = vcombine.high %v1000_v39, %v1004_v40 }
 0x291   :  { %v5687_v31 = vcombine.high %v969_v23, %v973_v24  ;;  %v5686_v34 = vcombine.low %v969_v23, %v973_v24  ;;  %v1016_v23 = vld [vmem:[#allocation6 + $0x510] sm:$0xff] }
 0x292   :  { %4779 = vmatpush1.bf16.msra.mxu1 %v5636_v18  ;;  %v980_v18 = vld [vmem:[#allocation6 + $0x3f0] sm:$0xff] }
 0x293   :  { %4984 = vmatpush1.bf16.msra.mxu0 %v5638_v32  ;;  %4780 = vmatprep.subr.bf16.mxu1 %v5645_v33  ;;  %v977_v32 = vld [vmem:[#allocation6 + $0x3d8] sm:$0xff]  ;;  %v5693_v36 = vcombine.high %v976_v60, %v980_v18  ;;  %v1020_v24 = vld [vmem:[#allocation6 + $0x530] sm:$0xff] }
 0x294   :  { %4985 = vmatprep.subr.bf16.mxu0 %v5647_v51  ;;  %v981_v33 = vld [vmem:[#allocation6 + $0x3f8] sm:$0xff]  ;;  %v5684_v51 = vcombine.low %v968_v19, %v972_v20 }
 0x295   :  { %v5695_v37 = vcombine.high %v977_v32, %v981_v33  ;;  %v5694_v49 = vcombine.low %v977_v32, %v981_v33  ;;  %v1028_v32 = vld [vmem:[#allocation6 + $0x570] sm:$0xff]  ;;  %v1025_v33 = vld [vmem:[#allocation6 + $0x558] sm:$0xff] }
 0x296   :  { %4781 = vmatpush1.bf16.msra.mxu1 %v5644_v42  ;;  %v988_v42 = vld [vmem:[#allocation6 + $0x430] sm:$0xff] }
 0x297   :  { %4986 = vmatpush1.bf16.msra.mxu0 %v5646_v44  ;;  %4782 = vmatprep.subr.bf16.mxu1 %v5653_v45  ;;  %v985_v44 = vld [vmem:[#allocation6 + $0x418] sm:$0xff]  ;;  %v5701_v57 = vcombine.high %v984_v22, %v988_v42 }
 0x298   :  { %4987 = vmatprep.subr.bf16.mxu0 %v5655_v46  ;;  %v989_v45 = vld [vmem:[#allocation6 + $0x438] sm:$0xff]  ;;  %v5692_v46 = vcombine.low %v976_v60, %v980_v18  ;;  %v1024_v18 = vld [vmem:[#allocation6 + $0x550] sm:$0xff] }
 0x299   :  { %v5703_v59 = vcombine.high %v985_v44, %v989_v45  ;;  %v5702_v7 = vcombine.low %v985_v44, %v989_v45  ;;  %v1036_v44 = vld [vmem:[#allocation6 + $0x5b0] sm:$0xff]  ;;  %v1033_v45 = vld [vmem:[#allocation6 + $0x598] sm:$0xff] }
 0x29a   :  { %4783 = vmatpush1.bf16.msra.mxu1 %v5652_v62  ;;  %v996_v62 = vld [vmem:[#allocation6 + $0x470] sm:$0xff] }
 0x29b   :  { %4988 = vmatpush1.bf16.msra.mxu0 %v5654_v63  ;;  %4784 = vmatprep.subr.bf16.mxu1 %v5661_v3  ;;  %v5700_v63 = vcombine.low %v984_v22, %v988_v42  ;;  %v993_v3 = vld [vmem:[#allocation6 + $0x458] sm:$0xff]  ;;  %v5709_v38 = vcombine.high %v992_v29, %v996_v62  ;;  %v1032_v42 = vld [vmem:[#allocation6 + $0x590] sm:$0xff] }
 0x29c   :  { %4989 = vmatprep.subr.bf16.mxu0 %v5663_v6  ;;  %v997_v6 = vld [vmem:[#allocation6 + $0x478] sm:$0xff] }
 0x29d   :  { %v5710_v9 = vcombine.low %v993_v3, %v997_v6 }
 0x29e   :  { %4785 = vmatpush1.bf16.msra.mxu1 %v5660_v21  ;;  %v5711_v21 = vcombine.high %v993_v3, %v997_v6  ;;  %v1041_v3 = vld [vmem:[#allocation6 + $0x5d8] sm:$0xff] }
 0x29f   :  { %4990 = vmatpush1.bf16.msra.mxu0 %v5662_v43  ;;  %4786 = vmatprep.subr.bf16.mxu1 %v5669_v47  ;;  %v1001_v43 = vld [vmem:[#allocation6 + $0x498] sm:$0xff] }
 0x2a0   :  { %4991 = vmatprep.subr.bf16.mxu0 %v5671_v8  ;;  %v1005_v47 = vld [vmem:[#allocation6 + $0x4b8] sm:$0xff]  ;;  %v5708_v8 = vcombine.low %v992_v29, %v996_v62  ;;  %v1040_v62 = vld [vmem:[#allocation6 + $0x5d0] sm:$0xff] }
 0x2a1   :  { %v5719_v11 = vcombine.high %v1001_v43, %v1005_v47  ;;  %v1045_v6 = vld [vmem:[#allocation6 + $0x5f8] sm:$0xff] }
 0x2a2   :  { %4787 = vmatpush1.bf16.msra.mxu1 %v5668_v14  ;;  %v1012_v14 = vld [vmem:[#allocation6 + $0x4f0] sm:$0xff] }
 0x2a3   :  { %4992 = vmatpush1.bf16.msra.mxu0 %v5670_v15  ;;  %4788 = vmatprep.subr.bf16.mxu1 %v5677_v16  ;;  %v1009_v15 = vld [vmem:[#allocation6 + $0x4d8] sm:$0xff]  ;;  %v5725_v19 = vcombine.high %v1008_v12, %v1012_v14 }
 0x2a4   :  { %4993 = vmatprep.subr.bf16.mxu0 %v5679_v17  ;;  %v1013_v16 = vld [vmem:[#allocation6 + $0x4f8] sm:$0xff]  ;;  %v5716_v17 = vcombine.low %v1000_v39, %v1004_v40  ;;  %v5759_v40 = vcombine.high %v1041_v3, %v1045_v6 }
 0x2a5   :  { %v5727_v20 = vcombine.high %v1009_v15, %v1013_v16 }
 0x2a6   :  { %4789 = vmatpush1.bf16.msra.mxu1 %v5676_v27  ;;  %v1017_v27 = vld [vmem:[#allocation6 + $0x518] sm:$0xff] }
 0x2a7   :  { %4994 = vmatpush1.bf16.msra.mxu0 %v5678_v2  ;;  %4790 = vmatprep.subr.bf16.mxu1 %v5685_v30  ;;  %v1021_v2 = vld [vmem:[#allocation6 + $0x538] sm:$0xff]  ;;  %v5726_v30 = vcombine.low %v1009_v15, %v1013_v16  ;;  %v1060_v15 = vld [vmem:[#allocation6 + $0x670] sm:$0xff] }
 0x2a8   :  { %4995 = vmatprep.subr.bf16.mxu0 %v5687_v31  ;;  %v5733_v31 = vcombine.high %v1016_v23, %v1020_v24  ;;  %v5735_v60 = vcombine.high %v1017_v27, %v1021_v2  ;;  %v1057_v16 = vld [vmem:[#allocation6 + $0x658] sm:$0xff] }
 0x2aa   :  { %4791 = vmatpush1.bf16.msra.mxu1 %v5684_v51  ;;  %v1029_v51 = vld [vmem:[#allocation6 + $0x578] sm:$0xff] }
 0x2ab   :  { %4996 = vmatpush1.bf16.msra.mxu0 %v5686_v34  ;;  %4792 = vmatprep.subr.bf16.mxu1 %v5693_v36  ;;  %v5732_v34 = vcombine.low %v1016_v23, %v1020_v24  ;;  %v5734_v36 = vcombine.low %v1017_v27, %v1021_v2  ;;  %v5743_v22 = vcombine.high %v1025_v33, %v1029_v51  ;;  %v1064_v24 = vld [vmem:[#allocation6 + $0x690] sm:$0xff]  ;;  %v1065_v2 = vld [vmem:[#allocation6 + $0x698] sm:$0xff] }
 0x2ac   :  { %4997 = vmatprep.subr.bf16.mxu0 %v5695_v37  ;;  %v5741_v37 = vcombine.high %v1024_v18, %v1028_v32  ;;  %v1068_v27 = vld [vmem:[#allocation6 + $0x6b0] sm:$0xff] }
 0x2ae   :  { %4793 = vmatpush1.bf16.msra.mxu1 %v5692_v46  ;;  %v1037_v46 = vld [vmem:[#allocation6 + $0x5b8] sm:$0xff] }
 0x2af   :  { %4998 = vmatpush1.bf16.msra.mxu0 %v5694_v49  ;;  %4803 = vmatprep.subr.bf16.mxu1 %v5701_v57  ;;  %v5740_v49 = vcombine.low %v1024_v18, %v1028_v32  ;;  %v5742_v57 = vcombine.low %v1025_v33, %v1029_v51  ;;  %v5751_v29 = vcombine.high %v1033_v45, %v1037_v46  ;;  %v1072_v32 = vld [vmem:[#allocation6 + $0x6d0] sm:$0xff]  ;;  %v1073_v51 = vld [vmem:[#allocation6 + $0x6d8] sm:$0xff] }
 0x2b0   :  { %5008 = vmatprep.subr.bf16.mxu0 %v5703_v59  ;;  %v5749_v59 = vcombine.high %v1032_v42, %v1036_v44  ;;  %v1076_v33 = vld [vmem:[#allocation6 + $0x6f0] sm:$0xff] }
 0x2b1   :  { %4795 = vmatmul.mubr.bf16.vlgmr.msra.gmra.mrb[12].mxu1 %v6883_v52 }
 0x2b2   :  { %5000 = vmatmul.mubr.bf16.vlgmr.msra.gmra.mrb[16].mxu0 %v6883_v52  ;;  %4804 = vmatpush1.bf16.msra.mxu1 %v5700_v63  ;;  %v5718_v52 = vcombine.low %v1001_v43, %v1005_v47  ;;  %v1044_v63 = vld [vmem:[#allocation6 + $0x5f0] sm:$0xff]  ;;  %v1049_v47 = vld [vmem:[#allocation6 + $0x618] sm:$0xff] }
 0x2b3   :  { %4835 = vmatprep.mubr.bf16.mxu1 %v6900_v13  ;;  %5009 = vmatpush1.bf16.msra.mxu0 %v5702_v7  ;;  %v5748_v7 = vcombine.low %v1032_v42, %v1036_v44  ;;  %v5757_v39 = vcombine.high %v1040_v62, %v1044_v63  ;;  %v1052_v43 = vld [vmem:[#allocation6 + $0x630] sm:$0xff] }
 0x2b4   :  { %5040 = vmatprep.mubr.bf16.mxu0 %v6900_v13  ;;  %4805 = vmatprep.subr.bf16.mxu1 %v5709_v38  ;;  %v5724_v13 = vcombine.low %v1008_v12, %v1012_v14  ;;  %v5750_v38 = vcombine.low %v1033_v45, %v1037_v46  ;;  %v1056_v14 = vld [vmem:[#allocation6 + $0x650] sm:$0xff]  ;;  %v1081_v46 = vld [vmem:[#allocation6 + $0x718] sm:$0xff] }
 0x2b5   :  { %5010 = vmatprep.subr.bf16.mxu0 %v5711_v21  ;;  %v1048_v21 = vld [vmem:[#allocation6 + $0x610] sm:$0xff] }
 0x2b6   :  { %4806 = vmatpush1.bf16.msra.mxu1 %v5708_v8  ;;  %v1053_v8 = vld [vmem:[#allocation6 + $0x638] sm:$0xff]  ;;  %v1080_v44 = vld [vmem:[#allocation6 + $0x710] sm:$0xff] }
 0x2b7   :  { %5011 = vmatpush1.bf16.msra.mxu0 %v5710_v9  ;;  %4807 = vmatprep.subr.bf16.mxu1 %v5717_v10  ;;  %v5756_v9 = vcombine.low %v1040_v62, %v1044_v63  ;;  %v5758_v10 = vcombine.low %v1041_v3, %v1045_v6  ;;  %v5767_v12 = vcombine.high %v1049_v47, %v1053_v8  ;;  %v1084_v45 = vld [vmem:[#allocation6 + $0x730] sm:$0xff]  ;;  %v1089_v6 = vld [vmem:[#allocation6 + $0x758] sm:$0xff] }
 0x2b8   :  { %5012 = vmatprep.subr.bf16.mxu0 %v5719_v11  ;;  %v5765_v11 = vcombine.high %v1048_v21, %v1052_v43  ;;  %v1088_v63 = vld [vmem:[#allocation6 + $0x750] sm:$0xff] }
 0x2b9   :  { %v1092_v3 = vld [vmem:[#allocation6 + $0x770] sm:$0xff] }
 0x2ba   :  { %4808 = vmatpush1.bf16.msra.mxu1 %v5716_v17  ;;  %v1061_v17 = vld [vmem:[#allocation6 + $0x678] sm:$0xff] }
 0x2bb   :  { %5013 = vmatpush1.bf16.msra.mxu0 %v5718_v52  ;;  %4809 = vmatprep.subr.bf16.mxu1 %v5725_v19  ;;  %v5764_v52 = vcombine.low %v1048_v21, %v1052_v43  ;;  %v5766_v19 = vcombine.low %v1049_v47, %v1053_v8  ;;  %v5775_v23 = vcombine.high %v1057_v16, %v1061_v17  ;;  %v1096_v43 = vld [vmem:[#allocation6 + $0x790] sm:$0xff]  ;;  %v1097_v8 = vld [vmem:[#allocation6 + $0x798] sm:$0xff] }
 0x2bc   :  { %5014 = vmatprep.subr.bf16.mxu0 %v5727_v20  ;;  %v5773_v20 = vcombine.high %v1056_v14, %v1060_v15  ;;  %v1100_v47 = vld [vmem:[#allocation6 + $0x7b0] sm:$0xff] }
 0x2be   :  { %4810 = vmatpush1.bf16.msra.mxu1 %v5724_v13  ;;  %v1069_v13 = vld [vmem:[#allocation6 + $0x6b8] sm:$0xff] }
 0x2bf   :  { %5015 = vmatpush1.bf16.msra.mxu0 %v5726_v30  ;;  %4811 = vmatprep.subr.bf16.mxu1 %v5733_v31  ;;  %v5772_v30 = vcombine.low %v1056_v14, %v1060_v15  ;;  %v5774_v31 = vcombine.low %v1057_v16, %v1061_v17  ;;  %v5783_v18 = vcombine.high %v1065_v2, %v1069_v13  ;;  %v1104_v15 = vld [vmem:[#allocation6 + $0x7d0] sm:$0xff]  ;;  %v1105_v17 = vld [vmem:[#allocation6 + $0x7d8] sm:$0xff] }
 0x2c0   :  { %5016 = vmatprep.subr.bf16.mxu0 %v5735_v60  ;;  %v5781_v60 = vcombine.high %v1064_v24, %v1068_v27  ;;  %v1108_v16 = vld [vmem:[#allocation6 + $0x7f0] sm:$0xff] }
 0x2c2   :  { %4812 = vmatpush1.bf16.msra.mxu1 %v5732_v34  ;;  %v1077_v34 = vld [vmem:[#allocation6 + $0x6f8] sm:$0xff] }
 0x2c3   :  { %5017 = vmatpush1.bf16.msra.mxu0 %v5734_v36  ;;  %4813 = vmatprep.subr.bf16.mxu1 %v5741_v37  ;;  %v5780_v36 = vcombine.low %v1064_v24, %v1068_v27  ;;  %v5782_v37 = vcombine.low %v1065_v2, %v1069_v13  ;;  %v5791_v42 = vcombine.high %v1073_v51, %v1077_v34  ;;  %v1112_v27 = vld [vmem:[#allocation6 + $0x810] sm:$0xff]  ;;  %v1113_v13 = vld [vmem:[#allocation6 + $0x818] sm:$0xff] }
 0x2c4   :  { %5018 = vmatprep.subr.bf16.mxu0 %v5743_v22  ;;  %v5789_v22 = vcombine.high %v1072_v32, %v1076_v33  ;;  %v1116_v2 = vld [vmem:[#allocation6 + $0x830] sm:$0xff] }
 0x2c6   :  { %4814 = vmatpush1.bf16.msra.mxu1 %v5740_v49  ;;  %v1085_v49 = vld [vmem:[#allocation6 + $0x738] sm:$0xff] }
 0x2c7   :  { %5019 = vmatpush1.bf16.msra.mxu0 %v5742_v57  ;;  %4815 = vmatprep.subr.bf16.mxu1 %v5749_v59  ;;  %v5788_v57 = vcombine.low %v1072_v32, %v1076_v33  ;;  %v5790_v59 = vcombine.low %v1073_v51, %v1077_v34  ;;  %v5799_v62 = vcombine.high %v1081_v46, %v1085_v49  ;;  %v1120_v33 = vld [vmem:[#allocation6 + $0x850] sm:$0xff] }
 0x2c8   :  { %5020 = vmatprep.subr.bf16.mxu0 %v5751_v29  ;;  %v5797_v29 = vcombine.high %v1080_v44, %v1084_v45  ;;  %v1124_v51 = vld [vmem:[#allocation6 + $0x870] sm:$0xff]  ;;  %v5828_v34 = vcombine.low %v1112_v27, %v1116_v2 }
 0x2ca   :  { %4816 = vmatpush1.bf16.msra.mxu1 %v5748_v7  ;;  %v1093_v7 = vld [vmem:[#allocation6 + $0x778] sm:$0xff] }
 0x2cb   :  { %5021 = vmatpush1.bf16.msra.mxu0 %v5750_v38  ;;  %4817 = vmatprep.subr.bf16.mxu1 %v5757_v39  ;;  %v5796_v38 = vcombine.low %v1080_v44, %v1084_v45  ;;  %v5798_v39 = vcombine.low %v1081_v46, %v1085_v49  ;;  %v5807_v21 = vcombine.high %v1089_v6, %v1093_v7  ;;  %v1128_v44 = vld [vmem:[#allocation6 + $0x890] sm:$0xff]  ;;  %v1129_v49 = vld [vmem:[#allocation6 + $0x898] sm:$0xff] }
 0x2cc   :  { %5022 = vmatprep.subr.bf16.mxu0 %v5759_v40  ;;  %v5805_v40 = vcombine.high %v1088_v63, %v1092_v3  ;;  %v1132_v45 = vld [vmem:[#allocation6 + $0x8b0] sm:$0xff] }
 0x2ce   :  { %4818 = vmatpush1.bf16.msra.mxu1 %v5756_v9  ;;  %v1101_v9 = vld [vmem:[#allocation6 + $0x7b8] sm:$0xff] }
 0x2cf   :  { %5023 = vmatpush1.bf16.msra.mxu0 %v5758_v10  ;;  %4819 = vmatprep.subr.bf16.mxu1 %v5765_v11  ;;  %v5804_v10 = vcombine.low %v1088_v63, %v1092_v3  ;;  %v5806_v11 = vcombine.low %v1089_v6, %v1093_v7  ;;  %v5815_v14 = vcombine.high %v1097_v8, %v1101_v9  ;;  %v1136_v3 = vld [vmem:[#allocation6 + $0x8d0] sm:$0xff]  ;;  %v1137_v7 = vld [vmem:[#allocation6 + $0x8d8] sm:$0xff] }
 0x2d0   :  { %5024 = vmatprep.subr.bf16.mxu0 %v5767_v12  ;;  %v5813_v12 = vcombine.high %v1096_v43, %v1100_v47  ;;  %v1140_v6 = vld [vmem:[#allocation6 + $0x8f0] sm:$0xff] }
 0x2d2   :  { %4820 = vmatpush1.bf16.msra.mxu1 %v5764_v52  ;;  %v1109_v52 = vld [vmem:[#allocation6 + $0x7f8] sm:$0xff] }
 0x2d3   :  { %5025 = vmatpush1.bf16.msra.mxu0 %v5766_v19  ;;  %4821 = vmatprep.subr.bf16.mxu1 %v5773_v20  ;;  %v5812_v19 = vcombine.low %v1096_v43, %v1100_v47  ;;  %v5814_v20 = vcombine.low %v1097_v8, %v1101_v9  ;;  %v5823_v24 = vcombine.high %v1105_v17, %v1109_v52  ;;  %v1144_v43 = vld [vmem:[#allocation6 + $0x910] sm:$0xff]  ;;  %v1145_v8 = vld [vmem:[#allocation6 + $0x918] sm:$0xff] }
 0x2d4   :  { %5026 = vmatprep.subr.bf16.mxu0 %v5775_v23  ;;  %v5821_v23 = vcombine.high %v1104_v15, %v1108_v16  ;;  %v1148_v47 = vld [vmem:[#allocation6 + $0x930] sm:$0xff]  ;;  %v1149_v9 = vld [vmem:[#allocation6 + $0x938] sm:$0xff] }
 0x2d6   :  { %4822 = vmatpush1.bf16.msra.mxu1 %v5772_v30  ;;  %v1117_v30 = vld [vmem:[#allocation6 + $0x838] sm:$0xff] }
 0x2d7   :  { %5027 = vmatpush1.bf16.msra.mxu0 %v5774_v31  ;;  %4823 = vmatprep.subr.bf16.mxu1 %v5781_v60  ;;  %v5820_v31 = vcombine.low %v1104_v15, %v1108_v16  ;;  %v5822_v60 = vcombine.low %v1105_v17, %v1109_v52  ;;  %v5831_v32 = vcombine.high %v1113_v13, %v1117_v30  ;;  %v1156_v15 = vld [vmem:[#allocation6 + $0x970] sm:$0xff]  ;;  %v1153_v16 = vld [vmem:[#allocation6 + $0x958] sm:$0xff] }
 0x2d8   :  { %5028 = vmatprep.subr.bf16.mxu0 %v5783_v18  ;;  %v5829_v18 = vcombine.high %v1112_v27, %v1116_v2  ;;  %v1157_v17 = vld [vmem:[#allocation6 + $0x978] sm:$0xff]  ;;  %v5860_v52 = vcombine.low %v1144_v43, %v1148_v47  ;;  %v1164_v27 = vld [vmem:[#allocation6 + $0x9b0] sm:$0xff] }
 0x2d9   :  { %v1161_v2 = vld [vmem:[#allocation6 + $0x998] sm:$0xff] }
 0x2da   :  { %4824 = vmatpush1.bf16.msra.mxu1 %v5780_v36  ;;  %v1121_v36 = vld [vmem:[#allocation6 + $0x858] sm:$0xff] }
 0x2db   :  { %5029 = vmatpush1.bf16.msra.mxu0 %v5782_v37  ;;  %4825 = vmatprep.subr.bf16.mxu1 %v5789_v22  ;;  %v1125_v37 = vld [vmem:[#allocation6 + $0x878] sm:$0xff]  ;;  %v5830_v22 = vcombine.low %v1113_v13, %v1117_v30 }
 0x2dc   :  { %5030 = vmatprep.subr.bf16.mxu0 %v5791_v42  ;;  %v5837_v42 = vcombine.high %v1120_v33, %v1124_v51  ;;  %v5839_v46 = vcombine.high %v1121_v36, %v1125_v37  ;;  %v1165_v13 = vld [vmem:[#allocation6 + $0x9b8] sm:$0xff] }
 0x2de   :  { %4826 = vmatpush1.bf16.msra.mxu1 %v5788_v57  ;;  %v1133_v57 = vld [vmem:[#allocation6 + $0x8b8] sm:$0xff] }
 0x2df   :  { %5031 = vmatpush1.bf16.msra.mxu0 %v5790_v59  ;;  %4827 = vmatprep.subr.bf16.mxu1 %v5797_v29  ;;  %v5836_v59 = vcombine.low %v1120_v33, %v1124_v51  ;;  %v5838_v29 = vcombine.low %v1121_v36, %v1125_v37  ;;  %v5847_v63 = vcombine.high %v1129_v49, %v1133_v57  ;;  %v1172_v33 = vld [vmem:[#allocation6 + $0x9f0] sm:$0xff]  ;;  %v1169_v51 = vld [vmem:[#allocation6 + $0x9d8] sm:$0xff] }
 0x2e0   :  { %5032 = vmatprep.subr.bf16.mxu0 %v5799_v62  ;;  %v5845_v62 = vcombine.high %v1128_v44, %v1132_v45  ;;  %v5878_v37 = vcombine.low %v1161_v2, %v1165_v13 }
 0x2e2   :  { %4828 = vmatpush1.bf16.msra.mxu1 %v5796_v38  ;;  %v1141_v38 = vld [vmem:[#allocation6 + $0x8f8] sm:$0xff] }
 0x2e3   :  { %5033 = vmatpush1.bf16.msra.mxu0 %v5798_v39  ;;  %4829 = vmatprep.subr.bf16.mxu1 %v5805_v40  ;;  %v5844_v39 = vcombine.low %v1128_v44, %v1132_v45  ;;  %v5853_v40 = vcombine.high %v1136_v3, %v1140_v6  ;;  %v1176_v44 = vld [vmem:[#allocation6 + $0xa10] sm:$0xff] }
 0x2e4   :  { %5034 = vmatprep.subr.bf16.mxu0 %v5807_v21  ;;  %v5855_v21 = vcombine.high %v1137_v7, %v1141_v38  ;;  %v1180_v45 = vld [vmem:[#allocation6 + $0xa30] sm:$0xff] }
 0x2e6   :  { %4830 = vmatpush1.bf16.msra.mxu1 %v5804_v10  ;;  %v5854_v10 = vcombine.low %v1137_v7, %v1141_v38  ;;  %v1189_v7 = vld [vmem:[#allocation6 + $0xa78] sm:$0xff]  ;;  %v5892_v38 = vcombine.low %v1176_v44, %v1180_v45 }
 0x2e7   :  { %5035 = vmatpush1.bf16.msra.mxu0 %v5806_v11  ;;  %4831 = vmatprep.subr.bf16.mxu1 %v5813_v12  ;;  %v5861_v11 = vcombine.high %v1144_v43, %v1148_v47  ;;  %v5863_v12 = vcombine.high %v1145_v8, %v1149_v9  ;;  %v1196_v43 = vld [vmem:[#allocation6 + $0xab0] sm:$0xff]  ;;  %v1193_v47 = vld [vmem:[#allocation6 + $0xa98] sm:$0xff] }
 0x2e8   :  { %5036 = vmatprep.subr.bf16.mxu0 %v5815_v14  ;;  %v1152_v14 = vld [vmem:[#allocation6 + $0x950] sm:$0xff] }
 0x2e9   :  { %v5868_v30 = vcombine.low %v1152_v14, %v1156_v15 }
 0x2ea   :  { %4832 = vmatpush1.bf16.msra.mxu1 %v5812_v19  ;;  %v5862_v19 = vcombine.low %v1145_v8, %v1149_v9  ;;  %v1197_v8 = vld [vmem:[#allocation6 + $0xab8] sm:$0xff] }
 0x2eb   :  { %5037 = vmatpush1.bf16.msra.mxu0 %v5814_v20  ;;  %4833 = vmatprep.subr.bf16.mxu1 %v5821_v23  ;;  %v5869_v20 = vcombine.high %v1152_v14, %v1156_v15  ;;  %v5871_v23 = vcombine.high %v1153_v16, %v1157_v17  ;;  %v1204_v14 = vld [vmem:[#allocation6 + $0xaf0] sm:$0xff]  ;;  %v1201_v15 = vld [vmem:[#allocation6 + $0xad8] sm:$0xff] }
 0x2ec   :  { %5038 = vmatprep.subr.bf16.mxu0 %v5823_v24  ;;  %v1160_v24 = vld [vmem:[#allocation6 + $0x990] sm:$0xff] }
 0x2ed   :  { %v5876_v36 = vcombine.low %v1160_v24, %v1164_v27 }
 0x2ee   :  { %4834 = vmatpush1.bf16.msra.mxu1 %v5820_v31  ;;  %v5870_v31 = vcombine.low %v1153_v16, %v1157_v17  ;;  %v1205_v16 = vld [vmem:[#allocation6 + $0xaf8] sm:$0xff] }
 0x2ef   :  { %5039 = vmatpush1.bf16.msra.mxu0 %v5822_v60  ;;  %4844 = vmatprep.subr.bf16.mxu1 %v5829_v18  ;;  %v5877_v60 = vcombine.high %v1160_v24, %v1164_v27  ;;  %v5879_v18 = vcombine.high %v1161_v2, %v1165_v13  ;;  %v1212_v24 = vld [vmem:[#allocation6 + $0xb30] sm:$0xff]  ;;  %v1209_v27 = vld [vmem:[#allocation6 + $0xb18] sm:$0xff] }
 0x2f0   :  { %5049 = vmatprep.subr.bf16.mxu0 %v5831_v32  ;;  %v1168_v32 = vld [vmem:[#allocation6 + $0x9d0] sm:$0xff]  ;;  %v1213_v2 = vld [vmem:[#allocation6 + $0xb38] sm:$0xff] }
 0x2f1   :  { %4836 = vmatmul.mubr.bf16.vlgmr.msra.gmra.mrb[12].mxu1 %v6924_v61 }
 0x2f2   :  { %5041 = vmatmul.mubr.bf16.vlgmr.msra.gmra.mrb[16].mxu0 %v6924_v61  ;;  %4845 = vmatpush1.bf16.msra.mxu1 %v5828_v34  ;;  %v5846_v61 = vcombine.low %v1129_v49, %v1133_v57  ;;  %v1173_v34 = vld [vmem:[#allocation6 + $0x9f8] sm:$0xff]  ;;  %v5884_v57 = vcombine.low %v1168_v32, %v1172_v33 }
 0x2f3   :  { %4876 = vmatprep.mubr.bf16.mxu1 %v6926_v58  ;;  %5050 = vmatpush1.bf16.msra.mxu0 %v5830_v22  ;;  %v5885_v22 = vcombine.high %v1168_v32, %v1172_v33  ;;  %v1181_v49 = vld [vmem:[#allocation6 + $0xa38] sm:$0xff]  ;;  %v1220_v32 = vld [vmem:[#allocation6 + $0xb70] sm:$0xff] }
 0x2f4   :  { %5081 = vmatprep.mubr.bf16.mxu0 %v6926_v58  ;;  %4846 = vmatprep.subr.bf16.mxu1 %v5837_v42  ;;  %v5852_v58 = vcombine.low %v1136_v3, %v1140_v6  ;;  %v5887_v42 = vcombine.high %v1169_v51, %v1173_v34  ;;  %v1188_v3 = vld [vmem:[#allocation6 + $0xa70] sm:$0xff]  ;;  %v1185_v6 = vld [vmem:[#allocation6 + $0xa58] sm:$0xff] }
 0x2f5   :  { %5051 = vmatprep.subr.bf16.mxu0 %v5839_v46  ;;  %v1177_v46 = vld [vmem:[#allocation6 + $0xa18] sm:$0xff] }
 0x2f6   :  { %4847 = vmatpush1.bf16.msra.mxu1 %v5836_v59  ;;  %v5886_v59 = vcombine.low %v1169_v51, %v1173_v34  ;;  %v1217_v33 = vld [vmem:[#allocation6 + $0xb58] sm:$0xff] }
 0x2f7   :  { %5052 = vmatpush1.bf16.msra.mxu0 %v5838_v29  ;;  %4848 = vmatprep.subr.bf16.mxu1 %v5845_v62  ;;  %v5893_v29 = vcombine.high %v1176_v44, %v1180_v45  ;;  %v5895_v62 = vcombine.high %v1177_v46, %v1181_v49  ;;  %v1221_v51 = vld [vmem:[#allocation6 + $0xb78] sm:$0xff]  ;;  %v1228_v44 = vld [vmem:[#allocation6 + $0xbb0] sm:$0xff] }
 0x2f8   :  { %5053 = vmatprep.subr.bf16.mxu0 %v5847_v63  ;;  %v1184_v63 = vld [vmem:[#allocation6 + $0xa50] sm:$0xff]  ;;  %v1225_v45 = vld [vmem:[#allocation6 + $0xb98] sm:$0xff] }
 0x2f9   :  { %v5900_v9 = vcombine.low %v1184_v63, %v1188_v3 }
 0x2fa   :  { %4849 = vmatpush1.bf16.msra.mxu1 %v5844_v39  ;;  %v5894_v39 = vcombine.low %v1177_v46, %v1181_v49  ;;  %v1229_v46 = vld [vmem:[#allocation6 + $0xbb8] sm:$0xff] }
 0x2fb   :  { %5054 = vmatpush1.bf16.msra.mxu0 %v5846_v61  ;;  %4850 = vmatprep.subr.bf16.mxu1 %v5853_v40  ;;  %v5901_v61 = vcombine.high %v1184_v63, %v1188_v3  ;;  %v5903_v40 = vcombine.high %v1185_v6, %v1189_v7  ;;  %v1236_v63 = vld [vmem:[#allocation6 + $0xbf0] sm:$0xff]  ;;  %v1233_v3 = vld [vmem:[#allocation6 + $0xbd8] sm:$0xff] }
 0x2fc   :  { %5055 = vmatprep.subr.bf16.mxu0 %v5855_v21  ;;  %v1192_v21 = vld [vmem:[#allocation6 + $0xa90] sm:$0xff] }
 0x2fd   :  { %v5908_v17 = vcombine.low %v1192_v21, %v1196_v43 }
 0x2fe   :  { %4851 = vmatpush1.bf16.msra.mxu1 %v5852_v58  ;;  %v5902_v58 = vcombine.low %v1185_v6, %v1189_v7  ;;  %v1237_v6 = vld [vmem:[#allocation6 + $0xbf8] sm:$0xff] }
 0x2ff   :  { %5056 = vmatpush1.bf16.msra.mxu0 %v5854_v10  ;;  %4852 = vmatprep.subr.bf16.mxu1 %v5861_v11  ;;  %v5909_v10 = vcombine.high %v1192_v21, %v1196_v43  ;;  %v5911_v11 = vcombine.high %v1193_v47, %v1197_v8  ;;  %v1244_v21 = vld [vmem:[#allocation6 + $0xc30] sm:$0xff]  ;;  %v1241_v43 = vld [vmem:[#allocation6 + $0xc18] sm:$0xff] }
 0x300   :  { %5057 = vmatprep.subr.bf16.mxu0 %v5863_v12  ;;  %v1200_v12 = vld [vmem:[#allocation6 + $0xad0] sm:$0xff] }
 0x301   :  { %v5916_v13 = vcombine.low %v1200_v12, %v1204_v14 }
 0x302   :  { %4853 = vmatpush1.bf16.msra.mxu1 %v5860_v52  ;;  %v5910_v52 = vcombine.low %v1193_v47, %v1197_v8  ;;  %v1245_v47 = vld [vmem:[#allocation6 + $0xc38] sm:$0xff] }
 0x303   :  { %5058 = vmatpush1.bf16.msra.mxu0 %v5862_v19  ;;  %4854 = vmatprep.subr.bf16.mxu1 %v5869_v20  ;;  %v5917_v19 = vcombine.high %v1200_v12, %v1204_v14  ;;  %v5919_v20 = vcombine.high %v1201_v15, %v1205_v16  ;;  %v1252_v12 = vld [vmem:[#allocation6 + $0xc70] sm:$0xff] }
 0x304   :  { %5059 = vmatprep.subr.bf16.mxu0 %v5871_v23  ;;  %v1208_v23 = vld [vmem:[#allocation6 + $0xb10] sm:$0xff] }
 0x305   :  { %v5924_v34 = vcombine.low %v1208_v23, %v1212_v24 }
 0x306   :  { %4855 = vmatpush1.bf16.msra.mxu1 %v5868_v30  ;;  %v5918_v30 = vcombine.low %v1201_v15, %v1205_v16  ;;  %v1249_v15 = vld [vmem:[#allocation6 + $0xc58] sm:$0xff] }
 0x307   :  { %5060 = vmatpush1.bf16.msra.mxu0 %v5870_v31  ;;  %4856 = vmatprep.subr.bf16.mxu1 %v5877_v60  ;;  %v5925_v31 = vcombine.high %v1208_v23, %v1212_v24  ;;  %v5927_v60 = vcombine.high %v1209_v27, %v1213_v2  ;;  %v1253_v16 = vld [vmem:[#allocation6 + $0xc78] sm:$0xff] }
 0x308   :  { %5061 = vmatprep.subr.bf16.mxu0 %v5879_v18  ;;  %v1216_v18 = vld [vmem:[#allocation6 + $0xb50] sm:$0xff]  ;;  %v5967_v23 = vcombine.high %v1249_v15, %v1253_v16  ;;  %v1257_v24 = vld [vmem:[#allocation6 + $0xc98] sm:$0xff] }
 0x309   :  { %v5932_v49 = vcombine.low %v1216_v18, %v1220_v32 }
 0x30a   :  { %4857 = vmatpush1.bf16.msra.mxu1 %v5876_v36  ;;  %v5926_v36 = vcombine.low %v1209_v27, %v1213_v2  ;;  %v1261_v27 = vld [vmem:[#allocation6 + $0xcb8] sm:$0xff] }
 0x30b   :  { %5062 = vmatpush1.bf16.msra.mxu0 %v5878_v37  ;;  %4858 = vmatprep.subr.bf16.mxu1 %v5885_v22  ;;  %v5933_v37 = vcombine.high %v1216_v18, %v1220_v32  ;;  %v5935_v22 = vcombine.high %v1217_v33, %v1221_v51  ;;  %v1268_v18 = vld [vmem:[#allocation6 + $0xcf0] sm:$0xff]  ;;  %v1265_v32 = vld [vmem:[#allocation6 + $0xcd8] sm:$0xff] }
 0x30c   :  { %5063 = vmatprep.subr.bf16.mxu0 %v5887_v42  ;;  %v1224_v42 = vld [vmem:[#allocation6 + $0xb90] sm:$0xff] }
 0x30d   :  { %v5940_v7 = vcombine.low %v1224_v42, %v1228_v44 }
 0x30e   :  { %4859 = vmatpush1.bf16.msra.mxu1 %v5884_v57  ;;  %v5934_v57 = vcombine.low %v1217_v33, %v1221_v51  ;;  %v1269_v33 = vld [vmem:[#allocation6 + $0xcf8] sm:$0xff] }
 0x30f   :  { %5064 = vmatpush1.bf16.msra.mxu0 %v5886_v59  ;;  %4860 = vmatprep.subr.bf16.mxu1 %v5893_v29  ;;  %v5941_v59 = vcombine.high %v1224_v42, %v1228_v44  ;;  %v5943_v29 = vcombine.high %v1225_v45, %v1229_v46  ;;  %v1273_v42 = vld [vmem:[#allocation6 + $0xd18] sm:$0xff] }
 0x310   :  { %5065 = vmatprep.subr.bf16.mxu0 %v5895_v62  ;;  %v1232_v62 = vld [vmem:[#allocation6 + $0xbd0] sm:$0xff]  ;;  %v1277_v44 = vld [vmem:[#allocation6 + $0xd38] sm:$0xff] }
 0x311   :  { %v5948_v8 = vcombine.low %v1232_v62, %v1236_v63 }
 0x312   :  { %4861 = vmatpush1.bf16.msra.mxu1 %v5892_v38  ;;  %v5942_v38 = vcombine.low %v1225_v45, %v1229_v46  ;;  %v5982_v45 = vcombine.low %v1265_v32, %v1269_v33 }
 0x313   :  { %5066 = vmatpush1.bf16.msra.mxu0 %v5894_v39  ;;  %4862 = vmatprep.subr.bf16.mxu1 %v5901_v61  ;;  %v5949_v39 = vcombine.high %v1232_v62, %v1236_v63  ;;  %v5951_v61 = vcombine.high %v1233_v3, %v1237_v6  ;;  %v1285_v62 = vld [vmem:[#allocation6 + $0xd78] sm:$0xff] }
 0x314   :  { %5067 = vmatprep.subr.bf16.mxu0 %v5903_v40  ;;  %v1240_v40 = vld [vmem:[#allocation6 + $0xc10] sm:$0xff] }
 0x315   :  { %v5956_v14 = vcombine.low %v1240_v40, %v1244_v21 }
 0x316   :  { %4863 = vmatpush1.bf16.msra.mxu1 %v5900_v9  ;;  %v5950_v9 = vcombine.low %v1233_v3, %v1237_v6  ;;  %v6979_v3 = vld [vmem:[#allocation7] sm:$0xff]  ;;  %v5990_v6 = vcombine.low %v1273_v42, %v1277_v44 }
 0x317   :  { %5068 = vmatpush1.bf16.msra.mxu0 %v5902_v58  ;;  %4864 = vmatprep.subr.bf16.mxu1 %v5909_v10  ;;  %v5957_v58 = vcombine.high %v1240_v40, %v1244_v21  ;;  %v5959_v10 = vcombine.high %v1241_v43, %v1245_v47  ;;  %v1435_v40 = vrot.slane %v6979_v3, %v221_v26 }
 0x318   :  { %5069 = vmatprep.subr.bf16.mxu0 %v5911_v11  ;;  %v1248_v11 = vld [vmem:[#allocation6 + $0xc50] sm:$0xff]  ;;  %v1443_v21 = vrot.slane %v6979_v3, %v229_v55 }
 0x319   :  { %v5964_v2 = vcombine.low %v1248_v11, %v1252_v12 }
 0x31a   :  { %4865 = vmatpush1.bf16.msra.mxu1 %v5908_v17  ;;  %v5958_v17 = vcombine.low %v1241_v43, %v1245_v47  ;;  %v1289_v43 = vld [vmem:[#allocation6 + $0xd98] sm:$0xff] }
 0x31b   :  { %5070 = vmatpush1.bf16.msra.mxu0 %v5910_v52  ;;  %4866 = vmatprep.subr.bf16.mxu1 %v5917_v19  ;;  %v5965_v52 = vcombine.high %v1248_v11, %v1252_v12  ;;  %v1256_v19 = vld [vmem:[#allocation6 + $0xc90] sm:$0xff]  ;;  %v1293_v47 = vld [vmem:[#allocation6 + $0xdb8] sm:$0xff] }
 0x31c   :  { %5071 = vmatprep.subr.bf16.mxu0 %v5919_v20  ;;  %v1260_v20 = vld [vmem:[#allocation6 + $0xcb0] sm:$0xff]  ;;  %v6007_v55 = vcombine.high %v1289_v43, %v1293_v47 }
 0x31d   :  { %v5972_v51 = vcombine.low %v1256_v19, %v1260_v20 }
 0x31e   :  { %4867 = vmatpush1.bf16.msra.mxu1 %v5916_v13  ;;  %v5966_v13 = vcombine.low %v1249_v15, %v1253_v16  ;;  %v1300_v15 = vld [vmem:[#allocation6 + $0xdf0] sm:$0xff] }
 0x31f   :  { %5072 = vmatpush1.bf16.msra.mxu0 %v5918_v30  ;;  %4868 = vmatprep.subr.bf16.mxu1 %v5925_v31  ;;  %v5973_v30 = vcombine.high %v1256_v19, %v1260_v20  ;;  %v5975_v31 = vcombine.high %v1257_v24, %v1261_v27  ;;  %v1301_v20 = vld [vmem:[#allocation6 + $0xdf8] sm:$0xff] }
 0x320   :  { %5073 = vmatprep.subr.bf16.mxu0 %v5927_v60  ;;  %v1264_v60 = vld [vmem:[#allocation6 + $0xcd0] sm:$0xff] }
 0x322   :  { %4869 = vmatpush1.bf16.msra.mxu1 %v5924_v34  ;;  %v5981_v34 = vcombine.high %v1264_v60, %v1268_v18 }
 0x323   :  { %5074 = vmatpush1.bf16.msra.mxu0 %v5926_v36  ;;  %4870 = vmatprep.subr.bf16.mxu1 %v5933_v37  ;;  %v5983_v36 = vcombine.high %v1265_v32, %v1269_v33  ;;  %v1272_v37 = vld [vmem:[#allocation6 + $0xd10] sm:$0xff] }
 0x324   :  { %5075 = vmatprep.subr.bf16.mxu0 %v5935_v22  ;;  %v1276_v22 = vld [vmem:[#allocation6 + $0xd30] sm:$0xff] }
 0x325   :  { %v5989_v46 = vcombine.high %v1272_v37, %v1276_v22  ;;  %v5988_v63 = vcombine.low %v1272_v37, %v1276_v22  ;;  %v1305_v22 = vld [vmem:[#allocation6 + $0xe18] sm:$0xff] }
 0x326   :  { %4871 = vmatpush1.bf16.msra.mxu1 %v5932_v49  ;;  %v5991_v49 = vcombine.high %v1273_v42, %v1277_v44  ;;  %v1309_v42 = vld [vmem:[#allocation6 + $0xe38] sm:$0xff] }
 0x327   :  { %5076 = vmatpush1.bf16.msra.mxu0 %v5934_v57  ;;  %4872 = vmatprep.subr.bf16.mxu1 %v5941_v59  ;;  %v1280_v57 = vld [vmem:[#allocation6 + $0xd50] sm:$0xff] }
 0x328   :  { %5077 = vmatprep.subr.bf16.mxu0 %v5943_v29  ;;  %v1284_v59 = vld [vmem:[#allocation6 + $0xd70] sm:$0xff]  ;;  %v1281_v29 = vld [vmem:[#allocation6 + $0xd58] sm:$0xff] }
 0x32a   :  { %4873 = vmatpush1.bf16.msra.mxu1 %v5940_v7  ;;  %v5997_v7 = vcombine.high %v1280_v57, %v1284_v59 }
 0x32b   :  { %5078 = vmatpush1.bf16.msra.mxu0 %v5942_v38  ;;  %4874 = vmatprep.subr.bf16.mxu1 %v5949_v39  ;;  %v5999_v38 = vcombine.high %v1281_v29, %v1285_v62  ;;  %v1288_v39 = vld [vmem:[#allocation6 + $0xd90] sm:$0xff] }
 0x32c   :  { %5079 = vmatprep.subr.bf16.mxu0 %v5951_v61  ;;  %v1292_v61 = vld [vmem:[#allocation6 + $0xdb0] sm:$0xff] }
 0x32d   :  { %v6005_v26 = vcombine.high %v1288_v39, %v1292_v61 }
 0x32e   :  { %4875 = vmatpush1.bf16.msra.mxu1 %v5948_v8  ;;  %v1439_v8 = vrot.slane %v6979_v3, %v225_v28  ;;  %v1297_v28 = vld [vmem:[#allocation6 + $0xdd8] sm:$0xff] }
 0x32f   :  { %5080 = vmatpush1.bf16.msra.mxu0 %v5950_v9  ;;  %4885 = vmatprep.subr.bf16.mxu1 %v5957_v58  ;;  %v1447_v9 = vrot.slane %v6979_v3, %v233_v50  ;;  %v5996_v58 = vcombine.low %v1280_v57, %v1284_v59  ;;  %v1312_v57 = vld [vmem:[#allocation6 + $0xe50] sm:$0xff] }
 0x330   :  { %5090 = vmatprep.subr.bf16.mxu0 %v5959_v10  ;;  %v5998_v10 = vcombine.low %v1281_v29, %v1285_v62  ;;  %v1316_v59 = vld [vmem:[#allocation6 + $0xe70] sm:$0xff]  ;;  %v1313_v29 = vld [vmem:[#allocation6 + $0xe58] sm:$0xff] }
 0x331   :  { %4877 = vmatmul.mubr.bf16.vlgmr.msra.gmra.mrb[12].mxu1 %v6942_v41  ;;  %v1317_v62 = vld [vmem:[#allocation6 + $0xe78] sm:$0xff] }
 0x332   :  { %5082 = vmatmul.mubr.bf16.vlgmr.msra.gmra.mrb[16].mxu0 %v6942_v41  ;;  %4886 = vmatpush1.bf16.msra.mxu1 %v5956_v14  ;;  %v5974_v41 = vcombine.low %v1257_v24, %v1261_v27  ;;  %v1296_v14 = vld [vmem:[#allocation6 + $0xdd0] sm:$0xff] }
 0x333   :  { %4917 = vmatprep.mubr.bf16.mxu1 %v6944_v53  ;;  %5091 = vmatpush1.bf16.msra.mxu0 %v5958_v17  ;;  %v6013_v32 = vcombine.high %v1296_v14, %v1300_v15 }
 0x334   :  { %5122 = vmatprep.mubr.bf16.mxu0 %v6944_v53  ;;  %4887 = vmatprep.subr.bf16.mxu1 %v5965_v52  ;;  %v5980_v53 = vcombine.low %v1264_v60, %v1268_v18  ;;  %v6006_v18 = vcombine.low %v1289_v43, %v1293_v47  ;;  %v6028_v43 = vcombine.low %v1312_v57, %v1316_v59 }
 0x335   :  { %5092 = vmatprep.subr.bf16.mxu0 %v5967_v23  ;;  %v6030_v47 = vcombine.low %v1313_v29, %v1317_v62 }
 0x336   :  { %4888 = vmatpush1.bf16.msra.mxu1 %v5964_v2  ;;  %v6004_v2 = vcombine.low %v1288_v39, %v1292_v61  ;;  %v1320_v39 = vld [vmem:[#allocation6 + $0xe90] sm:$0xff] }
 0x337   :  { %5093 = vmatpush1.bf16.msra.mxu0 %v5966_v13  ;;  %4889 = vmatprep.subr.bf16.mxu1 %v5973_v30  ;;  %v1324_v61 = vld [vmem:[#allocation6 + $0xeb0] sm:$0xff] }
 0x338   :  { %5094 = vmatprep.subr.bf16.mxu0 %v5975_v31 }
 0x33a   :  { %4890 = vmatpush1.bf16.msra.mxu1 %v5972_v51 }
 0x33b   :  { %5095 = vmatpush1.bf16.msra.mxu0 %v5974_v41  ;;  %4891 = vmatprep.subr.bf16.mxu1 %v5981_v34  ;;  %v6015_v41 = vcombine.high %v1297_v28, %v1301_v20  ;;  %v1304_v34 = vld [vmem:[#allocation6 + $0xe10] sm:$0xff] }
 0x33c   :  { %5096 = vmatprep.subr.bf16.mxu0 %v5983_v36  ;;  %v1308_v36 = vld [vmem:[#allocation6 + $0xe30] sm:$0xff] }
 0x33e   :  { %4892 = vmatpush1.bf16.msra.mxu1 %v5980_v53  ;;  %v6012_v53 = vcombine.low %v1296_v14, %v1300_v15 }
 0x33f   :  { %5097 = vmatpush1.bf16.msra.mxu0 %v5982_v45  ;;  %4893 = vmatprep.subr.bf16.mxu1 %v5989_v46  ;;  %v6014_v45 = vcombine.low %v1297_v28, %v1301_v20  ;;  %v6021_v46 = vcombine.high %v1304_v34, %v1308_v36 }
 0x340   :  { %5098 = vmatprep.subr.bf16.mxu0 %v5991_v49  ;;  %v6023_v49 = vcombine.high %v1305_v22, %v1309_v42 }
 0x342   :  { %4894 = vmatpush1.bf16.msra.mxu1 %v5988_v63  ;;  %v6020_v63 = vcombine.low %v1304_v34, %v1308_v36 }
 0x343   :  { %5099 = vmatpush1.bf16.msra.mxu0 %v5990_v6  ;;  %4895 = vmatprep.subr.bf16.mxu1 %v5997_v7  ;;  %v6022_v6 = vcombine.low %v1305_v22, %v1309_v42  ;;  %v6029_v7 = vcombine.high %v1312_v57, %v1316_v59 }
 0x344   :  { %v4550_v11 = vpop.f32.mrb[8].mxu1  ;;  %v4755_v12 = vpop.f32.mrb[12].mxu0  ;;  %5100 = vmatprep.subr.bf16.mxu0 %v5999_v38  ;;  %v6031_v38 = vcombine.high %v1313_v29, %v1317_v62 }
 0x345   :  { %v6250_v16 = vadd.f32 %v4550_v11, %v1435_v40  ;;  %v6252_v17 = vadd.f32 %v4755_v12, %v1443_v21  ;;  %v4552_v52 = vpop.f32.mrb[9].mxu1  ;;  %v4757_v19 = vpop.f32.mrb[13].mxu0  ;;  %v1321_v40 = vld [vmem:[#allocation6 + $0xe98] sm:$0xff]  ;;  %v6036_v12 = vcombine.low %v1320_v39, %v1324_v61 }
 0x346   :  { %v6251_v23 = vadd.f32 %v4552_v52, %v1439_v8  ;;  %v6253_v24 = vadd.f32 %v4757_v19, %v1447_v9  ;;  %v4554_v50 = vpop.f32.mrb[10].mxu1  ;;  %v4759_v27 = vpop.f32.mrb[14].mxu0  ;;  %4896 = vmatpush1.bf16.msra.mxu1 %v5996_v58  ;;  %v1325_v21 = vld [vmem:[#allocation6 + $0xeb8] sm:$0xff]  ;;  %v6037_v8 = vcombine.high %v1320_v39, %v1324_v61  ;;  %v1328_v58 = vld [vmem:[#allocation6 + $0xed0] sm:$0xff] }
 0x347   :  { %v5172_v13 = vmax.f32 %v6250_v16, 0.0  ;;  %v5174_v30 = vmax.f32 %v6252_v17, 0.0  ;;  %5101 = vmatpush1.bf16.msra.mxu0 %v5998_v10  ;;  %v4555_v31 = vpop.f32.mrb[11].mxu1  ;;  %v4760_v60 = vpop.f32.mrb[15].mxu0  ;;  %4897 = vmatprep.subr.bf16.mxu1 %v6005_v26  ;;  %v6039_v9 = vcombine.high %v1321_v40, %v1325_v21  ;;  %v1332_v10 = vld [vmem:[#allocation6 + $0xef0] sm:$0xff]  ;;  %v1329_v26 = vld [vmem:[#allocation6 + $0xed8] sm:$0xff] }
 0x348   :  { %v5173_v33 = vmax.f32 %v6251_v23, 0.0  ;;  %v5175_v51 = vmax.f32 %v6253_v24, 0.0  ;;  %5102 = vmatprep.subr.bf16.mxu0 %v6007_v55  ;;  %v1333_v11 = vld [vmem:[#allocation6 + $0xef8] sm:$0xff]  ;;  %v6038_v55 = vcombine.low %v1321_v40, %v1325_v21  ;;  %v6045_v14 = vcombine.high %v1328_v58, %v1332_v10  ;;  %v1336_v16 = vld [vmem:[#allocation6 + $0xf10] sm:$0xff] }
 0x349   :  { %v6993_v37 = vmax.f32 %v5172_v13, %v5174_v30  ;;  %v6047_v15 = vcombine.high %v1329_v26, %v1333_v11  ;;  %v1340_v17 = vld [vmem:[#allocation6 + $0xf30] sm:$0xff]  ;;  %v1337_v52 = vld [vmem:[#allocation6 + $0xf18] sm:$0xff]  ;;  %v6044_v28 = vcombine.low %v1328_v58, %v1332_v10  ;;  %v6046_v20 = vcombine.low %v1329_v26, %v1333_v11 }
 0x34a   :  { %v6995_v44 = vmax.f32 %v5173_v33, %v5175_v51  ;;  %4898 = vmatpush1.bf16.msra.mxu1 %v6004_v2  ;;  %v1341_v19 = vld [vmem:[#allocation6 + $0xf38] sm:$0xff]  ;;  %v6053_v23 = vcombine.high %v1336_v16, %v1340_v17  ;;  %v1344_v50 = vld [vmem:[#allocation6 + $0xf50] sm:$0xff]  ;;  %v6052_v30 = vcombine.low %v1336_v16, %v1340_v17 }
 0x34b   :  { %5103 = vmatpush1.bf16.msra.mxu0 %v6006_v18  ;;  %4899 = vmatprep.subr.bf16.mxu1 %v6013_v32  ;;  %v6055_v24 = vcombine.high %v1337_v52, %v1341_v19  ;;  %v1348_v27 = vld [vmem:[#allocation6 + $0xf70] sm:$0xff]  ;;  %v1345_v2 = vld [vmem:[#allocation6 + $0xf58] sm:$0xff]  ;;  %v6054_v31 = vcombine.low %v1337_v52, %v1341_v19 }
 0x34c   :  { %5104 = vmatprep.subr.bf16.mxu0 %v6015_v41  ;;  %v1349_v13 = vld [vmem:[#allocation6 + $0xf78] sm:$0xff]  ;;  %v6061_v60 = vcombine.high %v1344_v50, %v1348_v27  ;;  %v1352_v32 = vld [vmem:[#allocation6 + $0xf90] sm:$0xff]  ;;  %v6060_v34 = vcombine.low %v1344_v50, %v1348_v27 }
 0x34d   :  { %v6063_v18 = vcombine.high %v1345_v2, %v1349_v13  ;;  %v1356_v33 = vld [vmem:[#allocation6 + $0xfb0] sm:$0xff]  ;;  %v1353_v51 = vld [vmem:[#allocation6 + $0xf98] sm:$0xff]  ;;  %v6062_v36 = vcombine.low %v1345_v2, %v1349_v13 }
 0x34e   :  { %4900 = vmatpush1.bf16.msra.mxu1 %v6012_v53  ;;  %v1357_v41 = vld [vmem:[#allocation6 + $0xfb8] sm:$0xff]  ;;  %v6069_v22 = vcombine.high %v1352_v32, %v1356_v33  ;;  %v1360_v53 = vld [vmem:[#allocation6 + $0xfd0] sm:$0xff]  ;;  %v6068_v57 = vcombine.low %v1352_v32, %v1356_v33 }
 0x34f   :  { %5105 = vmatpush1.bf16.msra.mxu0 %v6014_v45  ;;  %4901 = vmatprep.subr.bf16.mxu1 %v6021_v46  ;;  %v6071_v42 = vcombine.high %v1353_v51, %v1357_v41  ;;  %v1364_v45 = vld [vmem:[#allocation6 + $0xff0] sm:$0xff]  ;;  %v1361_v46 = vld [vmem:[#allocation6 + $0xfd8] sm:$0xff]  ;;  %v6070_v59 = vcombine.low %v1353_v51, %v1357_v41 }
 0x350   :  { %5106 = vmatprep.subr.bf16.mxu0 %v6023_v49  ;;  %v1365_v49 = vld [vmem:[#allocation6 + $0xff8] sm:$0xff]  ;;  %v6077_v29 = vcombine.high %v1360_v53, %v1364_v45  ;;  %v6076_v39 = vcombine.low %v1360_v53, %v1364_v45  ;;  %v1400_v13 = vld [vmem:[#allocation6 + $0x1110] sm:$0xff] }
 0x351   :  { %v6079_v62 = vcombine.high %v1361_v46, %v1365_v49  ;;  %v6078_v61 = vcombine.low %v1361_v46, %v1365_v49  ;;  %v1408_v51 = vld [vmem:[#allocation6 + $0x1150] sm:$0xff] }
 0x352   :  { %4902 = vmatpush1.bf16.msra.mxu1 %v6020_v63  ;;  %v1368_v63 = vld [vmem:[#allocation6 + $0x1010] sm:$0xff] }
 0x353   :  { %5107 = vmatpush1.bf16.msra.mxu0 %v6022_v6  ;;  %4903 = vmatprep.subr.bf16.mxu1 %v6029_v7  ;;  %v1372_v6 = vld [vmem:[#allocation6 + $0x1030] sm:$0xff]  ;;  %v1369_v7 = vld [vmem:[#allocation6 + $0x1018] sm:$0xff] }
 0x354   :  { %5108 = vmatprep.subr.bf16.mxu0 %v6031_v38  ;;  %v1373_v38 = vld [vmem:[#allocation6 + $0x1038] sm:$0xff]  ;;  %v6085_v40 = vcombine.high %v1368_v63, %v1372_v6  ;;  %v6084_v58 = vcombine.low %v1368_v63, %v1372_v6  ;;  %v1412_v41 = vld [vmem:[#allocation6 + $0x1170] sm:$0xff] }
 0x355   :  { %v6087_v21 = vcombine.high %v1369_v7, %v1373_v38  ;;  %v6086_v10 = vcombine.low %v1369_v7, %v1373_v38  ;;  %v6125_v53 = vcombine.high %v1408_v51, %v1412_v41  ;;  %v1416_v46 = vld [vmem:[#allocation6 + $0x1190] sm:$0xff] }
 0x356   :  { %4904 = vmatpush1.bf16.msra.mxu1 %v6028_v43  ;;  %v1376_v43 = vld [vmem:[#allocation6 + $0x1050] sm:$0xff] }
 0x357   :  { %5109 = vmatpush1.bf16.msra.mxu0 %v6030_v47  ;;  %4905 = vmatprep.subr.bf16.mxu1 %v6037_v8  ;;  %v1380_v47 = vld [vmem:[#allocation6 + $0x1070] sm:$0xff]  ;;  %v1377_v8 = vld [vmem:[#allocation6 + $0x1058] sm:$0xff] }
 0x358   :  { %5110 = vmatprep.subr.bf16.mxu0 %v6039_v9  ;;  %v1381_v9 = vld [vmem:[#allocation6 + $0x1078] sm:$0xff]  ;;  %v6093_v26 = vcombine.high %v1376_v43, %v1380_v47  ;;  %v6092_v16 = vcombine.low %v1376_v43, %v1380_v47  ;;  %v1420_v49 = vld [vmem:[#allocation6 + $0x11b0] sm:$0xff] }
 0x359   :  { %v6095_v11 = vcombine.high %v1377_v8, %v1381_v9  ;;  %v6094_v17 = vcombine.low %v1377_v8, %v1381_v9  ;;  %v6133_v63 = vcombine.high %v1416_v46, %v1420_v49  ;;  %v1424_v7 = vld [vmem:[#allocation6 + $0x11d0] sm:$0xff] }
 0x35a   :  { %4906 = vmatpush1.bf16.msra.mxu1 %v6036_v12  ;;  %v1384_v12 = vld [vmem:[#allocation6 + $0x1090] sm:$0xff] }
 0x35b   :  { %5111 = vmatpush1.bf16.msra.mxu0 %v6038_v55  ;;  %4907 = vmatprep.subr.bf16.mxu1 %v6045_v14  ;;  %v1388_v55 = vld [vmem:[#allocation6 + $0x10b0] sm:$0xff]  ;;  %v1385_v14 = vld [vmem:[#allocation6 + $0x1098] sm:$0xff] }
 0x35c   :  { %5112 = vmatprep.subr.bf16.mxu0 %v6047_v15  ;;  %v1389_v15 = vld [vmem:[#allocation6 + $0x10b8] sm:$0xff]  ;;  %v6101_v52 = vcombine.high %v1384_v12, %v1388_v55  ;;  %v6100_v50 = vcombine.low %v1384_v12, %v1388_v55  ;;  %v1428_v38 = vld [vmem:[#allocation6 + $0x11f0] sm:$0xff] }
 0x35d   :  { %v6103_v19 = vcombine.high %v1385_v14, %v1389_v15  ;;  %v6141_v43 = vcombine.high %v1424_v7, %v1428_v38  ;;  %v6140_v8 = vcombine.low %v1424_v7, %v1428_v38  ;;  %v6447_v12 = vld [vmem:[#allocation9 + $0x50] sm:$0xff]   ;;  %v6144_v7 = vld [vmem:[#allocation10] ss:$0 sm:$0xff] }
 0x35e   :  { %4908 = vmatpush1.bf16.msra.mxu1 %v6044_v28  ;;  %v1392_v28 = vld [vmem:[#allocation6 + $0x10d0] sm:$0xff]  ;;  %v6448_v55 = vld [vmem:[#allocation9 + $0x10] sm:$0xff]  }
 0x35f   :  { %5113 = vmatpush1.bf16.msra.mxu0 %v6046_v20  ;;  %4909 = vmatprep.subr.bf16.mxu1 %v6053_v23  ;;  %v1396_v20 = vld [vmem:[#allocation6 + $0x10f0] sm:$0xff]  ;;  %v1393_v23 = vld [vmem:[#allocation6 + $0x10d8] sm:$0xff] }
 0x360   :  { %5114 = vmatprep.subr.bf16.mxu0 %v6055_v24  ;;  %v1397_v24 = vld [vmem:[#allocation6 + $0x10f8] sm:$0xff]  ;;  %v6109_v27 = vcombine.high %v1392_v28, %v1396_v20 }
 0x361   :  { %v6111_v2 = vcombine.high %v1393_v23, %v1397_v24  ;;  %v6110_v32 = vcombine.low %v1393_v23, %v1397_v24  ;;  %v6458_v23 = vld [vmem:[#allocation9 + $0x38] sm:$0xff]   ;;  %v6459_v24 = vld [vmem:[#allocation12] sm:$0xff]  }
 0x362   :  { %4910 = vmatpush1.bf16.msra.mxu1 %v6052_v30  ;;  %v1404_v30 = vld [vmem:[#allocation6 + $0x1130] sm:$0xff] }
 0x363   :  { %5115 = vmatpush1.bf16.msra.mxu0 %v6054_v31  ;;  %4911 = vmatprep.subr.bf16.mxu1 %v6061_v60  ;;  %v1401_v31 = vld [vmem:[#allocation6 + $0x1118] sm:$0xff]  ;;  %v6117_v33 = vcombine.high %v1400_v13, %v1404_v30 }
 0x364   :  { %5116 = vmatprep.subr.bf16.mxu0 %v6063_v18  ;;  %v1405_v60 = vld [vmem:[#allocation6 + $0x1138] sm:$0xff]  ;;  %v6108_v18 = vcombine.low %v1392_v28, %v1396_v20  ;;  %v6457_v20 = vld [vmem:[#allocation9 + $0x78] sm:$0xff]  }
 0x365   :  { %v6456_v28 = vld [vmem:[#allocation9 + $0x30] sm:$0xff]  }
 0x366   :  { %4912 = vmatpush1.bf16.msra.mxu1 %v6060_v34  ;;  %v1409_v34 = vld [vmem:[#allocation6 + $0x1158] sm:$0xff] }
 0x367   :  { %5117 = vmatpush1.bf16.msra.mxu0 %v6062_v36  ;;  %4913 = vmatprep.subr.bf16.mxu1 %v6069_v22  ;;  %v1413_v36 = vld [vmem:[#allocation6 + $0x1178] sm:$0xff]  ;;  %v6116_v22 = vcombine.low %v1400_v13, %v1404_v30  ;;  %v1451_v30 = vrot.slane %v6979_v3, %v237_v56 }
 0x368   :  { %5118 = vmatprep.subr.bf16.mxu0 %v6071_v42  ;;  %v6118_v42 = vcombine.low %v1401_v31, %v1405_v60  ;;  %v6127_v45 = vcombine.high %v1409_v34, %v1413_v36  ;;  %v6464_v13 = vld [vmem:[#allocation12 + $0x28] sm:$0xff]  }
 0x36a   :  { %4914 = vmatpush1.bf16.msra.mxu1 %v6068_v57  ;;  %v1417_v57 = vld [vmem:[#allocation6 + $0x1198] sm:$0xff] }
 0x36b   :  { %5119 = vmatpush1.bf16.msra.mxu0 %v6070_v59  ;;  %4915 = vmatprep.subr.bf16.mxu1 %v6077_v29  ;;  %v1421_v59 = vld [vmem:[#allocation6 + $0x11b8] sm:$0xff]  ;;  %v6124_v29 = vcombine.low %v1408_v51, %v1412_v41 }
 0x36c   :  { %5120 = vmatprep.subr.bf16.mxu0 %v6079_v62  ;;  %v6126_v62 = vcombine.low %v1409_v34, %v1413_v36  ;;  %v6135_v6 = vcombine.high %v1417_v57, %v1421_v59 }
 0x36e   :  { %4916 = vmatpush1.bf16.msra.mxu1 %v6076_v39  ;;  %v1425_v39 = vld [vmem:[#allocation6 + $0x11d8] sm:$0xff] }
 0x36f   :  { %5121 = vmatpush1.bf16.msra.mxu0 %v6078_v61  ;;  %4926 = vmatprep.subr.bf16.mxu1 %v6085_v40  ;;  %v1429_v61 = vld [vmem:[#allocation6 + $0x11f8] sm:$0xff]  ;;  %v6132_v40 = vcombine.low %v1416_v46, %v1420_v49 }
 0x370   :  { %5131 = vmatprep.subr.bf16.mxu0 %v6087_v21  ;;  %v6134_v21 = vcombine.low %v1417_v57, %v1421_v59  ;;  %v6143_v47 = vcombine.high %v1425_v39, %v1429_v61  ;;  %v6142_v9 = vcombine.low %v1425_v39, %v1429_v61 }
 0x371   :  { %4918 = vmatmul.mubr.bf16.vlgmr.msra.gmra.mrb[12].mxu1 %v6954_v35 }
 0x372   :  { %5123 = vmatmul.mubr.bf16.vlgmr.msra.gmra.mrb[16].mxu0 %v6954_v35  ;;  %4927 = vmatpush1.bf16.msra.mxu1 %v6084_v58  ;;  %v6102_v35 = vcombine.low %v1385_v14, %v1389_v15  ;;  %v6443_v58 = vld [vmem:[#allocation9 + $0x40] sm:$0xff]   ;;  %v6449_v14 = vld [vmem:[#allocation9 + $0x58] sm:$0xff]  }
 0x373   :  { %5132 = vmatpush1.bf16.msra.mxu0 %v6086_v10  ;;  %4928 = vmatprep.subr.bf16.mxu1 %v6093_v26  ;;  %v6444_v10 = vld [vmem:[#allocation9] sm:$0xff]   ;;  %v6445_v26 = vld [vmem:[#allocation9 + $0x48] sm:$0xff]   ;;  %v6450_v15 = vld [vmem:[#allocation9 + $0x18] sm:$0xff]  }
 0x374   :  { %5133 = vmatprep.subr.bf16.mxu0 %v6095_v11  ;;  %4958 = vmatprep.mubr.bf16.mxu1 %v6672_v0  ;;  %v6446_v11 = vld [vmem:[#allocation9 + $0x8] sm:$0xff]  }
 0x375   :  { %5163 = vmatprep.mubr.bf16.mxu0 %v6672_v0  ;;  %v6119_v0 = vcombine.high %v1401_v31, %v1405_v60  ;;  %v1459_v31 = vrot.slane %v6979_v3, %v245_v54  ;;  %v1455_v60 = vrot.slane %v6979_v3, %v241_v4 }
 0x376   :  { %4929 = vmatpush1.bf16.msra.mxu1 %v6092_v16  ;;  %v6451_v16 = vld [vmem:[#allocation9 + $0x60] sm:$0xff]  }
 0x377   :  { %5134 = vmatpush1.bf16.msra.mxu0 %v6094_v17  ;;  %4930 = vmatprep.subr.bf16.mxu1 %v6101_v52  ;;  %v6452_v17 = vld [vmem:[#allocation9 + $0x20] sm:$0xff]   ;;  %v6454_v52 = vld [vmem:[#allocation9 + $0x28] sm:$0xff]  }
 0x378   :  { %5135 = vmatprep.subr.bf16.mxu0 %v6103_v19  ;;  %v6455_v19 = vld [vmem:[#allocation9 + $0x70] sm:$0xff]  }
 0x37a   :  { %4931 = vmatpush1.bf16.msra.mxu1 %v6100_v50  ;;  %v6460_v50 = vld [vmem:[#allocation12 + $0x8] sm:$0xff]  }
 0x37b   :  { %5136 = vmatpush1.bf16.msra.mxu0 %v6102_v35  ;;  %4932 = vmatprep.subr.bf16.mxu1 %v6109_v27  ;;  %v6461_v35 = vld [vmem:[#allocation12 + $0x10] sm:$0xff]   ;;  %v6462_v27 = vld [vmem:[#allocation12 + $0x18] sm:$0xff]  }
 0x37c   :  { %5137 = vmatprep.subr.bf16.mxu0 %v6111_v2  ;;  %v6463_v2 = vld [vmem:[#allocation12 + $0x20] sm:$0xff]  }
 0x37e   :  { %4933 = vmatpush1.bf16.msra.mxu1 %v6108_v18  ;;  %v1463_v18 = vrot.slane %v6979_v3, %v249_v5 }
 0x37f   :  { %5138 = vmatpush1.bf16.msra.mxu0 %v6110_v32  ;;  %4934 = vmatprep.subr.bf16.mxu1 %v6117_v33 }
 0x380   :  { %5139 = vmatprep.subr.bf16.mxu0 %v6119_v0 }
 0x382   :  { %4935 = vmatpush1.bf16.msra.mxu1 %v6116_v22 }
 0x383   :  { %5140 = vmatpush1.bf16.msra.mxu0 %v6118_v42  ;;  %4936 = vmatprep.subr.bf16.mxu1 %v6125_v53 }
 0x384   :  { %5141 = vmatprep.subr.bf16.mxu0 %v6127_v45 }
 0x386   :  { %4937 = vmatpush1.bf16.msra.mxu1 %v6124_v29 }
 0x387   :  { %5142 = vmatpush1.bf16.msra.mxu0 %v6126_v62  ;;  %4938 = vmatprep.subr.bf16.mxu1 %v6133_v63  ;;  %v6465_v62 = vld [vmem:[#allocation12 + $0x30] sm:$0xff]   ;;  %v6466_v63 = vld [vmem:[#allocation12 + $0x38] sm:$0xff]  }
 0x388   :  { %5143 = vmatprep.subr.bf16.mxu0 %v6135_v6 }
 0x38a   :  { %4939 = vmatpush1.bf16.msra.mxu1 %v6132_v40 }
 0x38b   :  { %5144 = vmatpush1.bf16.msra.mxu0 %v6134_v21  ;;  %4940 = vmatprep.subr.bf16.mxu1 %v6141_v43 }
 0x38c   :  { %5145 = vmatprep.subr.bf16.mxu0 %v6143_v47 }
 0x38e   :  { %4941 = vmatpush1.bf16.msra.mxu1 %v6140_v8 }
 0x38f   :  { %5146 = vmatpush1.bf16.msra.mxu0 %v6142_v9  ;;  %6179 = vmatprep.subr.bf16.mxu1 %v6443_v58 }
 0x390   :  { %6230 = vmatprep.subr.bf16.mxu0 %v6673_v1 }
 0x391   :  { %4959 = vmatmul.mubr.bf16.vlgmr.msra.gmra.mrb[12].mxu1 %v6961_v48 }
 0x392   :  { %5164 = vmatmul.mubr.bf16.vlgmr.msra.gmra.mrb[16].mxu0 %v6961_v48  ;;  %6180 = vmatpush3.bf16.msra.mxu1 %v6444_v10  ;;  %v6453_v48 = vld [vmem:[#allocation9 + $0x68] sm:$0xff]  }
 0x393   :  { %6181 = vmatprep.subr.bf16.mxu1 %v6445_v26  ;;  %6246 = vmatprep.mubr.msk.bf16.mxu0 %vm6674_vm0, %v6673_v1 }
 0x394   :  { %6231 = vmatpush3.bf16.msra.mxu0 %v6459_v24 }
 0x395   :  { %6232 = vmatprep.subr.bf16.mxu0 %v6673_v1 }
 0x396   :  { %6182 = vmatpush3.bf16.msra.mxu1 %v6446_v11 }
 0x397   :  { %6183 = vmatprep.subr.bf16.mxu1 %v6447_v12 }
 0x398   :  { %6233 = vmatpush3.bf16.msra.mxu0 %v6460_v50 }
 0x399   :  { %6234 = vmatprep.subr.bf16.mxu0 %v6673_v1 }
 0x39a   :  { %6184 = vmatpush3.bf16.msra.mxu1 %v6448_v55 }
 0x39b   :  { %6185 = vmatprep.subr.bf16.mxu1 %v6449_v14 }
 0x39c   :  { %6235 = vmatpush3.bf16.msra.mxu0 %v6461_v35 }
 0x39d   :  { %6236 = vmatprep.subr.bf16.mxu0 %v6673_v1 }
 0x39e   :  { %6186 = vmatpush3.bf16.msra.mxu1 %v6450_v15 }
 0x39f   :  { %6187 = vmatprep.subr.bf16.mxu1 %v6451_v16 }
 0x3a0   :  { %6237 = vmatpush3.bf16.msra.mxu0 %v6462_v27 }
 0x3a1   :  { %6238 = vmatprep.subr.bf16.mxu0 %v6673_v1 }
 0x3a2   :  { %6188 = vmatpush3.bf16.msra.mxu1 %v6452_v17 }
 0x3a3   :  { %6189 = vmatprep.subr.bf16.mxu1 %v6453_v48 }
 0x3a4   :  { %6239 = vmatpush3.bf16.msra.mxu0 %v6463_v2 }
 0x3a5   :  { %6240 = vmatprep.subr.bf16.mxu0 %v6673_v1 }
 0x3a6   :  { %6190 = vmatpush3.bf16.msra.mxu1 %v6454_v52 }
 0x3a7   :  { %6191 = vmatprep.subr.bf16.mxu1 %v6455_v19 }
 0x3a8   :  { %6241 = vmatpush3.bf16.msra.mxu0 %v6464_v13 }
 0x3a9   :  { %6242 = vmatprep.subr.bf16.mxu0 %v6673_v1 }
 0x3aa   :  { %6192 = vmatpush3.bf16.msra.mxu1 %v6456_v28 }
 0x3ab   :  { %6193 = vmatprep.subr.bf16.mxu1 %v6457_v20 }
 0x3ac   :  { %6243 = vmatpush3.bf16.msra.mxu0 %v6465_v62 }
 0x3ad   :  { %6244 = vmatprep.subr.bf16.mxu0 %v6673_v1 }
 0x3ae   :  { %6194 = vmatpush3.bf16.msra.mxu1 %v6458_v23 }
 0x3b0   :  { %6245 = vmatpush3.bf16.msra.mxu0 %v6466_v63 }
 0x464   :  { %v4960_v32 = vpop.f32.mrb[12].mxu1 }
 0x465   :  { %v6254_v33 = vadd.f32 %v4960_v32, %v1451_v30  ;;  %v5165_v0 = vpop.f32.mrb[16].mxu0  ;;  %v4962_v51 = vpop.f32.mrb[13].mxu1 }
 0x466   :  { %v6256_v41 = vadd.f32 %v5165_v0, %v1459_v31  ;;  %v6255_v34 = vadd.f32 %v4962_v51, %v1455_v60  ;;  %v5167_v36 = vpop.f32.mrb[17].mxu0  ;;  %v4964_v56 = vpop.f32.mrb[14].mxu1 }
 0x467   :  { %v5176_v22 = vmax.f32 %v6254_v33, 0.0  ;;  %v6257_v42 = vadd.f32 %v5167_v36, %v1463_v18  ;;  %v5169_v53 = vpop.f32.mrb[18].mxu0  ;;  %v4965_v54 = vpop.f32.mrb[15].mxu1 }
 0x468   :  { %v5178_v45 = vmax.f32 %v6256_v41, 0.0  ;;  %v5177_v46 = vmax.f32 %v6255_v34, 0.0  ;;  %v5170_v49 = vpop.f32.mrb[19].mxu0 }
 0x469   :  { %v5179_v4 = vmax.f32 %v6257_v42, 0.0 }
 0x46a   :  { %v5182_v57 = vmax.f32 %v5176_v22, %v5178_v45 }
 0x46b   :  { %v5183_v25 = vmax.f32 %v5177_v46, %v5179_v4 }
 0x46c   :  { %v5184_v5 = vmax.f32 %v6993_v37, %v5182_v57 }
 0x46d   :  { %v5185_v3 = vmax.f32 %v6995_v44, %v5183_v25  ;;  %v6161_v44 = vld [vmem:[#allocation13] ss:$0 sm:$0xff] }
 0x46e   :  { %v5186_v29 = vpack.c.bf16 %v5184_v5, %v5184_v5 }
 0x46f   :  { %v5187_v59 = vpack.c.bf16 %v5185_v3, %v5185_v3 }
 0x471   :  { %5355 = vmatprep.mubr.bf16.mxu1 %v5187_v59 }
 0x472   :  { %5356 = vmatmul.mubr.bf16.vlgmr.msra.gmra.mrb[16].mxu1 %v5186_v29 }
 0x545   :  { %v6195_v6 = vpop.f32.mrb[16].mxu1 }
 0x546   :  { %v6196_v38 = vpop.f32.mrb[17].mxu1 }
 0x547   :  { %v6197_v39 = vadd.f32 %v6196_v38, %v6195_v6  ;;  %v6198_v61 = vpop.f32.mrb[18].mxu1 }
 0x548   :  { %v6199_v40 = vpop.f32.mrb[19].mxu1 }
 0x549   :  { %v5358_v21 = vadd.f32 %v6197_v39, %v6144_v7 }
 0x54b   :  { %v5363_v37 = vmax.f32 %v5358_v21, 0.0 }
 0x54d   :  { %v5364_v43 = vpack.c.bf16 %v5363_v37, %v5363_v37 }
 0x54f   :  { %6247 = vmatmul.mubr.bf16.vlgmr.msra.gmra.mrb[20].mxu0 %v5364_v43 }
 0x622   :  { %v5470_v47 = vpop.f32.mrb[20].mxu0 }
 0x623   :  { %v5471_v8 = vadd.f32 %v6161_v44, %v5470_v47  ;;  %v6248_v9 = vpop.f32.mrb[21].mxu0 }
 0x624   :  { %v5473_v58 = vpop.f32.mrb[22].mxu0 }
 0x625   :  { %5476 = vmax.xlane.f32.xlu0 %v5471_v8  ;;  %v6249_v10 = vpop.f32.mrb[23].mxu0 }
 0x6b2   :  { %v5477_v1 = vpop.xlane.xlu0 %5476 }
 0x6b3   :  { %v5478_v26 = vsub.f32 %v5471_v8, %v5477_v1 }
 0x6b5   :  { %v5479_v11 = vmul.f32 1.442695, %v5478_v26 }
 0x6b7   :  { %6467 = vpow2.f32 %v5479_v11 }
 0x6c1   :  { %v6468_v12 = vpop.eup %6467 }
 0x6c2   :  { %5481 = vadd.xlane.f32.xlu0 %v6468_v12 }
 0x74f   :  { %v5482_v55 = vpop.xlane.xlu0 %5481 }
 0x750   :  { %6469 = vrcp.f32 %v5482_v55 }
 0x75a   :  { %v6470_v14 = vpop.eup %6469 }
 0x75b   :  { %v5484_v15 = vmul.f32 %v6470_v14, %v6468_v12 }
 0x75d   :  { %5485 = vst [vmem:[%s7039_s9] sm:$0xff] %v5484_v15 }
 0x75e   :  { %5490 = vsyncpa [#allocation3], 1 }
 0x75f   :  { %5491 = vsyncpa [#allocation5], 1 }
 0x760   :  { %5492 = vsyncpa [#allocation8], 1 }
 0x761   :  { %5493 = vsyncpa [#allocation11], 1 }
 0x762   :  { %5494 = vsyncpa [#allocation14], 1 }

</bundles_post_ra>
